<compile_context>
chip_gen: v7x
topology: tpu7x:2x2x1
jax: 0.10.0
libtpu: 0.0.40
codegen_flags: <defaults>
</compile_context>

<pallas_src>
import functools
import math

import jax
import jax.numpy as jnp
from jax import lax
from jax.experimental import pallas as pl
from jax.experimental.pallas import tpu as pltpu

LANE = 128
SUBLANE = 8


def _round_up(x, m):
    return (x + m - 1) // m * m


# ----------------------------------------------------------------------------
# Fused kernel: 3 stacked LSTM layers + final Linear.
# Packed gate order is (i, f, o, g): sigmoid on lanes [0, 3H), tanh on [3H, 4H).
# ----------------------------------------------------------------------------
def _fused_lstm_kernel(x_ref, wx1_ref, wh1_ref, b1_ref,
                       wx2_ref, wh2_ref, b2_ref,
                       wx3_ref, wh3_ref, b3_ref,
                       wfc_ref, bfc_ref, out_ref,
                       xp_ref, h1_ref, c1_ref, h2_ref, c2_ref, h3_ref, c3_ref,
                       *, t_chunk, bp, h):
    chunk = pl.program_id(0)
    g4 = wh1_ref.shape[-1]                       # padded packed-gate width

    @pl.when(chunk == 0)
    def _init():
        for ref in (h1_ref, c1_ref, h2_ref, c2_ref, h3_ref, c3_ref):
            ref[...] = jnp.zeros_like(ref)

    # ---- hoisted, loop-invariant loads / broadcasts -------------------------
    wh1 = wh1_ref[...]
    wx2 = wx2_ref[...]
    wh2 = wh2_ref[...]
    wx3 = wx3_ref[...]
    wh3 = wh3_ref[...]
    b1 = jnp.broadcast_to(b1_ref[...], (bp, g4))
    b2 = jnp.broadcast_to(b2_ref[...], (bp, g4))
    b3 = jnp.broadcast_to(b3_ref[...], (bp, g4))
    lanes = lax.broadcasted_iota(jnp.int32, (bp, g4), 1)
    sig_mask = lanes < 3 * h                     # i,f,o lanes -> sigmoid; g -> tanh

    # ---- layer-1 input projection for the whole chunk (one big matmul) ------
    x_bf = x_ref[...].astype(jnp.bfloat16)                       # (t_chunk*bp, F)
    xp_ref[...] = jnp.dot(x_bf, wx1_ref[...],
                          preferred_element_type=jnp.float32)    # (t_chunk*bp, g4)

    def cell(gates, c_prev):
        # One masked transcendental pass over the packed gate vreg(s).
        act = jnp.where(sig_mask, jax.nn.sigmoid(gates), jnp.tanh(gates))
        i_g = act[:, 0:h]
        f_g = act[:, h:2 * h]
        o_g = act[:, 2 * h:3 * h]
        g_g = act[:, 3 * h:4 * h]
        c_new = f_g * c_prev + i_g * g_g
        h_new = o_g * jnp.tanh(c_new)
        return h_new, c_new

    # TODO(synk): on v5e/v6e keep W_hh resident in the MXU across timesteps via
    # pltpu.matmul_push_rhs / matmul_acc_lhs / matmul_pop instead of jnp.dot.
    def step(tt, carry):
        h1, c1, h2, c2, h3, c3 = carry
        row = pl.multiple_of(tt * bp, bp)

        # layer 1: hoisted x-projection + recurrent projection
        g1 = (xp_ref[pl.ds(row, bp), :]
              + jnp.dot(h1.astype(jnp.bfloat16), wh1,
                        preferred_element_type=jnp.float32) + b1)
        h1, c1 = cell(g1, c1)

        # layer 2
        g2 = (jnp.dot(h1.astype(jnp.bfloat16), wx2,
                      preferred_element_type=jnp.float32)
              + jnp.dot(h2.astype(jnp.bfloat16), wh2,
                        preferred_element_type=jnp.float32) + b2)
        h2, c2 = cell(g2, c2)

        # layer 3
        g3 = (jnp.dot(h2.astype(jnp.bfloat16), wx3,
                      preferred_element_type=jnp.float32)
              + jnp.dot(h3.astype(jnp.bfloat16), wh3,
                        preferred_element_type=jnp.float32) + b3)
        h3, c3 = cell(g3, c3)
        return (h1, c1, h2, c2, h3, c3)

    carry0 = (h1_ref[...], c1_ref[...], h2_ref[...], c2_ref[...],
              h3_ref[...], c3_ref[...])
    h1, c1, h2, c2, h3, c3 = lax.fori_loop(0, t_chunk, step, carry0,
                                           unroll=(t_chunk <= 32))

    # Persist states once per chunk (not per timestep).
    h1_ref[...] = h1; c1_ref[...] = c1
    h2_ref[...] = h2; c2_ref[...] = c2
    h3_ref[...] = h3; c3_ref[...] = c3

    # Final Linear on the last timestep's hidden state, only on the last chunk.
    @pl.when(chunk == pl.num_programs(0) - 1)
    def _final():
        out_ref[...] = (jnp.dot(h3.astype(jnp.bfloat16), wfc_ref[...],
                                preferred_element_type=jnp.float32)
                        + bfc_ref[...])


# ----------------------------------------------------------------------------
# One-time parameter prep: transpose, fold biases, reorder gates to (i,f,o,g),
# pack gates into 4*H contiguous lanes (padded to a lane multiple), cast the
# weights to bf16.  Hoisted out of the forward path.
# ----------------------------------------------------------------------------
def prepare_params(params):
    w_ih1, w_hh1, _, _ = params["lstm"][0]
    H = w_hh1.shape[1]
    F = w_ih1.shape[1]
    G4 = _round_up(4 * H, LANE)                  # packed gate width (128 for H=32)
    perm = jnp.array([0, 1, 3, 2])               # PyTorch (i,f,g,o) -> (i,f,o,g)

    def pack_w(w):                               # (4H, in) -> (in, G4) bf16
        in_dim = w.shape[1]
        w4 = jnp.transpose(w).reshape(in_dim, 4, H)[:, perm, :]
        out = jnp.zeros((in_dim, G4), jnp.float32)
        out = out.at[:, :4 * H].set(w4.reshape(in_dim, 4 * H))
        return out.astype(jnp.bfloat16)

    wx, wh, bs = [], [], []
    for (w_ih, w_hh, b_ih, b_hh) in params["lstm"]:
        wx.append(pack_w(w_ih))                                  # (F or H, G4)
        wh.append(pack_w(w_hh))                                  # (H, G4)
        b4 = (b_ih + b_hh).reshape(4, H)[perm, :]                # folded biases
        b = jnp.zeros((1, G4), jnp.float32).at[0, :4 * H].set(b4.reshape(4 * H))
        bs.append(b)

    wfc = (jnp.zeros((H, LANE), jnp.float32)
           .at[:, 0].set(params["fc_w"][0]).astype(jnp.bfloat16))
    bfc = jnp.zeros((1, LANE), jnp.float32).at[0, 0].set(params["fc_b"][0])
    return {"wx": wx, "wh": wh, "b": bs, "wfc": wfc, "bfc": bfc,
            "F": F, "H": H, "G4": G4}


# ----------------------------------------------------------------------------
# Forward pass (batch-first interface, like the PyTorch module).
# ----------------------------------------------------------------------------
def lstm_model_forward(x_btf, kp, *, t_chunk=None):
    B, T, F = x_btf.shape
    H, G4 = kp["H"], kp["G4"]
    BP = _round_up(B, SUBLANE)
    if t_chunk is None:
        if T <= 32:
            t_chunk = T
        else:           # long T: chunk the grid instead of fully unrolling
            t_chunk = next(d for d in range(32, 0, -1) if T % d == 0)
    assert T % t_chunk == 0
    n_chunks = T // t_chunk

    # time-major, batch padded to 8 sublanes; F left un-padded (full-extent
    # last-dim block) so the x HBM stream is not lane-inflated 32x.
    x_tm = jnp.transpose(x_btf, (1, 0, 2))                       # (T, B, F)
    x_p = jnp.zeros((T, BP, F), jnp.float32).at[:, :B, :].set(x_tm)
    x_p = x_p.reshape(T * BP, F)                                 # (T*BP, F)

    kernel = functools.partial(_fused_lstm_kernel, t_chunk=t_chunk, bp=BP, h=H)
    const = lambda c: (0, 0)
    # NOTE: weight/bias index maps are constant -> DMA'd once.  For large H:
    #  * single-buffer them (pipeline_mode=pl.Buffered(1)) to halve their VMEM,
    #  * re-derive the VMEM budget per chip (v7x has 64 MiB) and raise
    #    vmem_limit_bytes / tile the gate dimension if needed,
    #  * on v7x, add a leading 'parallel' batch-tile grid axis when B >= 16.

    out = pl.pallas_call(
        kernel,
        out_shape=jax.ShapeDtypeStruct((BP, LANE), jnp.float32),
        grid_spec=pltpu.PrefetchScalarGridSpec(
            num_scalar_prefetch=0,
            grid=(n_chunks,),
            in_specs=[
                pl.BlockSpec((t_chunk * BP, F), lambda c: (c, 0)),
                pl.BlockSpec(kp["wx"][0].shape, const),
                pl.BlockSpec(kp["wh"][0].shape, const),
                pl.BlockSpec(kp["b"][0].shape, const),
                pl.BlockSpec(kp["wx"][1].shape, const),
                pl.BlockSpec(kp["wh"][1].shape, const),
                pl.BlockSpec(kp["b"][1].shape, const),
                pl.BlockSpec(kp["wx"][2].shape, const),
                pl.BlockSpec(kp["wh"][2].shape, const),
                pl.BlockSpec(kp["b"][2].shape, const),
                pl.BlockSpec(kp["wfc"].shape, const),
                pl.BlockSpec(kp["bfc"].shape, const),
            ],
            out_specs=pl.BlockSpec((BP, LANE), const),
            scratch_shapes=[pltpu.VMEM((t_chunk * BP, G4), jnp.float32)]  # x-proj
                         + [pltpu.VMEM((BP, H), jnp.float32)] * 6,        # h/c x3
        ),
        compiler_params=pltpu.CompilerParams(
            dimension_semantics=("arbitrary",),        # sequential recurrence
            vmem_limit_bytes=32 * 1024 * 1024),        # re-derive for large H
    )(x_p, kp["wx"][0], kp["wh"][0], kp["b"][0],
      kp["wx"][1], kp["wh"][1], kp["b"][1],
      kp["wx"][2], kp["wh"][2], kp["b"][2],
      kp["wfc"], kp["bfc"])

    return out[:B, :1]


# ----------------------------------------------------------------------------
# Deterministic parameter init (PyTorch layout / init scheme).
# ----------------------------------------------------------------------------
def init_params(key, input_size, hidden):
    k = 1.0 / math.sqrt(hidden)
    lstm_params = []
    in_sz = input_size
    for _ in range(3):
        key, k1, k2, k3, k4 = jax.random.split(key, 5)
        w_ih = jax.random.uniform(k1, (4 * hidden, in_sz), jnp.float32, -k, k)
        w_hh = jax.random.uniform(k2, (4 * hidden, hidden), jnp.float32, -k, k)
        b_ih = jax.random.uniform(k3, (4 * hidden,), jnp.float32, -k, k)
        b_hh = jax.random.uniform(k4, (4 * hidden,), jnp.float32, -k, k)
        lstm_params.append((w_ih, w_hh, b_ih, b_hh))
        in_sz = hidden
    key, k5, k6 = jax.random.split(key, 3)
    fc_w = jax.random.uniform(k5, (1, hidden), jnp.float32, -k, k)
    fc_b = jax.random.uniform(k6, (1,), jnp.float32, -k, k)
    return {"lstm": lstm_params, "fc_w": fc_w, "fc_b": fc_b}


# ----------------------------------------------------------------------------
# Pure-JAX f32 reference (lax.scan, HIGHEST-precision matmuls).
# ----------------------------------------------------------------------------
def _ref_lstm_layer(x_tmf, w_ih, w_hh, b_ih, b_hh):
    H = w_hh.shape[1]
    B = x_tmf.shape[1]
    prec = lax.Precision.HIGHEST

    def step(carry, x_t):
        h, c = carry
        gates = (jnp.dot(x_t, w_ih.T, precision=prec)
                 + jnp.dot(h, w_hh.T, precision=prec) + b_ih + b_hh)
        i = jax.nn.sigmoid(gates[:, 0:H])
        f = jax.nn.sigmoid(gates[:, H:2 * H])
        g = jnp.tanh(gates[:, 2 * H:3 * H])
        o = jax.nn.sigmoid(gates[:, 3 * H:4 * H])
        c = f * c + i * g
        h = o * jnp.tanh(c)
        return (h, c), h

    init = (jnp.zeros((B, H), jnp.float32), jnp.zeros((B, H), jnp.float32))
    _, hs = jax.lax.scan(step, init, x_tmf)
    return hs


def _ref_forward(x_btf, params):
    x = jnp.transpose(x_btf, (1, 0, 2))
    for (w_ih, w_hh, b_ih, b_hh) in params["lstm"]:
        x = _ref_lstm_layer(x, w_ih, w_hh, b_ih, b_hh)
    return (jnp.dot(x[-1], params["fc_w"].T, precision=lax.Precision.HIGHEST)
            + params["fc_b"])


if __name__ == "__main__":
    B, T, F, H = 2, 8, 4, 32

    key = jax.random.PRNGKey(0)
    key, kx, kparam = jax.random.split(key, 3)
    x = jax.random.normal(kx, (B, T, F), jnp.float32)
    params = init_params(kparam, F, H)
    kparams = prepare_params(params)             # one-time weight prep

    out = jax.block_until_ready(lstm_model_forward(x, kparams))
    assert out.shape == (B, 1), out.shape

    ref = jax.block_until_ready(_ref_forward(x, params))
    # bf16 weights on the MXU -> bf16-class tolerance vs. the f32 reference.
    assert jnp.allclose(out, ref, atol=2e-2, rtol=2e-2), (out, ref)

    print("KERNEL_OK")
</pallas_src>

<mosaic_0001>
module attributes {stable_mosaic.version = 11 : i64} {
  func.func @_fused_lstm_kernel(%arg0: i32, %arg1: memref<64x4xf32, #tpu.memory_space<vmem>>, %arg2: memref<4x128xbf16, #tpu.memory_space<vmem>>, %arg3: memref<32x128xbf16, #tpu.memory_space<vmem>>, %arg4: memref<1x128xf32, #tpu.memory_space<vmem>>, %arg5: memref<32x128xbf16, #tpu.memory_space<vmem>>, %arg6: memref<32x128xbf16, #tpu.memory_space<vmem>>, %arg7: memref<1x128xf32, #tpu.memory_space<vmem>>, %arg8: memref<32x128xbf16, #tpu.memory_space<vmem>>, %arg9: memref<32x128xbf16, #tpu.memory_space<vmem>>, %arg10: memref<1x128xf32, #tpu.memory_space<vmem>>, %arg11: memref<32x128xbf16, #tpu.memory_space<vmem>>, %arg12: memref<1x128xf32, #tpu.memory_space<vmem>>, %arg13: memref<8x128xf32, #tpu.memory_space<vmem>>, %arg14: memref<64x128xf32, #tpu.memory_space<vmem>>, %arg15: memref<8x32xf32, #tpu.memory_space<vmem>>, %arg16: memref<8x32xf32, #tpu.memory_space<vmem>>, %arg17: memref<8x32xf32, #tpu.memory_space<vmem>>, %arg18: memref<8x32xf32, #tpu.memory_space<vmem>>, %arg19: memref<8x32xf32, #tpu.memory_space<vmem>>, %arg20: memref<8x32xf32, #tpu.memory_space<vmem>>) attributes {dimension_semantics = [#tpu.dimension_semantics<arbitrary>], iteration_bounds = array<i64: 1>, scalar_prefetch = 0 : i64, scratch_operands = 7 : i64, tpu.core_type = #tpu.core_type<tc>, window_params = [{transform_indices = @transform_0, window_bounds = array<i64: 64, 4>}, {pipeline_mode = #tpu.pipeline_mode<synchronous>, transform_indices = @transform_1, window_bounds = array<i64: 4, 128>}, {pipeline_mode = #tpu.pipeline_mode<synchronous>, transform_indices = @transform_2, window_bounds = array<i64: 32, 128>}, {pipeline_mode = #tpu.pipeline_mode<synchronous>, transform_indices = @transform_3, window_bounds = array<i64: 1, 128>}, {pipeline_mode = #tpu.pipeline_mode<synchronous>, transform_indices = @transform_4, window_bounds = array<i64: 32, 128>}, {pipeline_mode = #tpu.pipeline_mode<synchronous>, transform_indices = @transform_5, window_bounds = array<i64: 32, 128>}, {pipeline_mode = #tpu.pipeline_mode<synchronous>, transform_indices = @transform_6, window_bounds = array<i64: 1, 128>}, {pipeline_mode = #tpu.pipeline_mode<synchronous>, transform_indices = @transform_7, window_bounds = array<i64: 32, 128>}, {pipeline_mode = #tpu.pipeline_mode<synchronous>, transform_indices = @transform_8, window_bounds = array<i64: 32, 128>}, {pipeline_mode = #tpu.pipeline_mode<synchronous>, transform_indices = @transform_9, window_bounds = array<i64: 1, 128>}, {pipeline_mode = #tpu.pipeline_mode<synchronous>, transform_indices = @transform_10, window_bounds = array<i64: 32, 128>}, {pipeline_mode = #tpu.pipeline_mode<synchronous>, transform_indices = @transform_11, window_bounds = array<i64: 1, 128>}, {pipeline_mode = #tpu.pipeline_mode<synchronous>, transform_indices = @transform_12, window_bounds = array<i64: 8, 128>}]} {
    %c0_i32 = arith.constant 0 : i32
    %0 = arith.cmpi eq, %arg0, %c0_i32 : i32
    %1 = arith.extui %0 : i1 to i32
    %c0_i32_0 = arith.constant 0 : i32
    %2 = arith.cmpi ne, %1, %c0_i32_0 : i32
    scf.if %2 {
      %cst_129 = arith.constant 0.000000e+00 : f32
      %584 = vector.broadcast %cst_129 : f32 to vector<8x32xf32>
      %c0_130 = arith.constant 0 : index
      %c0_131 = arith.constant 0 : index
      %585 = vector.load %arg15[%c0_130, %c0_131] : memref<8x32xf32, #tpu.memory_space<vmem>>, vector<8x32xf32>
      tpu.vector_store %arg15[%c0_130, %c0_131], %584 {strides = array<i32>} : memref<8x32xf32, #tpu.memory_space<vmem>>, vector<8x32xf32>,
      %cst_132 = arith.constant 0.000000e+00 : f32
      %586 = vector.broadcast %cst_132 : f32 to vector<8x32xf32>
      %c0_133 = arith.constant 0 : index
      %c0_134 = arith.constant 0 : index
      %587 = vector.load %arg16[%c0_133, %c0_134] : memref<8x32xf32, #tpu.memory_space<vmem>>, vector<8x32xf32>
      tpu.vector_store %arg16[%c0_133, %c0_134], %586 {strides = array<i32>} : memref<8x32xf32, #tpu.memory_space<vmem>>, vector<8x32xf32>,
      %cst_135 = arith.constant 0.000000e+00 : f32
      %588 = vector.broadcast %cst_135 : f32 to vector<8x32xf32>
      %c0_136 = arith.constant 0 : index
      %c0_137 = arith.constant 0 : index
      %589 = vector.load %arg17[%c0_136, %c0_137] : memref<8x32xf32, #tpu.memory_space<vmem>>, vector<8x32xf32>
      tpu.vector_store %arg17[%c0_136, %c0_137], %588 {strides = array<i32>} : memref<8x32xf32, #tpu.memory_space<vmem>>, vector<8x32xf32>,
      %cst_138 = arith.constant 0.000000e+00 : f32
      %590 = vector.broadcast %cst_138 : f32 to vector<8x32xf32>
      %c0_139 = arith.constant 0 : index
      %c0_140 = arith.constant 0 : index
      %591 = vector.load %arg18[%c0_139, %c0_140] : memref<8x32xf32, #tpu.memory_space<vmem>>, vector<8x32xf32>
      tpu.vector_store %arg18[%c0_139, %c0_140], %590 {strides = array<i32>} : memref<8x32xf32, #tpu.memory_space<vmem>>, vector<8x32xf32>,
      %cst_141 = arith.constant 0.000000e+00 : f32
      %592 = vector.broadcast %cst_141 : f32 to vector<8x32xf32>
      %c0_142 = arith.constant 0 : index
      %c0_143 = arith.constant 0 : index
      %593 = vector.load %arg19[%c0_142, %c0_143] : memref<8x32xf32, #tpu.memory_space<vmem>>, vector<8x32xf32>
      tpu.vector_store %arg19[%c0_142, %c0_143], %592 {strides = array<i32>} : memref<8x32xf32, #tpu.memory_space<vmem>>, vector<8x32xf32>,
      %cst_144 = arith.constant 0.000000e+00 : f32
      %594 = vector.broadcast %cst_144 : f32 to vector<8x32xf32>
      %c0_145 = arith.constant 0 : index
      %c0_146 = arith.constant 0 : index
      %595 = vector.load %arg20[%c0_145, %c0_146] : memref<8x32xf32, #tpu.memory_space<vmem>>, vector<8x32xf32>
      tpu.vector_store %arg20[%c0_145, %c0_146], %594 {strides = array<i32>} : memref<8x32xf32, #tpu.memory_space<vmem>>, vector<8x32xf32>,
    } else {
    }
    %c0 = arith.constant 0 : index
    %c0_1 = arith.constant 0 : index
    %3 = vector.load %arg3[%c0, %c0_1] : memref<32x128xbf16, #tpu.memory_space<vmem>>, vector<32x128xbf16>
    %c0_2 = arith.constant 0 : index
    %c0_3 = arith.constant 0 : index
    %4 = vector.load %arg5[%c0_2, %c0_3] : memref<32x128xbf16, #tpu.memory_space<vmem>>, vector<32x128xbf16>
    %c0_4 = arith.constant 0 : index
    %c0_5 = arith.constant 0 : index
    %5 = vector.load %arg6[%c0_4, %c0_5] : memref<32x128xbf16, #tpu.memory_space<vmem>>, vector<32x128xbf16>
    %c0_6 = arith.constant 0 : index
    %c0_7 = arith.constant 0 : index
    %6 = vector.load %arg8[%c0_6, %c0_7] : memref<32x128xbf16, #tpu.memory_space<vmem>>, vector<32x128xbf16>
    %c0_8 = arith.constant 0 : index
    %c0_9 = arith.constant 0 : index
    %7 = vector.load %arg9[%c0_8, %c0_9] : memref<32x128xbf16, #tpu.memory_space<vmem>>, vector<32x128xbf16>
    %c0_10 = arith.constant 0 : index
    %c0_11 = arith.constant 0 : index
    %8 = vector.load %arg4[%c0_10, %c0_11] : memref<1x128xf32, #tpu.memory_space<vmem>>, vector<1x128xf32>
    %9 = vector.shape_cast %8 : vector<1x128xf32> to vector<1x128xf32>
    %10 = vector.broadcast %9 : vector<1x128xf32> to vector<8x128xf32>
    %c0_12 = arith.constant 0 : index
    %c0_13 = arith.constant 0 : index
    %11 = vector.load %arg7[%c0_12, %c0_13] : memref<1x128xf32, #tpu.memory_space<vmem>>, vector<1x128xf32>
    %12 = vector.shape_cast %11 : vector<1x128xf32> to vector<1x128xf32>
    %13 = vector.broadcast %12 : vector<1x128xf32> to vector<8x128xf32>
    %c0_14 = arith.constant 0 : index
    %c0_15 = arith.constant 0 : index
    %14 = vector.load %arg10[%c0_14, %c0_15] : memref<1x128xf32, #tpu.memory_space<vmem>>, vector<1x128xf32>
    %15 = vector.shape_cast %14 : vector<1x128xf32> to vector<1x128xf32>
    %16 = vector.broadcast %15 : vector<1x128xf32> to vector<8x128xf32>
    %17 = tpu.iota {dimensions = array<i32: 1>} : vector<8x128xi32>
    %c96_i32 = arith.constant 96 : i32
    %18 = vector.broadcast %c96_i32 : i32 to vector<8x128xi32>
    %19 = arith.cmpi slt, %17, %18 : vector<8x128xi32>
    %c0_16 = arith.constant 0 : index
    %c0_17 = arith.constant 0 : index
    %20 = vector.load %arg1[%c0_16, %c0_17] : memref<64x4xf32, #tpu.memory_space<vmem>>, vector<64x4xf32>
    %21 = arith.truncf %20 : vector<64x4xf32> to vector<64x4xbf16>
    %c0_18 = arith.constant 0 : index
    %c0_19 = arith.constant 0 : index
    %22 = vector.load %arg2[%c0_18, %c0_19] : memref<4x128xbf16, #tpu.memory_space<vmem>>, vector<4x128xbf16>
    %cst = arith.constant dense<0.000000e+00> : vector<64x128xf32>
    %23 = tpu.matmul %21, %22, %cst {dimension_numbers = #tpu.dot_dimension_numbers<[1], [0], [0], [1], [0, 0, 1, 1], [], []>} : vector<64x4xbf16>, vector<4x128xbf16>, vector<64x128xf32> -> vector<64x128xf32>
    %c0_20 = arith.constant 0 : index
    %c0_21 = arith.constant 0 : index
    %24 = vector.load %arg14[%c0_20, %c0_21] : memref<64x128xf32, #tpu.memory_space<vmem>>, vector<64x128xf32>
    tpu.vector_store %arg14[%c0_20, %c0_21], %23 {strides = array<i32>} : memref<64x128xf32, #tpu.memory_space<vmem>>, vector<64x128xf32>,
    %c0_22 = arith.constant 0 : index
    %c0_23 = arith.constant 0 : index
    %25 = vector.load %arg15[%c0_22, %c0_23] : memref<8x32xf32, #tpu.memory_space<vmem>>, vector<8x32xf32>
    %c0_24 = arith.constant 0 : index
    %c0_25 = arith.constant 0 : index
    %26 = vector.load %arg16[%c0_24, %c0_25] : memref<8x32xf32, #tpu.memory_space<vmem>>, vector<8x32xf32>
    %c0_26 = arith.constant 0 : index
    %c0_27 = arith.constant 0 : index
    %27 = vector.load %arg17[%c0_26, %c0_27] : memref<8x32xf32, #tpu.memory_space<vmem>>, vector<8x32xf32>
    %c0_28 = arith.constant 0 : index
    %c0_29 = arith.constant 0 : index
    %28 = vector.load %arg18[%c0_28, %c0_29] : memref<8x32xf32, #tpu.memory_space<vmem>>, vector<8x32xf32>
    %c0_30 = arith.constant 0 : index
    %c0_31 = arith.constant 0 : index
    %29 = vector.load %arg19[%c0_30, %c0_31] : memref<8x32xf32, #tpu.memory_space<vmem>>, vector<8x32xf32>
    %c0_32 = arith.constant 0 : index
    %c0_33 = arith.constant 0 : index
    %30 = vector.load %arg20[%c0_32, %c0_33] : memref<8x32xf32, #tpu.memory_space<vmem>>, vector<8x32xf32>
    %c0_i32_34 = arith.constant 0 : i32
    %c8_i32 = arith.constant 8 : i32
    %31 = arith.muli %c0_i32_34, %c8_i32 : i32
    %32 = tpu.assume_multiple %31, 8 : i32
    %33 = arith.index_cast %32 : i32 to index
    %c0_35 = arith.constant 0 : index
    %34 = vector.load %arg14[%33, %c0_35] : memref<64x128xf32, #tpu.memory_space<vmem>>, vector<8x128xf32>
    %35 = arith.truncf %25 : vector<8x32xf32> to vector<8x32xbf16>
    %cst_36 = arith.constant dense<0.000000e+00> : vector<8x128xf32>
    %36 = tpu.matmul %35, %3, %cst_36 {dimension_numbers = #tpu.dot_dimension_numbers<[1], [0], [0], [1], [0, 0, 1, 1], [], []>} : vector<8x32xbf16>, vector<32x128xbf16>, vector<8x128xf32> -> vector<8x128xf32>
    %37 = arith.addf %34, %36 : vector<8x128xf32>
    %38 = arith.addf %37, %10 : vector<8x128xf32>
    %39 = arith.negf %38 : vector<8x128xf32>
    %40 = math.exp %39 : vector<8x128xf32>
    %cst_37 = arith.constant 1.000000e+00 : f32
    %41 = vector.broadcast %cst_37 : f32 to vector<8x128xf32>
    %42 = arith.addf %41, %40 : vector<8x128xf32>
    %43 = arith.divf %41, %42 : vector<8x128xf32>
    %44 = math.tanh %38 : vector<8x128xf32>
    %45 = arith.select %19, %43, %44 : vector<8x128xi1>, vector<8x128xf32>
    %46 = vector.extract_strided_slice %45 {offsets = [0, 0], sizes = [8, 32], strides = [1, 1]} : vector<8x128xf32> to vector<8x32xf32>
    %47 = vector.extract_strided_slice %45 {offsets = [0, 32], sizes = [8, 32], strides = [1, 1]} : vector<8x128xf32> to vector<8x32xf32>
    %48 = vector.extract_strided_slice %45 {offsets = [0, 64], sizes = [8, 32], strides = [1, 1]} : vector<8x128xf32> to vector<8x32xf32>
    %49 = vector.extract_strided_slice %45 {offsets = [0, 96], sizes = [8, 32], strides = [1, 1]} : vector<8x128xf32> to vector<8x32xf32>
    %50 = arith.mulf %47, %26 : vector<8x32xf32>
    %51 = arith.mulf %46, %49 : vector<8x32xf32>
    %52 = arith.addf %50, %51 : vector<8x32xf32>
    %53 = math.tanh %52 : vector<8x32xf32>
    %54 = arith.mulf %48, %53 : vector<8x32xf32>
    %55 = arith.truncf %54 : vector<8x32xf32> to vector<8x32xbf16>
    %cst_38 = arith.constant dense<0.000000e+00> : vector<8x128xf32>
    %56 = tpu.matmul %55, %4, %cst_38 {dimension_numbers = #tpu.dot_dimension_numbers<[1], [0], [0], [1], [0, 0, 1, 1], [], []>} : vector<8x32xbf16>, vector<32x128xbf16>, vector<8x128xf32> -> vector<8x128xf32>
    %57 = arith.truncf %27 : vector<8x32xf32> to vector<8x32xbf16>
    %cst_39 = arith.constant dense<0.000000e+00> : vector<8x128xf32>
    %58 = tpu.matmul %57, %5, %cst_39 {dimension_numbers = #tpu.dot_dimension_numbers<[1], [0], [0], [1], [0, 0, 1, 1], [], []>} : vector<8x32xbf16>, vector<32x128xbf16>, vector<8x128xf32> -> vector<8x128xf32>
    %59 = arith.addf %56, %58 : vector<8x128xf32>
    %60 = arith.addf %59, %13 : vector<8x128xf32>
    %61 = arith.negf %60 : vector<8x128xf32>
    %62 = math.exp %61 : vector<8x128xf32>
    %cst_40 = arith.constant 1.000000e+00 : f32
    %63 = vector.broadcast %cst_40 : f32 to vector<8x128xf32>
    %64 = arith.addf %63, %62 : vector<8x128xf32>
    %65 = arith.divf %63, %64 : vector<8x128xf32>
    %66 = math.tanh %60 : vector<8x128xf32>
    %67 = arith.select %19, %65, %66 : vector<8x128xi1>, vector<8x128xf32>
    %68 = vector.extract_strided_slice %67 {offsets = [0, 0], sizes = [8, 32], strides = [1, 1]} : vector<8x128xf32> to vector<8x32xf32>
    %69 = vector.extract_strided_slice %67 {offsets = [0, 32], sizes = [8, 32], strides = [1, 1]} : vector<8x128xf32> to vector<8x32xf32>
    %70 = vector.extract_strided_slice %67 {offsets = [0, 64], sizes = [8, 32], strides = [1, 1]} : vector<8x128xf32> to vector<8x32xf32>
    %71 = vector.extract_strided_slice %67 {offsets = [0, 96], sizes = [8, 32], strides = [1, 1]} : vector<8x128xf32> to vector<8x32xf32>
    %72 = arith.mulf %69, %28 : vector<8x32xf32>
    %73 = arith.mulf %68, %71 : vector<8x32xf32>
    %74 = arith.addf %72, %73 : vector<8x32xf32>
    %75 = math.tanh %74 : vector<8x32xf32>
    %76 = arith.mulf %70, %75 : vector<8x32xf32>
    %77 = arith.truncf %76 : vector<8x32xf32> to vector<8x32xbf16>
    %cst_41 = arith.constant dense<0.000000e+00> : vector<8x128xf32>
    %78 = tpu.matmul %77, %6, %cst_41 {dimension_numbers = #tpu.dot_dimension_numbers<[1], [0], [0], [1], [0, 0, 1, 1], [], []>} : vector<8x32xbf16>, vector<32x128xbf16>, vector<8x128xf32> -> vector<8x128xf32>
    %79 = arith.truncf %29 : vector<8x32xf32> to vector<8x32xbf16>
    %cst_42 = arith.constant dense<0.000000e+00> : vector<8x128xf32>
    %80 = tpu.matmul %79, %7, %cst_42 {dimension_numbers = #tpu.dot_dimension_numbers<[1], [0], [0], [1], [0, 0, 1, 1], [], []>} : vector<8x32xbf16>, vector<32x128xbf16>, vector<8x128xf32> -> vector<8x128xf32>
    %81 = arith.addf %78, %80 : vector<8x128xf32>
    %82 = arith.addf %81, %16 : vector<8x128xf32>
    %83 = arith.negf %82 : vector<8x128xf32>
    %84 = math.exp %83 : vector<8x128xf32>
    %cst_43 = arith.constant 1.000000e+00 : f32
    %85 = vector.broadcast %cst_43 : f32 to vector<8x128xf32>
    %86 = arith.addf %85, %84 : vector<8x128xf32>
    %87 = arith.divf %85, %86 : vector<8x128xf32>
    %88 = math.tanh %82 : vector<8x128xf32>
    %89 = arith.select %19, %87, %88 : vector<8x128xi1>, vector<8x128xf32>
    %90 = vector.extract_strided_slice %89 {offsets = [0, 0], sizes = [8, 32], strides = [1, 1]} : vector<8x128xf32> to vector<8x32xf32>
    %91 = vector.extract_strided_slice %89 {offsets = [0, 32], sizes = [8, 32], strides = [1, 1]} : vector<8x128xf32> to vector<8x32xf32>
    %92 = vector.extract_strided_slice %89 {offsets = [0, 64], sizes = [8, 32], strides = [1, 1]} : vector<8x128xf32> to vector<8x32xf32>
    %93 = vector.extract_strided_slice %89 {offsets = [0, 96], sizes = [8, 32], strides = [1, 1]} : vector<8x128xf32> to vector<8x32xf32>
    %94 = arith.mulf %91, %30 : vector<8x32xf32>
    %95 = arith.mulf %90, %93 : vector<8x32xf32>
    %96 = arith.addf %94, %95 : vector<8x32xf32>
    %97 = math.tanh %96 : vector<8x32xf32>
    %98 = arith.mulf %92, %97 : vector<8x32xf32>
    %c1_i32 = arith.constant 1 : i32
    %c8_i32_44 = arith.constant 8 : i32
    %99 = arith.muli %c1_i32, %c8_i32_44 : i32
    %100 = tpu.assume_multiple %99, 8 : i32
    %101 = arith.index_cast %100 : i32 to index
    %c0_45 = arith.constant 0 : index
    %102 = vector.load %arg14[%101, %c0_45] : memref<64x128xf32, #tpu.memory_space<vmem>>, vector<8x128xf32>
    %103 = arith.truncf %54 : vector<8x32xf32> to vector<8x32xbf16>
    %cst_46 = arith.constant dense<0.000000e+00> : vector<8x128xf32>
    %104 = tpu.matmul %103, %3, %cst_46 {dimension_numbers = #tpu.dot_dimension_numbers<[1], [0], [0], [1], [0, 0, 1, 1], [], []>} : vector<8x32xbf16>, vector<32x128xbf16>, vector<8x128xf32> -> vector<8x128xf32>
    %105 = arith.addf %102, %104 : vector<8x128xf32>
    %106 = arith.addf %105, %10 : vector<8x128xf32>
    %107 = arith.negf %106 : vector<8x128xf32>
    %108 = math.exp %107 : vector<8x128xf32>
    %cst_47 = arith.constant 1.000000e+00 : f32
    %109 = vector.broadcast %cst_47 : f32 to vector<8x128xf32>
    %110 = arith.addf %109, %108 : vector<8x128xf32>
    %111 = arith.divf %109, %110 : vector<8x128xf32>
    %112 = math.tanh %106 : vector<8x128xf32>
    %113 = arith.select %19, %111, %112 : vector<8x128xi1>, vector<8x128xf32>
    %114 = vector.extract_strided_slice %113 {offsets = [0, 0], sizes = [8, 32], strides = [1, 1]} : vector<8x128xf32> to vector<8x32xf32>
    %115 = vector.extract_strided_slice %113 {offsets = [0, 32], sizes = [8, 32], strides = [1, 1]} : vector<8x128xf32> to vector<8x32xf32>
    %116 = vector.extract_strided_slice %113 {offsets = [0, 64], sizes = [8, 32], strides = [1, 1]} : vector<8x128xf32> to vector<8x32xf32>
    %117 = vector.extract_strided_slice %113 {offsets = [0, 96], sizes = [8, 32], strides = [1, 1]} : vector<8x128xf32> to vector<8x32xf32>
    %118 = arith.mulf %115, %52 : vector<8x32xf32>
    %119 = arith.mulf %114, %117 : vector<8x32xf32>
    %120 = arith.addf %118, %119 : vector<8x32xf32>
    %121 = math.tanh %120 : vector<8x32xf32>
    %122 = arith.mulf %116, %121 : vector<8x32xf32>
    %123 = arith.truncf %122 : vector<8x32xf32> to vector<8x32xbf16>
    %cst_48 = arith.constant dense<0.000000e+00> : vector<8x128xf32>
    %124 = tpu.matmul %123, %4, %cst_48 {dimension_numbers = #tpu.dot_dimension_numbers<[1], [0], [0], [1], [0, 0, 1, 1], [], []>} : vector<8x32xbf16>, vector<32x128xbf16>, vector<8x128xf32> -> vector<8x128xf32>
    %125 = arith.truncf %76 : vector<8x32xf32> to vector<8x32xbf16>
    %cst_49 = arith.constant dense<0.000000e+00> : vector<8x128xf32>
    %126 = tpu.matmul %125, %5, %cst_49 {dimension_numbers = #tpu.dot_dimension_numbers<[1], [0], [0], [1], [0, 0, 1, 1], [], []>} : vector<8x32xbf16>, vector<32x128xbf16>, vector<8x128xf32> -> vector<8x128xf32>
    %127 = arith.addf %124, %126 : vector<8x128xf32>
    %128 = arith.addf %127, %13 : vector<8x128xf32>
    %129 = arith.negf %128 : vector<8x128xf32>
    %130 = math.exp %129 : vector<8x128xf32>
    %cst_50 = arith.constant 1.000000e+00 : f32
    %131 = vector.broadcast %cst_50 : f32 to vector<8x128xf32>
    %132 = arith.addf %131, %130 : vector<8x128xf32>
    %133 = arith.divf %131, %132 : vector<8x128xf32>
    %134 = math.tanh %128 : vector<8x128xf32>
    %135 = arith.select %19, %133, %134 : vector<8x128xi1>, vector<8x128xf32>
    %136 = vector.extract_strided_slice %135 {offsets = [0, 0], sizes = [8, 32], strides = [1, 1]} : vector<8x128xf32> to vector<8x32xf32>
    %137 = vector.extract_strided_slice %135 {offsets = [0, 32], sizes = [8, 32], strides = [1, 1]} : vector<8x128xf32> to vector<8x32xf32>
    %138 = vector.extract_strided_slice %135 {offsets = [0, 64], sizes = [8, 32], strides = [1, 1]} : vector<8x128xf32> to vector<8x32xf32>
    %139 = vector.extract_strided_slice %135 {offsets = [0, 96], sizes = [8, 32], strides = [1, 1]} : vector<8x128xf32> to vector<8x32xf32>
    %140 = arith.mulf %137, %74 : vector<8x32xf32>
    %141 = arith.mulf %136, %139 : vector<8x32xf32>
    %142 = arith.addf %140, %141 : vector<8x32xf32>
    %143 = math.tanh %142 : vector<8x32xf32>
    %144 = arith.mulf %138, %143 : vector<8x32xf32>
    %145 = arith.truncf %144 : vector<8x32xf32> to vector<8x32xbf16>
    %cst_51 = arith.constant dense<0.000000e+00> : vector<8x128xf32>
    %146 = tpu.matmul %145, %6, %cst_51 {dimension_numbers = #tpu.dot_dimension_numbers<[1], [0], [0], [1], [0, 0, 1, 1], [], []>} : vector<8x32xbf16>, vector<32x128xbf16>, vector<8x128xf32> -> vector<8x128xf32>
    %147 = arith.truncf %98 : vector<8x32xf32> to vector<8x32xbf16>
    %cst_52 = arith.constant dense<0.000000e+00> : vector<8x128xf32>
    %148 = tpu.matmul %147, %7, %cst_52 {dimension_numbers = #tpu.dot_dimension_numbers<[1], [0], [0], [1], [0, 0, 1, 1], [], []>} : vector<8x32xbf16>, vector<32x128xbf16>, vector<8x128xf32> -> vector<8x128xf32>
    %149 = arith.addf %146, %148 : vector<8x128xf32>
    %150 = arith.addf %149, %16 : vector<8x128xf32>
    %151 = arith.negf %150 : vector<8x128xf32>
    %152 = math.exp %151 : vector<8x128xf32>
    %cst_53 = arith.constant 1.000000e+00 : f32
    %153 = vector.broadcast %cst_53 : f32 to vector<8x128xf32>
    %154 = arith.addf %153, %152 : vector<8x128xf32>
    %155 = arith.divf %153, %154 : vector<8x128xf32>
    %156 = math.tanh %150 : vector<8x128xf32>
    %157 = arith.select %19, %155, %156 : vector<8x128xi1>, vector<8x128xf32>
    %158 = vector.extract_strided_slice %157 {offsets = [0, 0], sizes = [8, 32], strides = [1, 1]} : vector<8x128xf32> to vector<8x32xf32>
    %159 = vector.extract_strided_slice %157 {offsets = [0, 32], sizes = [8, 32], strides = [1, 1]} : vector<8x128xf32> to vector<8x32xf32>
    %160 = vector.extract_strided_slice %157 {offsets = [0, 64], sizes = [8, 32], strides = [1, 1]} : vector<8x128xf32> to vector<8x32xf32>
    %161 = vector.extract_strided_slice %157 {offsets = [0, 96], sizes = [8, 32], strides = [1, 1]} : vector<8x128xf32> to vector<8x32xf32>
    %162 = arith.mulf %159, %96 : vector<8x32xf32>
    %163 = arith.mulf %158, %161 : vector<8x32xf32>
    %164 = arith.addf %162, %163 : vector<8x32xf32>
    %165 = math.tanh %164 : vector<8x32xf32>
    %166 = arith.mulf %160, %165 : vector<8x32xf32>
    %c2_i32 = arith.constant 2 : i32
    %c8_i32_54 = arith.constant 8 : i32
    %167 = arith.muli %c2_i32, %c8_i32_54 : i32
    %168 = tpu.assume_multiple %167, 8 : i32
    %169 = arith.index_cast %168 : i32 to index
    %c0_55 = arith.constant 0 : index
    %170 = vector.load %arg14[%169, %c0_55] : memref<64x128xf32, #tpu.memory_space<vmem>>, vector<8x128xf32>
    %171 = arith.truncf %122 : vector<8x32xf32> to vector<8x32xbf16>
    %cst_56 = arith.constant dense<0.000000e+00> : vector<8x128xf32>
    %172 = tpu.matmul %171, %3, %cst_56 {dimension_numbers = #tpu.dot_dimension_numbers<[1], [0], [0], [1], [0, 0, 1, 1], [], []>} : vector<8x32xbf16>, vector<32x128xbf16>, vector<8x128xf32> -> vector<8x128xf32>
    %173 = arith.addf %170, %172 : vector<8x128xf32>
    %174 = arith.addf %173, %10 : vector<8x128xf32>
    %175 = arith.negf %174 : vector<8x128xf32>
    %176 = math.exp %175 : vector<8x128xf32>
    %cst_57 = arith.constant 1.000000e+00 : f32
    %177 = vector.broadcast %cst_57 : f32 to vector<8x128xf32>
    %178 = arith.addf %177, %176 : vector<8x128xf32>
    %179 = arith.divf %177, %178 : vector<8x128xf32>
    %180 = math.tanh %174 : vector<8x128xf32>
    %181 = arith.select %19, %179, %180 : vector<8x128xi1>, vector<8x128xf32>
    %182 = vector.extract_strided_slice %181 {offsets = [0, 0], sizes = [8, 32], strides = [1, 1]} : vector<8x128xf32> to vector<8x32xf32>
    %183 = vector.extract_strided_slice %181 {offsets = [0, 32], sizes = [8, 32], strides = [1, 1]} : vector<8x128xf32> to vector<8x32xf32>
    %184 = vector.extract_strided_slice %181 {offsets = [0, 64], sizes = [8, 32], strides = [1, 1]} : vector<8x128xf32> to vector<8x32xf32>
    %185 = vector.extract_strided_slice %181 {offsets = [0, 96], sizes = [8, 32], strides = [1, 1]} : vector<8x128xf32> to vector<8x32xf32>
    %186 = arith.mulf %183, %120 : vector<8x32xf32>
    %187 = arith.mulf %182, %185 : vector<8x32xf32>
    %188 = arith.addf %186, %187 : vector<8x32xf32>
    %189 = math.tanh %188 : vector<8x32xf32>
    %190 = arith.mulf %184, %189 : vector<8x32xf32>
    %191 = arith.truncf %190 : vector<8x32xf32> to vector<8x32xbf16>
    %cst_58 = arith.constant dense<0.000000e+00> : vector<8x128xf32>
    %192 = tpu.matmul %191, %4, %cst_58 {dimension_numbers = #tpu.dot_dimension_numbers<[1], [0], [0], [1], [0, 0, 1, 1], [], []>} : vector<8x32xbf16>, vector<32x128xbf16>, vector<8x128xf32> -> vector<8x128xf32>
    %193 = arith.truncf %144 : vector<8x32xf32> to vector<8x32xbf16>
    %cst_59 = arith.constant dense<0.000000e+00> : vector<8x128xf32>
    %194 = tpu.matmul %193, %5, %cst_59 {dimension_numbers = #tpu.dot_dimension_numbers<[1], [0], [0], [1], [0, 0, 1, 1], [], []>} : vector<8x32xbf16>, vector<32x128xbf16>, vector<8x128xf32> -> vector<8x128xf32>
    %195 = arith.addf %192, %194 : vector<8x128xf32>
    %196 = arith.addf %195, %13 : vector<8x128xf32>
    %197 = arith.negf %196 : vector<8x128xf32>
    %198 = math.exp %197 : vector<8x128xf32>
    %cst_60 = arith.constant 1.000000e+00 : f32
    %199 = vector.broadcast %cst_60 : f32 to vector<8x128xf32>
    %200 = arith.addf %199, %198 : vector<8x128xf32>
    %201 = arith.divf %199, %200 : vector<8x128xf32>
    %202 = math.tanh %196 : vector<8x128xf32>
    %203 = arith.select %19, %201, %202 : vector<8x128xi1>, vector<8x128xf32>
    %204 = vector.extract_strided_slice %203 {offsets = [0, 0], sizes = [8, 32], strides = [1, 1]} : vector<8x128xf32> to vector<8x32xf32>
    %205 = vector.extract_strided_slice %203 {offsets = [0, 32], sizes = [8, 32], strides = [1, 1]} : vector<8x128xf32> to vector<8x32xf32>
    %206 = vector.extract_strided_slice %203 {offsets = [0, 64], sizes = [8, 32], strides = [1, 1]} : vector<8x128xf32> to vector<8x32xf32>
    %207 = vector.extract_strided_slice %203 {offsets = [0, 96], sizes = [8, 32], strides = [1, 1]} : vector<8x128xf32> to vector<8x32xf32>
    %208 = arith.mulf %205, %142 : vector<8x32xf32>
    %209 = arith.mulf %204, %207 : vector<8x32xf32>
    %210 = arith.addf %208, %209 : vector<8x32xf32>
    %211 = math.tanh %210 : vector<8x32xf32>
    %212 = arith.mulf %206, %211 : vector<8x32xf32>
    %213 = arith.truncf %212 : vector<8x32xf32> to vector<8x32xbf16>
    %cst_61 = arith.constant dense<0.000000e+00> : vector<8x128xf32>
    %214 = tpu.matmul %213, %6, %cst_61 {dimension_numbers = #tpu.dot_dimension_numbers<[1], [0], [0], [1], [0, 0, 1, 1], [], []>} : vector<8x32xbf16>, vector<32x128xbf16>, vector<8x128xf32> -> vector<8x128xf32>
    %215 = arith.truncf %166 : vector<8x32xf32> to vector<8x32xbf16>
    %cst_62 = arith.constant dense<0.000000e+00> : vector<8x128xf32>
    %216 = tpu.matmul %215, %7, %cst_62 {dimension_numbers = #tpu.dot_dimension_numbers<[1], [0], [0], [1], [0, 0, 1, 1], [], []>} : vector<8x32xbf16>, vector<32x128xbf16>, vector<8x128xf32> -> vector<8x128xf32>
    %217 = arith.addf %214, %216 : vector<8x128xf32>
    %218 = arith.addf %217, %16 : vector<8x128xf32>
    %219 = arith.negf %218 : vector<8x128xf32>
    %220 = math.exp %219 : vector<8x128xf32>
    %cst_63 = arith.constant 1.000000e+00 : f32
    %221 = vector.broadcast %cst_63 : f32 to vector<8x128xf32>
    %222 = arith.addf %221, %220 : vector<8x128xf32>
    %223 = arith.divf %221, %222 : vector<8x128xf32>
    %224 = math.tanh %218 : vector<8x128xf32>
    %225 = arith.select %19, %223, %224 : vector<8x128xi1>, vector<8x128xf32>
    %226 = vector.extract_strided_slice %225 {offsets = [0, 0], sizes = [8, 32], strides = [1, 1]} : vector<8x128xf32> to vector<8x32xf32>
    %227 = vector.extract_strided_slice %225 {offsets = [0, 32], sizes = [8, 32], strides = [1, 1]} : vector<8x128xf32> to vector<8x32xf32>
    %228 = vector.extract_strided_slice %225 {offsets = [0, 64], sizes = [8, 32], strides = [1, 1]} : vector<8x128xf32> to vector<8x32xf32>
    %229 = vector.extract_strided_slice %225 {offsets = [0, 96], sizes = [8, 32], strides = [1, 1]} : vector<8x128xf32> to vector<8x32xf32>
    %230 = arith.mulf %227, %164 : vector<8x32xf32>
    %231 = arith.mulf %226, %229 : vector<8x32xf32>
    %232 = arith.addf %230, %231 : vector<8x32xf32>
    %233 = math.tanh %232 : vector<8x32xf32>
    %234 = arith.mulf %228, %233 : vector<8x32xf32>
    %c3_i32 = arith.constant 3 : i32
    %c8_i32_64 = arith.constant 8 : i32
    %235 = arith.muli %c3_i32, %c8_i32_64 : i32
    %236 = tpu.assume_multiple %235, 8 : i32
    %237 = arith.index_cast %236 : i32 to index
    %c0_65 = arith.constant 0 : index
    %238 = vector.load %arg14[%237, %c0_65] : memref<64x128xf32, #tpu.memory_space<vmem>>, vector<8x128xf32>
    %239 = arith.truncf %190 : vector<8x32xf32> to vector<8x32xbf16>
    %cst_66 = arith.constant dense<0.000000e+00> : vector<8x128xf32>
    %240 = tpu.matmul %239, %3, %cst_66 {dimension_numbers = #tpu.dot_dimension_numbers<[1], [0], [0], [1], [0, 0, 1, 1], [], []>} : vector<8x32xbf16>, vector<32x128xbf16>, vector<8x128xf32> -> vector<8x128xf32>
    %241 = arith.addf %238, %240 : vector<8x128xf32>
    %242 = arith.addf %241, %10 : vector<8x128xf32>
    %243 = arith.negf %242 : vector<8x128xf32>
    %244 = math.exp %243 : vector<8x128xf32>
    %cst_67 = arith.constant 1.000000e+00 : f32
    %245 = vector.broadcast %cst_67 : f32 to vector<8x128xf32>
    %246 = arith.addf %245, %244 : vector<8x128xf32>
    %247 = arith.divf %245, %246 : vector<8x128xf32>
    %248 = math.tanh %242 : vector<8x128xf32>
    %249 = arith.select %19, %247, %248 : vector<8x128xi1>, vector<8x128xf32>
    %250 = vector.extract_strided_slice %249 {offsets = [0, 0], sizes = [8, 32], strides = [1, 1]} : vector<8x128xf32> to vector<8x32xf32>
    %251 = vector.extract_strided_slice %249 {offsets = [0, 32], sizes = [8, 32], strides = [1, 1]} : vector<8x128xf32> to vector<8x32xf32>
    %252 = vector.extract_strided_slice %249 {offsets = [0, 64], sizes = [8, 32], strides = [1, 1]} : vector<8x128xf32> to vector<8x32xf32>
    %253 = vector.extract_strided_slice %249 {offsets = [0, 96], sizes = [8, 32], strides = [1, 1]} : vector<8x128xf32> to vector<8x32xf32>
    %254 = arith.mulf %251, %188 : vector<8x32xf32>
    %255 = arith.mulf %250, %253 : vector<8x32xf32>
    %256 = arith.addf %254, %255 : vector<8x32xf32>
    %257 = math.tanh %256 : vector<8x32xf32>
    %258 = arith.mulf %252, %257 : vector<8x32xf32>
    %259 = arith.truncf %258 : vector<8x32xf32> to vector<8x32xbf16>
    %cst_68 = arith.constant dense<0.000000e+00> : vector<8x128xf32>
    %260 = tpu.matmul %259, %4, %cst_68 {dimension_numbers = #tpu.dot_dimension_numbers<[1], [0], [0], [1], [0, 0, 1, 1], [], []>} : vector<8x32xbf16>, vector<32x128xbf16>, vector<8x128xf32> -> vector<8x128xf32>
    %261 = arith.truncf %212 : vector<8x32xf32> to vector<8x32xbf16>
    %cst_69 = arith.constant dense<0.000000e+00> : vector<8x128xf32>
    %262 = tpu.matmul %261, %5, %cst_69 {dimension_numbers = #tpu.dot_dimension_numbers<[1], [0], [0], [1], [0, 0, 1, 1], [], []>} : vector<8x32xbf16>, vector<32x128xbf16>, vector<8x128xf32> -> vector<8x128xf32>
    %263 = arith.addf %260, %262 : vector<8x128xf32>
    %264 = arith.addf %263, %13 : vector<8x128xf32>
    %265 = arith.negf %264 : vector<8x128xf32>
    %266 = math.exp %265 : vector<8x128xf32>
    %cst_70 = arith.constant 1.000000e+00 : f32
    %267 = vector.broadcast %cst_70 : f32 to vector<8x128xf32>
    %268 = arith.addf %267, %266 : vector<8x128xf32>
    %269 = arith.divf %267, %268 : vector<8x128xf32>
    %270 = math.tanh %264 : vector<8x128xf32>
    %271 = arith.select %19, %269, %270 : vector<8x128xi1>, vector<8x128xf32>
    %272 = vector.extract_strided_slice %271 {offsets = [0, 0], sizes = [8, 32], strides = [1, 1]} : vector<8x128xf32> to vector<8x32xf32>
    %273 = vector.extract_strided_slice %271 {offsets = [0, 32], sizes = [8, 32], strides = [1, 1]} : vector<8x128xf32> to vector<8x32xf32>
    %274 = vector.extract_strided_slice %271 {offsets = [0, 64], sizes = [8, 32], strides = [1, 1]} : vector<8x128xf32> to vector<8x32xf32>
    %275 = vector.extract_strided_slice %271 {offsets = [0, 96], sizes = [8, 32], strides = [1, 1]} : vector<8x128xf32> to vector<8x32xf32>
    %276 = arith.mulf %273, %210 : vector<8x32xf32>
    %277 = arith.mulf %272, %275 : vector<8x32xf32>
    %278 = arith.addf %276, %277 : vector<8x32xf32>
    %279 = math.tanh %278 : vector<8x32xf32>
    %280 = arith.mulf %274, %279 : vector<8x32xf32>
    %281 = arith.truncf %280 : vector<8x32xf32> to vector<8x32xbf16>
    %cst_71 = arith.constant dense<0.000000e+00> : vector<8x128xf32>
    %282 = tpu.matmul %281, %6, %cst_71 {dimension_numbers = #tpu.dot_dimension_numbers<[1], [0], [0], [1], [0, 0, 1, 1], [], []>} : vector<8x32xbf16>, vector<32x128xbf16>, vector<8x128xf32> -> vector<8x128xf32>
    %283 = arith.truncf %234 : vector<8x32xf32> to vector<8x32xbf16>
    %cst_72 = arith.constant dense<0.000000e+00> : vector<8x128xf32>
    %284 = tpu.matmul %283, %7, %cst_72 {dimension_numbers = #tpu.dot_dimension_numbers<[1], [0], [0], [1], [0, 0, 1, 1], [], []>} : vector<8x32xbf16>, vector<32x128xbf16>, vector<8x128xf32> -> vector<8x128xf32>
    %285 = arith.addf %282, %284 : vector<8x128xf32>
    %286 = arith.addf %285, %16 : vector<8x128xf32>
    %287 = arith.negf %286 : vector<8x128xf32>
    %288 = math.exp %287 : vector<8x128xf32>
    %cst_73 = arith.constant 1.000000e+00 : f32
    %289 = vector.broadcast %cst_73 : f32 to vector<8x128xf32>
    %290 = arith.addf %289, %288 : vector<8x128xf32>
    %291 = arith.divf %289, %290 : vector<8x128xf32>
    %292 = math.tanh %286 : vector<8x128xf32>
    %293 = arith.select %19, %291, %292 : vector<8x128xi1>, vector<8x128xf32>
    %294 = vector.extract_strided_slice %293 {offsets = [0, 0], sizes = [8, 32], strides = [1, 1]} : vector<8x128xf32> to vector<8x32xf32>
    %295 = vector.extract_strided_slice %293 {offsets = [0, 32], sizes = [8, 32], strides = [1, 1]} : vector<8x128xf32> to vector<8x32xf32>
    %296 = vector.extract_strided_slice %293 {offsets = [0, 64], sizes = [8, 32], strides = [1, 1]} : vector<8x128xf32> to vector<8x32xf32>
    %297 = vector.extract_strided_slice %293 {offsets = [0, 96], sizes = [8, 32], strides = [1, 1]} : vector<8x128xf32> to vector<8x32xf32>
    %298 = arith.mulf %295, %232 : vector<8x32xf32>
    %299 = arith.mulf %294, %297 : vector<8x32xf32>
    %300 = arith.addf %298, %299 : vector<8x32xf32>
    %301 = math.tanh %300 : vector<8x32xf32>
    %302 = arith.mulf %296, %301 : vector<8x32xf32>
    %c4_i32 = arith.constant 4 : i32
    %c8_i32_74 = arith.constant 8 : i32
    %303 = arith.muli %c4_i32, %c8_i32_74 : i32
    %304 = tpu.assume_multiple %303, 8 : i32
    %305 = arith.index_cast %304 : i32 to index
    %c0_75 = arith.constant 0 : index
    %306 = vector.load %arg14[%305, %c0_75] : memref<64x128xf32, #tpu.memory_space<vmem>>, vector<8x128xf32>
    %307 = arith.truncf %258 : vector<8x32xf32> to vector<8x32xbf16>
    %cst_76 = arith.constant dense<0.000000e+00> : vector<8x128xf32>
    %308 = tpu.matmul %307, %3, %cst_76 {dimension_numbers = #tpu.dot_dimension_numbers<[1], [0], [0], [1], [0, 0, 1, 1], [], []>} : vector<8x32xbf16>, vector<32x128xbf16>, vector<8x128xf32> -> vector<8x128xf32>
    %309 = arith.addf %306, %308 : vector<8x128xf32>
    %310 = arith.addf %309, %10 : vector<8x128xf32>
    %311 = arith.negf %310 : vector<8x128xf32>
    %312 = math.exp %311 : vector<8x128xf32>
    %cst_77 = arith.constant 1.000000e+00 : f32
    %313 = vector.broadcast %cst_77 : f32 to vector<8x128xf32>
    %314 = arith.addf %313, %312 : vector<8x128xf32>
    %315 = arith.divf %313, %314 : vector<8x128xf32>
    %316 = math.tanh %310 : vector<8x128xf32>
    %317 = arith.select %19, %315, %316 : vector<8x128xi1>, vector<8x128xf32>
    %318 = vector.extract_strided_slice %317 {offsets = [0, 0], sizes = [8, 32], strides = [1, 1]} : vector<8x128xf32> to vector<8x32xf32>
    %319 = vector.extract_strided_slice %317 {offsets = [0, 32], sizes = [8, 32], strides = [1, 1]} : vector<8x128xf32> to vector<8x32xf32>
    %320 = vector.extract_strided_slice %317 {offsets = [0, 64], sizes = [8, 32], strides = [1, 1]} : vector<8x128xf32> to vector<8x32xf32>
    %321 = vector.extract_strided_slice %317 {offsets = [0, 96], sizes = [8, 32], strides = [1, 1]} : vector<8x128xf32> to vector<8x32xf32>
    %322 = arith.mulf %319, %256 : vector<8x32xf32>
    %323 = arith.mulf %318, %321 : vector<8x32xf32>
    %324 = arith.addf %322, %323 : vector<8x32xf32>
    %325 = math.tanh %324 : vector<8x32xf32>
    %326 = arith.mulf %320, %325 : vector<8x32xf32>
    %327 = arith.truncf %326 : vector<8x32xf32> to vector<8x32xbf16>
    %cst_78 = arith.constant dense<0.000000e+00> : vector<8x128xf32>
    %328 = tpu.matmul %327, %4, %cst_78 {dimension_numbers = #tpu.dot_dimension_numbers<[1], [0], [0], [1], [0, 0, 1, 1], [], []>} : vector<8x32xbf16>, vector<32x128xbf16>, vector<8x128xf32> -> vector<8x128xf32>
    %329 = arith.truncf %280 : vector<8x32xf32> to vector<8x32xbf16>
    %cst_79 = arith.constant dense<0.000000e+00> : vector<8x128xf32>
    %330 = tpu.matmul %329, %5, %cst_79 {dimension_numbers = #tpu.dot_dimension_numbers<[1], [0], [0], [1], [0, 0, 1, 1], [], []>} : vector<8x32xbf16>, vector<32x128xbf16>, vector<8x128xf32> -> vector<8x128xf32>
    %331 = arith.addf %328, %330 : vector<8x128xf32>
    %332 = arith.addf %331, %13 : vector<8x128xf32>
    %333 = arith.negf %332 : vector<8x128xf32>
    %334 = math.exp %333 : vector<8x128xf32>
    %cst_80 = arith.constant 1.000000e+00 : f32
    %335 = vector.broadcast %cst_80 : f32 to vector<8x128xf32>
    %336 = arith.addf %335, %334 : vector<8x128xf32>
    %337 = arith.divf %335, %336 : vector<8x128xf32>
    %338 = math.tanh %332 : vector<8x128xf32>
    %339 = arith.select %19, %337, %338 : vector<8x128xi1>, vector<8x128xf32>
    %340 = vector.extract_strided_slice %339 {offsets = [0, 0], sizes = [8, 32], strides = [1, 1]} : vector<8x128xf32> to vector<8x32xf32>
    %341 = vector.extract_strided_slice %339 {offsets = [0, 32], sizes = [8, 32], strides = [1, 1]} : vector<8x128xf32> to vector<8x32xf32>
    %342 = vector.extract_strided_slice %339 {offsets = [0, 64], sizes = [8, 32], strides = [1, 1]} : vector<8x128xf32> to vector<8x32xf32>
    %343 = vector.extract_strided_slice %339 {offsets = [0, 96], sizes = [8, 32], strides = [1, 1]} : vector<8x128xf32> to vector<8x32xf32>
    %344 = arith.mulf %341, %278 : vector<8x32xf32>
    %345 = arith.mulf %340, %343 : vector<8x32xf32>
    %346 = arith.addf %344, %345 : vector<8x32xf32>
    %347 = math.tanh %346 : vector<8x32xf32>
    %348 = arith.mulf %342, %347 : vector<8x32xf32>
    %349 = arith.truncf %348 : vector<8x32xf32> to vector<8x32xbf16>
    %cst_81 = arith.constant dense<0.000000e+00> : vector<8x128xf32>
    %350 = tpu.matmul %349, %6, %cst_81 {dimension_numbers = #tpu.dot_dimension_numbers<[1], [0], [0], [1], [0, 0, 1, 1], [], []>} : vector<8x32xbf16>, vector<32x128xbf16>, vector<8x128xf32> -> vector<8x128xf32>
    %351 = arith.truncf %302 : vector<8x32xf32> to vector<8x32xbf16>
    %cst_82 = arith.constant dense<0.000000e+00> : vector<8x128xf32>
    %352 = tpu.matmul %351, %7, %cst_82 {dimension_numbers = #tpu.dot_dimension_numbers<[1], [0], [0], [1], [0, 0, 1, 1], [], []>} : vector<8x32xbf16>, vector<32x128xbf16>, vector<8x128xf32> -> vector<8x128xf32>
    %353 = arith.addf %350, %352 : vector<8x128xf32>
    %354 = arith.addf %353, %16 : vector<8x128xf32>
    %355 = arith.negf %354 : vector<8x128xf32>
    %356 = math.exp %355 : vector<8x128xf32>
    %cst_83 = arith.constant 1.000000e+00 : f32
    %357 = vector.broadcast %cst_83 : f32 to vector<8x128xf32>
    %358 = arith.addf %357, %356 : vector<8x128xf32>
    %359 = arith.divf %357, %358 : vector<8x128xf32>
    %360 = math.tanh %354 : vector<8x128xf32>
    %361 = arith.select %19, %359, %360 : vector<8x128xi1>, vector<8x128xf32>
    %362 = vector.extract_strided_slice %361 {offsets = [0, 0], sizes = [8, 32], strides = [1, 1]} : vector<8x128xf32> to vector<8x32xf32>
    %363 = vector.extract_strided_slice %361 {offsets = [0, 32], sizes = [8, 32], strides = [1, 1]} : vector<8x128xf32> to vector<8x32xf32>
    %364 = vector.extract_strided_slice %361 {offsets = [0, 64], sizes = [8, 32], strides = [1, 1]} : vector<8x128xf32> to vector<8x32xf32>
    %365 = vector.extract_strided_slice %361 {offsets = [0, 96], sizes = [8, 32], strides = [1, 1]} : vector<8x128xf32> to vector<8x32xf32>
    %366 = arith.mulf %363, %300 : vector<8x32xf32>
    %367 = arith.mulf %362, %365 : vector<8x32xf32>
    %368 = arith.addf %366, %367 : vector<8x32xf32>
    %369 = math.tanh %368 : vector<8x32xf32>
    %370 = arith.mulf %364, %369 : vector<8x32xf32>
    %c5_i32 = arith.constant 5 : i32
    %c8_i32_84 = arith.constant 8 : i32
    %371 = arith.muli %c5_i32, %c8_i32_84 : i32
    %372 = tpu.assume_multiple %371, 8 : i32
    %373 = arith.index_cast %372 : i32 to index
    %c0_85 = arith.constant 0 : index
    %374 = vector.load %arg14[%373, %c0_85] : memref<64x128xf32, #tpu.memory_space<vmem>>, vector<8x128xf32>
    %375 = arith.truncf %326 : vector<8x32xf32> to vector<8x32xbf16>
    %cst_86 = arith.constant dense<0.000000e+00> : vector<8x128xf32>
    %376 = tpu.matmul %375, %3, %cst_86 {dimension_numbers = #tpu.dot_dimension_numbers<[1], [0], [0], [1], [0, 0, 1, 1], [], []>} : vector<8x32xbf16>, vector<32x128xbf16>, vector<8x128xf32> -> vector<8x128xf32>
    %377 = arith.addf %374, %376 : vector<8x128xf32>
    %378 = arith.addf %377, %10 : vector<8x128xf32>
    %379 = arith.negf %378 : vector<8x128xf32>
    %380 = math.exp %379 : vector<8x128xf32>
    %cst_87 = arith.constant 1.000000e+00 : f32
    %381 = vector.broadcast %cst_87 : f32 to vector<8x128xf32>
    %382 = arith.addf %381, %380 : vector<8x128xf32>
    %383 = arith.divf %381, %382 : vector<8x128xf32>
    %384 = math.tanh %378 : vector<8x128xf32>
    %385 = arith.select %19, %383, %384 : vector<8x128xi1>, vector<8x128xf32>
    %386 = vector.extract_strided_slice %385 {offsets = [0, 0], sizes = [8, 32], strides = [1, 1]} : vector<8x128xf32> to vector<8x32xf32>
    %387 = vector.extract_strided_slice %385 {offsets = [0, 32], sizes = [8, 32], strides = [1, 1]} : vector<8x128xf32> to vector<8x32xf32>
    %388 = vector.extract_strided_slice %385 {offsets = [0, 64], sizes = [8, 32], strides = [1, 1]} : vector<8x128xf32> to vector<8x32xf32>
    %389 = vector.extract_strided_slice %385 {offsets = [0, 96], sizes = [8, 32], strides = [1, 1]} : vector<8x128xf32> to vector<8x32xf32>
    %390 = arith.mulf %387, %324 : vector<8x32xf32>
    %391 = arith.mulf %386, %389 : vector<8x32xf32>
    %392 = arith.addf %390, %391 : vector<8x32xf32>
    %393 = math.tanh %392 : vector<8x32xf32>
    %394 = arith.mulf %388, %393 : vector<8x32xf32>
    %395 = arith.truncf %394 : vector<8x32xf32> to vector<8x32xbf16>
    %cst_88 = arith.constant dense<0.000000e+00> : vector<8x128xf32>
    %396 = tpu.matmul %395, %4, %cst_88 {dimension_numbers = #tpu.dot_dimension_numbers<[1], [0], [0], [1], [0, 0, 1, 1], [], []>} : vector<8x32xbf16>, vector<32x128xbf16>, vector<8x128xf32> -> vector<8x128xf32>
    %397 = arith.truncf %348 : vector<8x32xf32> to vector<8x32xbf16>
    %cst_89 = arith.constant dense<0.000000e+00> : vector<8x128xf32>
    %398 = tpu.matmul %397, %5, %cst_89 {dimension_numbers = #tpu.dot_dimension_numbers<[1], [0], [0], [1], [0, 0, 1, 1], [], []>} : vector<8x32xbf16>, vector<32x128xbf16>, vector<8x128xf32> -> vector<8x128xf32>
    %399 = arith.addf %396, %398 : vector<8x128xf32>
    %400 = arith.addf %399, %13 : vector<8x128xf32>
    %401 = arith.negf %400 : vector<8x128xf32>
    %402 = math.exp %401 : vector<8x128xf32>
    %cst_90 = arith.constant 1.000000e+00 : f32
    %403 = vector.broadcast %cst_90 : f32 to vector<8x128xf32>
    %404 = arith.addf %403, %402 : vector<8x128xf32>
    %405 = arith.divf %403, %404 : vector<8x128xf32>
    %406 = math.tanh %400 : vector<8x128xf32>
    %407 = arith.select %19, %405, %406 : vector<8x128xi1>, vector<8x128xf32>
    %408 = vector.extract_strided_slice %407 {offsets = [0, 0], sizes = [8, 32], strides = [1, 1]} : vector<8x128xf32> to vector<8x32xf32>
    %409 = vector.extract_strided_slice %407 {offsets = [0, 32], sizes = [8, 32], strides = [1, 1]} : vector<8x128xf32> to vector<8x32xf32>
    %410 = vector.extract_strided_slice %407 {offsets = [0, 64], sizes = [8, 32], strides = [1, 1]} : vector<8x128xf32> to vector<8x32xf32>
    %411 = vector.extract_strided_slice %407 {offsets = [0, 96], sizes = [8, 32], strides = [1, 1]} : vector<8x128xf32> to vector<8x32xf32>
    %412 = arith.mulf %409, %346 : vector<8x32xf32>
    %413 = arith.mulf %408, %411 : vector<8x32xf32>
    %414 = arith.addf %412, %413 : vector<8x32xf32>
    %415 = math.tanh %414 : vector<8x32xf32>
    %416 = arith.mulf %410, %415 : vector<8x32xf32>
    %417 = arith.truncf %416 : vector<8x32xf32> to vector<8x32xbf16>
    %cst_91 = arith.constant dense<0.000000e+00> : vector<8x128xf32>
    %418 = tpu.matmul %417, %6, %cst_91 {dimension_numbers = #tpu.dot_dimension_numbers<[1], [0], [0], [1], [0, 0, 1, 1], [], []>} : vector<8x32xbf16>, vector<32x128xbf16>, vector<8x128xf32> -> vector<8x128xf32>
    %419 = arith.truncf %370 : vector<8x32xf32> to vector<8x32xbf16>
    %cst_92 = arith.constant dense<0.000000e+00> : vector<8x128xf32>
    %420 = tpu.matmul %419, %7, %cst_92 {dimension_numbers = #tpu.dot_dimension_numbers<[1], [0], [0], [1], [0, 0, 1, 1], [], []>} : vector<8x32xbf16>, vector<32x128xbf16>, vector<8x128xf32> -> vector<8x128xf32>
    %421 = arith.addf %418, %420 : vector<8x128xf32>
    %422 = arith.addf %421, %16 : vector<8x128xf32>
    %423 = arith.negf %422 : vector<8x128xf32>
    %424 = math.exp %423 : vector<8x128xf32>
    %cst_93 = arith.constant 1.000000e+00 : f32
    %425 = vector.broadcast %cst_93 : f32 to vector<8x128xf32>
    %426 = arith.addf %425, %424 : vector<8x128xf32>
    %427 = arith.divf %425, %426 : vector<8x128xf32>
    %428 = math.tanh %422 : vector<8x128xf32>
    %429 = arith.select %19, %427, %428 : vector<8x128xi1>, vector<8x128xf32>
    %430 = vector.extract_strided_slice %429 {offsets = [0, 0], sizes = [8, 32], strides = [1, 1]} : vector<8x128xf32> to vector<8x32xf32>
    %431 = vector.extract_strided_slice %429 {offsets = [0, 32], sizes = [8, 32], strides = [1, 1]} : vector<8x128xf32> to vector<8x32xf32>
    %432 = vector.extract_strided_slice %429 {offsets = [0, 64], sizes = [8, 32], strides = [1, 1]} : vector<8x128xf32> to vector<8x32xf32>
    %433 = vector.extract_strided_slice %429 {offsets = [0, 96], sizes = [8, 32], strides = [1, 1]} : vector<8x128xf32> to vector<8x32xf32>
    %434 = arith.mulf %431, %368 : vector<8x32xf32>
    %435 = arith.mulf %430, %433 : vector<8x32xf32>
    %436 = arith.addf %434, %435 : vector<8x32xf32>
    %437 = math.tanh %436 : vector<8x32xf32>
    %438 = arith.mulf %432, %437 : vector<8x32xf32>
    %c6_i32 = arith.constant 6 : i32
    %c8_i32_94 = arith.constant 8 : i32
    %439 = arith.muli %c6_i32, %c8_i32_94 : i32
    %440 = tpu.assume_multiple %439, 8 : i32
    %441 = arith.index_cast %440 : i32 to index
    %c0_95 = arith.constant 0 : index
    %442 = vector.load %arg14[%441, %c0_95] : memref<64x128xf32, #tpu.memory_space<vmem>>, vector<8x128xf32>
    %443 = arith.truncf %394 : vector<8x32xf32> to vector<8x32xbf16>
    %cst_96 = arith.constant dense<0.000000e+00> : vector<8x128xf32>
    %444 = tpu.matmul %443, %3, %cst_96 {dimension_numbers = #tpu.dot_dimension_numbers<[1], [0], [0], [1], [0, 0, 1, 1], [], []>} : vector<8x32xbf16>, vector<32x128xbf16>, vector<8x128xf32> -> vector<8x128xf32>
    %445 = arith.addf %442, %444 : vector<8x128xf32>
    %446 = arith.addf %445, %10 : vector<8x128xf32>
    %447 = arith.negf %446 : vector<8x128xf32>
    %448 = math.exp %447 : vector<8x128xf32>
    %cst_97 = arith.constant 1.000000e+00 : f32
    %449 = vector.broadcast %cst_97 : f32 to vector<8x128xf32>
    %450 = arith.addf %449, %448 : vector<8x128xf32>
    %451 = arith.divf %449, %450 : vector<8x128xf32>
    %452 = math.tanh %446 : vector<8x128xf32>
    %453 = arith.select %19, %451, %452 : vector<8x128xi1>, vector<8x128xf32>
    %454 = vector.extract_strided_slice %453 {offsets = [0, 0], sizes = [8, 32], strides = [1, 1]} : vector<8x128xf32> to vector<8x32xf32>
    %455 = vector.extract_strided_slice %453 {offsets = [0, 32], sizes = [8, 32], strides = [1, 1]} : vector<8x128xf32> to vector<8x32xf32>
    %456 = vector.extract_strided_slice %453 {offsets = [0, 64], sizes = [8, 32], strides = [1, 1]} : vector<8x128xf32> to vector<8x32xf32>
    %457 = vector.extract_strided_slice %453 {offsets = [0, 96], sizes = [8, 32], strides = [1, 1]} : vector<8x128xf32> to vector<8x32xf32>
    %458 = arith.mulf %455, %392 : vector<8x32xf32>
    %459 = arith.mulf %454, %457 : vector<8x32xf32>
    %460 = arith.addf %458, %459 : vector<8x32xf32>
    %461 = math.tanh %460 : vector<8x32xf32>
    %462 = arith.mulf %456, %461 : vector<8x32xf32>
    %463 = arith.truncf %462 : vector<8x32xf32> to vector<8x32xbf16>
    %cst_98 = arith.constant dense<0.000000e+00> : vector<8x128xf32>
    %464 = tpu.matmul %463, %4, %cst_98 {dimension_numbers = #tpu.dot_dimension_numbers<[1], [0], [0], [1], [0, 0, 1, 1], [], []>} : vector<8x32xbf16>, vector<32x128xbf16>, vector<8x128xf32> -> vector<8x128xf32>
    %465 = arith.truncf %416 : vector<8x32xf32> to vector<8x32xbf16>
    %cst_99 = arith.constant dense<0.000000e+00> : vector<8x128xf32>
    %466 = tpu.matmul %465, %5, %cst_99 {dimension_numbers = #tpu.dot_dimension_numbers<[1], [0], [0], [1], [0, 0, 1, 1], [], []>} : vector<8x32xbf16>, vector<32x128xbf16>, vector<8x128xf32> -> vector<8x128xf32>
    %467 = arith.addf %464, %466 : vector<8x128xf32>
    %468 = arith.addf %467, %13 : vector<8x128xf32>
    %469 = arith.negf %468 : vector<8x128xf32>
    %470 = math.exp %469 : vector<8x128xf32>
    %cst_100 = arith.constant 1.000000e+00 : f32
    %471 = vector.broadcast %cst_100 : f32 to vector<8x128xf32>
    %472 = arith.addf %471, %470 : vector<8x128xf32>
    %473 = arith.divf %471, %472 : vector<8x128xf32>
    %474 = math.tanh %468 : vector<8x128xf32>
    %475 = arith.select %19, %473, %474 : vector<8x128xi1>, vector<8x128xf32>
    %476 = vector.extract_strided_slice %475 {offsets = [0, 0], sizes = [8, 32], strides = [1, 1]} : vector<8x128xf32> to vector<8x32xf32>
    %477 = vector.extract_strided_slice %475 {offsets = [0, 32], sizes = [8, 32], strides = [1, 1]} : vector<8x128xf32> to vector<8x32xf32>
    %478 = vector.extract_strided_slice %475 {offsets = [0, 64], sizes = [8, 32], strides = [1, 1]} : vector<8x128xf32> to vector<8x32xf32>
    %479 = vector.extract_strided_slice %475 {offsets = [0, 96], sizes = [8, 32], strides = [1, 1]} : vector<8x128xf32> to vector<8x32xf32>
    %480 = arith.mulf %477, %414 : vector<8x32xf32>
    %481 = arith.mulf %476, %479 : vector<8x32xf32>
    %482 = arith.addf %480, %481 : vector<8x32xf32>
    %483 = math.tanh %482 : vector<8x32xf32>
    %484 = arith.mulf %478, %483 : vector<8x32xf32>
    %485 = arith.truncf %484 : vector<8x32xf32> to vector<8x32xbf16>
    %cst_101 = arith.constant dense<0.000000e+00> : vector<8x128xf32>
    %486 = tpu.matmul %485, %6, %cst_101 {dimension_numbers = #tpu.dot_dimension_numbers<[1], [0], [0], [1], [0, 0, 1, 1], [], []>} : vector<8x32xbf16>, vector<32x128xbf16>, vector<8x128xf32> -> vector<8x128xf32>
    %487 = arith.truncf %438 : vector<8x32xf32> to vector<8x32xbf16>
    %cst_102 = arith.constant dense<0.000000e+00> : vector<8x128xf32>
    %488 = tpu.matmul %487, %7, %cst_102 {dimension_numbers = #tpu.dot_dimension_numbers<[1], [0], [0], [1], [0, 0, 1, 1], [], []>} : vector<8x32xbf16>, vector<32x128xbf16>, vector<8x128xf32> -> vector<8x128xf32>
    %489 = arith.addf %486, %488 : vector<8x128xf32>
    %490 = arith.addf %489, %16 : vector<8x128xf32>
    %491 = arith.negf %490 : vector<8x128xf32>
    %492 = math.exp %491 : vector<8x128xf32>
    %cst_103 = arith.constant 1.000000e+00 : f32
    %493 = vector.broadcast %cst_103 : f32 to vector<8x128xf32>
    %494 = arith.addf %493, %492 : vector<8x128xf32>
    %495 = arith.divf %493, %494 : vector<8x128xf32>
    %496 = math.tanh %490 : vector<8x128xf32>
    %497 = arith.select %19, %495, %496 : vector<8x128xi1>, vector<8x128xf32>
    %498 = vector.extract_strided_slice %497 {offsets = [0, 0], sizes = [8, 32], strides = [1, 1]} : vector<8x128xf32> to vector<8x32xf32>
    %499 = vector.extract_strided_slice %497 {offsets = [0, 32], sizes = [8, 32], strides = [1, 1]} : vector<8x128xf32> to vector<8x32xf32>
    %500 = vector.extract_strided_slice %497 {offsets = [0, 64], sizes = [8, 32], strides = [1, 1]} : vector<8x128xf32> to vector<8x32xf32>
    %501 = vector.extract_strided_slice %497 {offsets = [0, 96], sizes = [8, 32], strides = [1, 1]} : vector<8x128xf32> to vector<8x32xf32>
    %502 = arith.mulf %499, %436 : vector<8x32xf32>
    %503 = arith.mulf %498, %501 : vector<8x32xf32>
    %504 = arith.addf %502, %503 : vector<8x32xf32>
    %505 = math.tanh %504 : vector<8x32xf32>
    %506 = arith.mulf %500, %505 : vector<8x32xf32>
    %c7_i32 = arith.constant 7 : i32
    %c8_i32_104 = arith.constant 8 : i32
    %507 = arith.muli %c7_i32, %c8_i32_104 : i32
    %508 = tpu.assume_multiple %507, 8 : i32
    %509 = arith.index_cast %508 : i32 to index
    %c0_105 = arith.constant 0 : index
    %510 = vector.load %arg14[%509, %c0_105] : memref<64x128xf32, #tpu.memory_space<vmem>>, vector<8x128xf32>
    %511 = arith.truncf %462 : vector<8x32xf32> to vector<8x32xbf16>
    %cst_106 = arith.constant dense<0.000000e+00> : vector<8x128xf32>
    %512 = tpu.matmul %511, %3, %cst_106 {dimension_numbers = #tpu.dot_dimension_numbers<[1], [0], [0], [1], [0, 0, 1, 1], [], []>} : vector<8x32xbf16>, vector<32x128xbf16>, vector<8x128xf32> -> vector<8x128xf32>
    %513 = arith.addf %510, %512 : vector<8x128xf32>
    %514 = arith.addf %513, %10 : vector<8x128xf32>
    %515 = arith.negf %514 : vector<8x128xf32>
    %516 = math.exp %515 : vector<8x128xf32>
    %cst_107 = arith.constant 1.000000e+00 : f32
    %517 = vector.broadcast %cst_107 : f32 to vector<8x128xf32>
    %518 = arith.addf %517, %516 : vector<8x128xf32>
    %519 = arith.divf %517, %518 : vector<8x128xf32>
    %520 = math.tanh %514 : vector<8x128xf32>
    %521 = arith.select %19, %519, %520 : vector<8x128xi1>, vector<8x128xf32>
    %522 = vector.extract_strided_slice %521 {offsets = [0, 0], sizes = [8, 32], strides = [1, 1]} : vector<8x128xf32> to vector<8x32xf32>
    %523 = vector.extract_strided_slice %521 {offsets = [0, 32], sizes = [8, 32], strides = [1, 1]} : vector<8x128xf32> to vector<8x32xf32>
    %524 = vector.extract_strided_slice %521 {offsets = [0, 64], sizes = [8, 32], strides = [1, 1]} : vector<8x128xf32> to vector<8x32xf32>
    %525 = vector.extract_strided_slice %521 {offsets = [0, 96], sizes = [8, 32], strides = [1, 1]} : vector<8x128xf32> to vector<8x32xf32>
    %526 = arith.mulf %523, %460 : vector<8x32xf32>
    %527 = arith.mulf %522, %525 : vector<8x32xf32>
    %528 = arith.addf %526, %527 : vector<8x32xf32>
    %529 = math.tanh %528 : vector<8x32xf32>
    %530 = arith.mulf %524, %529 : vector<8x32xf32>
    %531 = arith.truncf %530 : vector<8x32xf32> to vector<8x32xbf16>
    %cst_108 = arith.constant dense<0.000000e+00> : vector<8x128xf32>
    %532 = tpu.matmul %531, %4, %cst_108 {dimension_numbers = #tpu.dot_dimension_numbers<[1], [0], [0], [1], [0, 0, 1, 1], [], []>} : vector<8x32xbf16>, vector<32x128xbf16>, vector<8x128xf32> -> vector<8x128xf32>
    %533 = arith.truncf %484 : vector<8x32xf32> to vector<8x32xbf16>
    %cst_109 = arith.constant dense<0.000000e+00> : vector<8x128xf32>
    %534 = tpu.matmul %533, %5, %cst_109 {dimension_numbers = #tpu.dot_dimension_numbers<[1], [0], [0], [1], [0, 0, 1, 1], [], []>} : vector<8x32xbf16>, vector<32x128xbf16>, vector<8x128xf32> -> vector<8x128xf32>
    %535 = arith.addf %532, %534 : vector<8x128xf32>
    %536 = arith.addf %535, %13 : vector<8x128xf32>
    %537 = arith.negf %536 : vector<8x128xf32>
    %538 = math.exp %537 : vector<8x128xf32>
    %cst_110 = arith.constant 1.000000e+00 : f32
    %539 = vector.broadcast %cst_110 : f32 to vector<8x128xf32>
    %540 = arith.addf %539, %538 : vector<8x128xf32>
    %541 = arith.divf %539, %540 : vector<8x128xf32>
    %542 = math.tanh %536 : vector<8x128xf32>
    %543 = arith.select %19, %541, %542 : vector<8x128xi1>, vector<8x128xf32>
    %544 = vector.extract_strided_slice %543 {offsets = [0, 0], sizes = [8, 32], strides = [1, 1]} : vector<8x128xf32> to vector<8x32xf32>
    %545 = vector.extract_strided_slice %543 {offsets = [0, 32], sizes = [8, 32], strides = [1, 1]} : vector<8x128xf32> to vector<8x32xf32>
    %546 = vector.extract_strided_slice %543 {offsets = [0, 64], sizes = [8, 32], strides = [1, 1]} : vector<8x128xf32> to vector<8x32xf32>
    %547 = vector.extract_strided_slice %543 {offsets = [0, 96], sizes = [8, 32], strides = [1, 1]} : vector<8x128xf32> to vector<8x32xf32>
    %548 = arith.mulf %545, %482 : vector<8x32xf32>
    %549 = arith.mulf %544, %547 : vector<8x32xf32>
    %550 = arith.addf %548, %549 : vector<8x32xf32>
    %551 = math.tanh %550 : vector<8x32xf32>
    %552 = arith.mulf %546, %551 : vector<8x32xf32>
    %553 = arith.truncf %552 : vector<8x32xf32> to vector<8x32xbf16>
    %cst_111 = arith.constant dense<0.000000e+00> : vector<8x128xf32>
    %554 = tpu.matmul %553, %6, %cst_111 {dimension_numbers = #tpu.dot_dimension_numbers<[1], [0], [0], [1], [0, 0, 1, 1], [], []>} : vector<8x32xbf16>, vector<32x128xbf16>, vector<8x128xf32> -> vector<8x128xf32>
    %555 = arith.truncf %506 : vector<8x32xf32> to vector<8x32xbf16>
    %cst_112 = arith.constant dense<0.000000e+00> : vector<8x128xf32>
    %556 = tpu.matmul %555, %7, %cst_112 {dimension_numbers = #tpu.dot_dimension_numbers<[1], [0], [0], [1], [0, 0, 1, 1], [], []>} : vector<8x32xbf16>, vector<32x128xbf16>, vector<8x128xf32> -> vector<8x128xf32>
    %557 = arith.addf %554, %556 : vector<8x128xf32>
    %558 = arith.addf %557, %16 : vector<8x128xf32>
    %559 = arith.negf %558 : vector<8x128xf32>
    %560 = math.exp %559 : vector<8x128xf32>
    %cst_113 = arith.constant 1.000000e+00 : f32
    %561 = vector.broadcast %cst_113 : f32 to vector<8x128xf32>
    %562 = arith.addf %561, %560 : vector<8x128xf32>
    %563 = arith.divf %561, %562 : vector<8x128xf32>
    %564 = math.tanh %558 : vector<8x128xf32>
    %565 = arith.select %19, %563, %564 : vector<8x128xi1>, vector<8x128xf32>
    %566 = vector.extract_strided_slice %565 {offsets = [0, 0], sizes = [8, 32], strides = [1, 1]} : vector<8x128xf32> to vector<8x32xf32>
    %567 = vector.extract_strided_slice %565 {offsets = [0, 32], sizes = [8, 32], strides = [1, 1]} : vector<8x128xf32> to vector<8x32xf32>
    %568 = vector.extract_strided_slice %565 {offsets = [0, 64], sizes = [8, 32], strides = [1, 1]} : vector<8x128xf32> to vector<8x32xf32>
    %569 = vector.extract_strided_slice %565 {offsets = [0, 96], sizes = [8, 32], strides = [1, 1]} : vector<8x128xf32> to vector<8x32xf32>
    %570 = arith.mulf %567, %504 : vector<8x32xf32>
    %571 = arith.mulf %566, %569 : vector<8x32xf32>
    %572 = arith.addf %570, %571 : vector<8x32xf32>
    %573 = math.tanh %572 : vector<8x32xf32>
    %574 = arith.mulf %568, %573 : vector<8x32xf32>
    %c8_i32_114 = arith.constant 8 : i32
    %c0_115 = arith.constant 0 : index
    %c0_116 = arith.constant 0 : index
    %575 = vector.load %arg15[%c0_115, %c0_116] : memref<8x32xf32, #tpu.memory_space<vmem>>, vector<8x32xf32>
    tpu.vector_store %arg15[%c0_115, %c0_116], %530 {strides = array<i32>} : memref<8x32xf32, #tpu.memory_space<vmem>>, vector<8x32xf32>,
    %c0_117 = arith.constant 0 : index
    %c0_118 = arith.constant 0 : index
    %576 = vector.load %arg16[%c0_117, %c0_118] : memref<8x32xf32, #tpu.memory_space<vmem>>, vector<8x32xf32>
    tpu.vector_store %arg16[%c0_117, %c0_118], %528 {strides = array<i32>} : memref<8x32xf32, #tpu.memory_space<vmem>>, vector<8x32xf32>,
    %c0_119 = arith.constant 0 : index
    %c0_120 = arith.constant 0 : index
    %577 = vector.load %arg17[%c0_119, %c0_120] : memref<8x32xf32, #tpu.memory_space<vmem>>, vector<8x32xf32>
    tpu.vector_store %arg17[%c0_119, %c0_120], %552 {strides = array<i32>} : memref<8x32xf32, #tpu.memory_space<vmem>>, vector<8x32xf32>,
    %c0_121 = arith.constant 0 : index
    %c0_122 = arith.constant 0 : index
    %578 = vector.load %arg18[%c0_121, %c0_122] : memref<8x32xf32, #tpu.memory_space<vmem>>, vector<8x32xf32>
    tpu.vector_store %arg18[%c0_121, %c0_122], %550 {strides = array<i32>} : memref<8x32xf32, #tpu.memory_space<vmem>>, vector<8x32xf32>,
    %c0_123 = arith.constant 0 : index
    %c0_124 = arith.constant 0 : index
    %579 = vector.load %arg19[%c0_123, %c0_124] : memref<8x32xf32, #tpu.memory_space<vmem>>, vector<8x32xf32>
    tpu.vector_store %arg19[%c0_123, %c0_124], %574 {strides = array<i32>} : memref<8x32xf32, #tpu.memory_space<vmem>>, vector<8x32xf32>,
    %c0_125 = arith.constant 0 : index
    %c0_126 = arith.constant 0 : index
    %580 = vector.load %arg20[%c0_125, %c0_126] : memref<8x32xf32, #tpu.memory_space<vmem>>, vector<8x32xf32>
    tpu.vector_store %arg20[%c0_125, %c0_126], %572 {strides = array<i32>} : memref<8x32xf32, #tpu.memory_space<vmem>>, vector<8x32xf32>,
    %c0_i32_127 = arith.constant 0 : i32
    %581 = arith.cmpi eq, %arg0, %c0_i32_127 : i32
    %582 = arith.extui %581 : i1 to i32
    %c0_i32_128 = arith.constant 0 : i32
    %583 = arith.cmpi ne, %582, %c0_i32_128 : i32
    scf.if %583 {
      %584 = arith.truncf %574 : vector<8x32xf32> to vector<8x32xbf16>
      %c0_129 = arith.constant 0 : index
      %c0_130 = arith.constant 0 : index
      %585 = vector.load %arg11[%c0_129, %c0_130] : memref<32x128xbf16, #tpu.memory_space<vmem>>, vector<32x128xbf16>
      %cst_131 = arith.constant dense<0.000000e+00> : vector<8x128xf32>
      %586 = tpu.matmul %584, %585, %cst_131 {dimension_numbers = #tpu.dot_dimension_numbers<[1], [0], [0], [1], [0, 0, 1, 1], [], []>} : vector<8x32xbf16>, vector<32x128xbf16>, vector<8x128xf32> -> vector<8x128xf32>
      %c0_132 = arith.constant 0 : index
      %c0_133 = arith.constant 0 : index
      %587 = vector.load %arg12[%c0_132, %c0_133] : memref<1x128xf32, #tpu.memory_space<vmem>>, vector<1x128xf32>
      %588 = vector.broadcast %587 : vector<1x128xf32> to vector<8x128xf32>
      %589 = arith.addf %586, %588 : vector<8x128xf32>
      %c0_134 = arith.constant 0 : index
      %c0_135 = arith.constant 0 : index
      %590 = vector.load %arg13[%c0_134, %c0_135] : memref<8x128xf32, #tpu.memory_space<vmem>>, vector<8x128xf32>
      tpu.vector_store %arg13[%c0_134, %c0_135], %589 {strides = array<i32>} : memref<8x128xf32, #tpu.memory_space<vmem>>, vector<8x128xf32>,
    } else {
    }
    return
  }
  func.func @transform_0(%arg0: i32) -> (i32, i32) {
    %c0_i32 = arith.constant 0 : i32
    %c0_i32_0 = arith.constant 0 : i32
    return %arg0, %c0_i32 : i32, i32
  }
  func.func @transform_1(%arg0: i32) -> (i32, i32) {
    %c0_i32 = arith.constant 0 : i32
    %c0_i32_0 = arith.constant 0 : i32
    %c0_i32_1 = arith.constant 0 : i32
    return %c0_i32, %c0_i32_0 : i32, i32
  }
  func.func @transform_2(%arg0: i32) -> (i32, i32) {
    %c0_i32 = arith.constant 0 : i32
    %c0_i32_0 = arith.constant 0 : i32
    %c0_i32_1 = arith.constant 0 : i32
    return %c0_i32, %c0_i32_0 : i32, i32
  }
  func.func @transform_3(%arg0: i32) -> (i32, i32) {
    %c0_i32 = arith.constant 0 : i32
    %c0_i32_0 = arith.constant 0 : i32
    %c0_i32_1 = arith.constant 0 : i32
    return %c0_i32, %c0_i32_0 : i32, i32
  }
  func.func @transform_4(%arg0: i32) -> (i32, i32) {
    %c0_i32 = arith.constant 0 : i32
    %c0_i32_0 = arith.constant 0 : i32
    %c0_i32_1 = arith.constant 0 : i32
    return %c0_i32, %c0_i32_0 : i32, i32
  }
  func.func @transform_5(%arg0: i32) -> (i32, i32) {
    %c0_i32 = arith.constant 0 : i32
    %c0_i32_0 = arith.constant 0 : i32
    %c0_i32_1 = arith.constant 0 : i32
    return %c0_i32, %c0_i32_0 : i32, i32
  }
  func.func @transform_6(%arg0: i32) -> (i32, i32) {
    %c0_i32 = arith.constant 0 : i32
    %c0_i32_0 = arith.constant 0 : i32
    %c0_i32_1 = arith.constant 0 : i32
    return %c0_i32, %c0_i32_0 : i32, i32
  }
  func.func @transform_7(%arg0: i32) -> (i32, i32) {
    %c0_i32 = arith.constant 0 : i32
    %c0_i32_0 = arith.constant 0 : i32
    %c0_i32_1 = arith.constant 0 : i32
    return %c0_i32, %c0_i32_0 : i32, i32
  }
  func.func @transform_8(%arg0: i32) -> (i32, i32) {
    %c0_i32 = arith.constant 0 : i32
    %c0_i32_0 = arith.constant 0 : i32
    %c0_i32_1 = arith.constant 0 : i32
    return %c0_i32, %c0_i32_0 : i32, i32
  }
  func.func @transform_9(%arg0: i32) -> (i32, i32) {
    %c0_i32 = arith.constant 0 : i32
    %c0_i32_0 = arith.constant 0 : i32
    %c0_i32_1 = arith.constant 0 : i32
    return %c0_i32, %c0_i32_0 : i32, i32
  }
  func.func @transform_10(%arg0: i32) -> (i32, i32) {
    %c0_i32 = arith.constant 0 : i32
    %c0_i32_0 = arith.constant 0 : i32
    %c0_i32_1 = arith.constant 0 : i32
    return %c0_i32, %c0_i32_0 : i32, i32
  }
  func.func @transform_11(%arg0: i32) -> (i32, i32) {
    %c0_i32 = arith.constant 0 : i32
    %c0_i32_0 = arith.constant 0 : i32
    %c0_i32_1 = arith.constant 0 : i32
    return %c0_i32, %c0_i32_0 : i32, i32
  }
  func.func @transform_12(%arg0: i32) -> (i32, i32) {
    %c0_i32 = arith.constant 0 : i32
    %c0_i32_0 = arith.constant 0 : i32
    %c0_i32_1 = arith.constant 0 : i32
    return %c0_i32, %c0_i32_0 : i32, i32
  }
}

</mosaic_0001>

<bundles_post_ra>
// kernel: tpu_custom_call.1
= control target key start
LH: loop header
LB: loop body
LE: loop exit
PB: predicated region body
PF: predicated region fallthrough
CT: control target
= control target key end

     0   :  { %17 = vsyncpa [#allocation10], 0  ;;  %s4587_s0 = inlined_call_operand.vmem [shape: f32[64,4], index: 0, kind: input, shape index: {}]   ;;  %s4588_s1 = inlined_call_operand.vmem [shape: bf16[4,128], index: 1, kind: input, shape index: {}]   ;;  %s4589_s2 = inlined_call_operand.vmem [shape: bf16[32,128], index: 2, kind: input, shape index: {}]   ;;  %s4590_s3 = inlined_call_operand.hbm [shape: f32[1,128], index: 3, kind: input, shape index: {}]   ;;  %s4591_s4 = inlined_call_operand.vmem [shape: bf16[32,128], index: 4, kind: input, shape index: {}]   ;;  %s4592_s5 = inlined_call_operand.vmem [shape: bf16[32,128], index: 5, kind: input, shape index: {}]   ;;  %s4593_s6 = inlined_call_operand.hbm [shape: f32[1,128], index: 6, kind: input, shape index: {}]   ;;  %s4594_s7 = inlined_call_operand.vmem [shape: bf16[32,128], index: 7, kind: input, shape index: {}]   ;;  %s4595_s8 = inlined_call_operand.vmem [shape: bf16[32,128], index: 8, kind: input, shape index: {}]   ;;  %s4596_s9 = inlined_call_operand.vmem [shape: f32[1,128], index: 9, kind: input, shape index: {}]   ;;  %s4597_s10 = inlined_call_operand.vmem [shape: bf16[32,128], index: 10, kind: input, shape index: {}]   ;;  %s4598_s11 = inlined_call_operand.vmem [shape: f32[1,128], index: 11, kind: input, shape index: {}]   ;;  %s4599_s12 = inlined_call_operand.hbm [shape: f32[8,128], index: 12, kind: output, shape index: {}]  }
   0x1   :  { %18 = vsyncpa [#allocation13], 0 }
   0x2   :  { %19 = vsyncpa [#allocation11], 0  ;;  %s3693_s21 = smov [#allocation9]   ;;  %s3694_s23 = smov [#allocation12]  }
   0x3   :  { %s32_s22 = sshll.u32 %s3693_s21, 4  ;;  %s46_s24 = sshll.u32 %s3694_s23, 4  ;;  %s33_s22 = int_to_ptr.vmem [resolvable:$true] %s32_s22  ;;  %s47_s24 = int_to_ptr.vmem [resolvable:$true] %s46_s24 }
   0x4   :  { %s3621_s27 = scalar_lea.hbm %s4590_s3, 16 }
   0x5   :  { %p3622_p0 = scmp.ne.s32.totalorder %s4590_s3, %s3621_s27  ;;  %p3625_p1 = scmp.lt.u32.totalorder %s3621_s27, %s4590_s3 }
   0x7   :  { %p3627_p2 = pnand %p3625_p1, %p3622_p0 }
   0x9   :  { %3630 = shalt.err (!%p3627_p2)
}
   0xa   :  { %s3631_s14 = scalar_lea.vmem %s33_s22, 16  ;;  %s3635_s15 = scalar_lea.vmem %s33_s22, 32 }
   0xb   :  { %p3632_p3 = scmp.ne.s32.totalorder %s33_s22, %s3631_s14  ;;  %p3636_p4 = scmp.lt.s32.totalorder %s33_s22, %s33_s22 }
   0xc   :  { %p3637_p5 = scmp.lt.s32.totalorder %s3635_s15, %s3631_s14 }
   0xe   :  { %p3638_p6 = por %p3637_p5, %p3636_p4 }
  0x10   :  { %p3639_p7 = pnand %p3638_p6, %p3632_p3 }
  0x12   :  { %3642 = shalt.err (!%p3639_p7)
}
  0x13   :  { %35 = dma.hbm_to_vmem [thread:$0]  %s4590_s3, 16, %s33_s22, [#allocation10]  }
  0x14   :  { %s3643_s20 = scalar_lea.hbm %s4593_s6, 16 }
  0x15   :  { %p3644_p8 = scmp.ne.s32.totalorder %s4593_s6, %s3643_s20  ;;  %p3647_p9 = scmp.lt.u32.totalorder %s3643_s20, %s4593_s6 }
  0x17   :  { %p3649_p10 = pnand %p3647_p9, %p3644_p8 }
  0x19   :  { %3652 = shalt.err (!%p3649_p10)
}
  0x1a   :  { %s3653_s27 = scalar_lea.vmem %s47_s24, 16  ;;  %s3657_s28 = scalar_lea.vmem %s47_s24, 32 }
  0x1b   :  { %p3654_p11 = scmp.ne.s32.totalorder %s47_s24, %s3653_s27  ;;  %p3658_p12 = scmp.lt.s32.totalorder %s47_s24, %s47_s24 }
  0x1c   :  { %p3659_p13 = scmp.lt.s32.totalorder %s3657_s28, %s3653_s27 }
  0x1e   :  { %p3660_p0 = por %p3659_p13, %p3658_p12 }
  0x20   :  { %p3661_p1 = pnand %p3660_p0, %p3654_p11 }
  0x22   :  { %3664 = shalt.err (!%p3661_p1)
}
  0x23   :  { %49 = dma.hbm_to_vmem [thread:$0]  %s4593_s6, 16, %s47_s24, [#allocation13]  }
  0x24   :  { %3687 = dma.done.wait [#allocation10], 16  }
  0x25   :  { %3688 = vsyncadd [#allocation10], 4294967280 }
  0x26   :  { %3689 = dma.done.wait [#allocation13], 16  }
  0x27   :  { %3690 = vsyncadd [#allocation13], 4294967280  ;;  %v3695_v0 = vmov 0.0   ;;  %vm3696_vm0 = vmmov 0   ;;  %vm71_vm1 = vcmask 261120   ;;  %vm148_vm2 = vcmask 1041408  }
  0x28   :  { %3067 = vmatprep.subr.bf16.mxu1 %v3695_v0  ;;  %3071 = vmatprep.mubr.msk.bf16.mxu1 %vm3696_vm0, %v3695_v0  ;;  %72 = vst.msk [vmem:[#allocation3] sm:$0xff] %vm71_vm1, %v3695_v0  ;;  %73 = vst.msk [vmem:[#allocation4] sm:$0xff] %vm71_vm1, %v3695_v0  ;;  %v134_v1 = vld [vmem:[%s4588_s1] sm:$0x3]  ;;  %v123_v5 = vld [vmem:[%s4587_s0 + $0x8] sm:$0xff]  ;;  %vm135_vm3 = vcmask 31744   ;;  %v119_v27 = vlaneseq }
  0x29   :  { %74 = vst.msk [vmem:[#allocation5] sm:$0xff] %vm71_vm1, %v3695_v0  ;;  %75 = vst.msk [vmem:[#allocation6] sm:$0xff] %vm71_vm1, %v3695_v0  ;;  %3395 = vmatprep.subr.msk.bf16.mxu0 %vm148_vm2, %v134_v1  ;;  %v150_v2 = vsel %vm148_vm2, %v134_v1, 0  ;;  %v3811_v3 = vld [vmem:[%s4589_s2] sm:$0xff]   ;;  %v124_v7 = vld [vmem:[%s4587_s0 + $0x10] sm:$0xff]  ;;  %s3697_s23 = smov 32  }
  0x2a   :  { %76 = vst.msk [vmem:[#allocation7] sm:$0xff] %vm71_vm1, %v3695_v0  ;;  %77 = vst.msk [vmem:[#allocation8] sm:$0xff] %vm71_vm1, %v3695_v0  ;;  %v122_v4 = vld [vmem:[%s4587_s0] sm:$0xff]  ;;  %3058 = vmatpush3.bf16.msra.mxu0 %v150_v2  ;;  %v125_v8 = vld [vmem:[%s4587_s0 + $0x18] sm:$0xff]  ;;  %3068 = vmatpush3.bf16.msra.mxu1 %v3811_v3  ;;  %v3849_v28 = vand.u32 127, %v119_v27  ;;  %s3698_s21 = smov 64  }
  0x2b   :  { %v130_v6 = vpack.c.bf16 %v123_v5, %v122_v4  ;;  %v131_v9 = vpack.c.bf16 %v125_v8, %v124_v7  ;;  %v3829_v10 = vld [vmem:[%s4589_s2 + $0x8] sm:$0xff]   ;;  %3083 = vmatprep.subr.bf16.mxu0 %v3695_v0  ;;  %3069 = vmatprep.subr.bf16.mxu1 %v3695_v0  ;;  %v3846_v17 = vld [vmem:[#allocation9] ss:$0 sm:$0xff]  ;;  %v3863_v39 = vld [vmem:[%s4592_s5] sm:$0xff]   ;;  %s3700_s6 = smov [#allocation14]  }
  0x2c   :  { %vm121_vm4 = vcmp.lt.s32.totalorder %v3849_v28, 96  ;;  %v3868_v40 = vld [vmem:[%s4592_s5 + $0x8] sm:$0xff]   ;;  %v3873_v42 = vld [vmem:[%s4591_s4] sm:$0xff]   ;;  %v128_v45 = vld [vmem:[%s4587_s0 + $0x30] sm:$0xff]  ;;  %s2834_s24 = sshll.u32 %s3700_s6, 4  ;;  %s2835_s24 = int_to_ptr.vmem [resolvable:$true] %s2834_s24 }
  0x2d   :  { %3059 = vmatprep.mubr.msk.bf16.mxu0 %vm135_vm3, %v130_v6  ;;  %v126_v43 = vld [vmem:[%s4587_s0 + $0x20] sm:$0xff]  ;;  %v127_v44 = vld [vmem:[%s4587_s0 + $0x28] sm:$0xff]  ;;  %v129_v46 = vld [vmem:[%s4587_s0 + $0x38] sm:$0xff]  ;;  %s3665_s29 = scalar_lea.vmem %s2835_s24, 128  ;;  %p3670_p3 = scmp.lt.s32.totalorder %s2835_s24, %s2835_s24 }
  0x2e   :  { %3060 = vmatmul.mubr.msk.bf16.vlgmr.msra.gmra.mrb[0].mxu0 %vm135_vm3, %v131_v9  ;;  %3070 = vmatpush3.bf16.msra.mxu1 %v3829_v10  ;;  %v132_v47 = vpack.c.bf16 %v127_v44, %v126_v43  ;;  %v133_v48 = vpack.c.bf16 %v129_v46, %v128_v45  ;;  %v3893_v49 = vld [vmem:[%s4591_s4 + $0x8] sm:$0xff]   ;;  %v3901_v51 = vld [vmem:[%s4595_s8] sm:$0xff]   ;;  %p3666_p2 = scmp.ne.s32.totalorder %s2835_s24, %s3665_s29  ;;  %p3671_p4 = scmp.lt.s32.totalorder %s3665_s29, %s3665_s29 }
  0x2f   :  { %v225_v11 = vld [vmem:[#allocation3] sm:$0xff]  ;;  %3075 = vmatprep.subr.bf16.mxu1 %v3695_v0  ;;  %v226_v32 = vld [vmem:[#allocation4] sm:$0xff]  ;;  %3084 = vmatpush3.bf16.msra.mxu0 %v3873_v42 }
  0x30   :  { %v232_v12 = vpack.c.bf16 %v225_v11, %v225_v11  ;;  %v227_v41 = vld [vmem:[#allocation5] sm:$0xff]  ;;  %3085 = vmatprep.subr.bf16.mxu0 %v3695_v0  ;;  %3063 = vmatprep.mubr.msk.bf16.mxu0 %vm135_vm3, %v132_v47  ;;  %v3915_v53 = vld [vmem:[%s4595_s8 + $0x8] sm:$0xff]   ;;  %v228_v44 = vld [vmem:[#allocation6] sm:$0xff]  ;;  %p3672_p5 = por %p3671_p4, %p3670_p3 }
  0x31   :  { %v321_v50 = vpack.c.bf16 %v227_v41, %v227_v41  ;;  %v229_v54 = vld [vmem:[#allocation7] sm:$0xff]  ;;  %v3950_v11 = vld [vmem:[#allocation12] ss:$0 sm:$0xff]  ;;  %v3415_v28 = vld [vmem:[%s4597_s10 + $0x8] sm:$0xff]  }
  0x32   :  { %3072 = vmatmul.mubr.msk.bf16.vlgmr.msra.gmra.mrb[0].mxu1 %vm71_vm1, %v232_v12  ;;  %v466_v55 = vpack.c.bf16 %v229_v54, %v229_v54  ;;  %p3673_p6 = pnand %p3672_p5, %p3666_p2 }
  0x33   :  { %3079 = vmatprep.mubr.msk.bf16.mxu1 %vm3696_vm0, %v3695_v0  ;;  %3076 = vmatpush3.bf16.msra.mxu1 %v3863_v39 }
  0x34   :  { %3077 = vmatprep.subr.bf16.mxu1 %v3695_v0  ;;  %3086 = vmatpush3.bf16.msra.mxu0 %v3893_v49 }
  0x35   :  { %3099 = vmatprep.subr.bf16.mxu0 %v3695_v0 }
  0x36   :  { %3064 = vmatmul.mubr.msk.bf16.gmra.mrb[4].mxu0 %vm135_vm3, %v133_v48 }
  0x37   :  { %3078 = vmatpush3.bf16.msra.mxu1 %v3868_v40  ;;  %3087 = vmatprep.mubr.msk.bf16.mxu0 %vm3696_vm0, %v3695_v0 }
  0x38   :  { %3091 = vmatprep.subr.bf16.mxu1 %v3695_v0 }
  0x3a   :  { %3080 = vmatmul.mubr.msk.bf16.vlgmr.msra.gmra.mrb[4].mxu1 %vm71_vm1, %v321_v50 }
  0x3b   :  { %3092 = vmatpush3.bf16.msra.mxu1 %v3901_v51  ;;  %3095 = vmatprep.mubr.msk.bf16.mxu1 %vm3696_vm0, %v3695_v0 }
  0x3c   :  { %3093 = vmatprep.subr.bf16.mxu1 %v3695_v0 }
  0x3f   :  { %3094 = vmatpush3.bf16.msra.mxu1 %v3915_v53 }
  0x40   :  { %3107 = vmatprep.subr.bf16.mxu1 %v3695_v0 }
  0x42   :  { %3096 = vmatmul.mubr.msk.bf16.vlgmr.msra.gmra.mrb[8].mxu1 %vm71_vm1, %v466_v55 }
  0x43   :  { %3108 = vmatpush3.bf16.msra.mxu1 %v3811_v3  ;;  %3111 = vmatprep.mubr.msk.bf16.mxu1 %vm3696_vm0, %v3695_v0 }
  0x44   :  { %3109 = vmatprep.subr.bf16.mxu1 %v3695_v0 }
  0x47   :  { %3110 = vmatpush3.bf16.msra.mxu1 %v3829_v10 }
  0x48   :  { %3123 = vmatprep.subr.bf16.mxu1 %v3695_v0 }
 0x101   :  { %v3840_v13 = vpop.f32.mrb[0].mxu0 }
 0x102   :  { %v186_v14 = vpop.f32.mrb[1].mxu0 }
 0x103   :  { %v3842_v15 = vpop.f32.mrb[2].mxu0 }
 0x104   :  { %v3844_v16 = vpop.f32.mrb[3].mxu0 }
 0x105   :  { %v283_v18 = vpop.f32.mrb[0].mxu1 }
 0x106   :  { %v289_v19 = vadd.f32 %v283_v18, %v186_v14  ;;  %v3073_v20 = vpop.f32.mrb[1].mxu1 }
 0x107   :  { %v286_v21 = vpop.f32.mrb[2].mxu1 }
 0x108   :  { %v290_v22 = vadd.f32 %v3846_v17, %v289_v19  ;;  %v3074_v23 = vpop.f32.mrb[3].mxu1 }
 0x109   :  { %v3930_v59 = vpop.f32.mrb[4].mxu0 }
 0x10a   :  { %v2854_v24 = vmul.f32 -1.442695, %v290_v22  ;;  %v3932_v60 = vpop.f32.mrb[5].mxu0 }
 0x10b   :  { %v3934_v61 = vpop.f32.mrb[6].mxu0 }
 0x10c   :  { %3416 = vpow2.f32 %v2854_v24  ;;  %v3936_v63 = vpop.f32.mrb[7].mxu0 }
 0x10d   :  { %3418 = vtanh.f32 %v290_v22  ;;  %v371_v62 = vpop.f32.mrb[4].mxu1 }
 0x10e   :  { %v3081_v1 = vpop.f32.mrb[5].mxu1 }
 0x10f   :  { %v374_v2 = vpop.f32.mrb[6].mxu1 }
 0x110   :  { %v3082_v4 = vpop.f32.mrb[7].mxu1 }
 0x115   :  { %v3938_v5 = vpop.f32.mrb[8].mxu1 }
 0x116   :  { %v3417_v25 = vpop.eup %3416  ;;  %v3097_v6 = vpop.f32.mrb[9].mxu1 }
 0x117   :  { %v294_v26 = vadd.f32 1.0, %v3417_v25  ;;  %v3419_v29 = vpop.eup %3418  ;;  %v519_v7 = vpop.f32.mrb[10].mxu1 }
 0x118   :  { %v3098_v8 = vpop.f32.mrb[11].mxu1 }
 0x119   :  { %3420 = vrcp.f32 %v294_v26 }
 0x123   :  { %v3421_v30 = vpop.eup %3420 }
 0x124   :  { %v298_v31 = vsel %vm121_vm4, %v3421_v30, %v3419_v29 }
 0x125   :  { %305 = vrot.lane.b32.xlu0 %v298_v31, %s3697_s23 }
 0x129   :  { %300 = vrot.lane.b32.xlu0 %v226_v32, %s3697_s23 }
 0x197   :  { %v306_v33 = vpop.permute.xlu0 %305 }
 0x198   :  { %v308_v34 = vmul.f32 %v306_v33, %v298_v31 }
 0x19a   :  { %310 = vrot.lane.b32.xlu1 %v308_v34, %s3697_s23 }
 0x19b   :  { %v301_v35 = vpop.permute.xlu0 %300 }
 0x19c   :  { %v303_v36 = vmul.f32 %v301_v35, %v298_v31 }
 0x20c   :  { %v311_v37 = vpop.permute.xlu1 %310 }
 0x20d   :  { %v3857_v38 = vadd.f32 %v311_v37, %v303_v36 }
 0x20f   :  { %3422 = vtanh.f32 %v3857_v38 }
 0x219   :  { %v3423_v52 = vpop.eup %3422 }
 0x21a   :  { %316 = vrot.lane.b32.xlu1 %v3423_v52, %s3697_s23 }
 0x28c   :  { %v317_v56 = vpop.permute.xlu1 %316 }
 0x28d   :  { %v319_v57 = vmul.f32 %v317_v56, %v298_v31 }
 0x28f   :  { %v320_v58 = vpack.c.bf16 %v319_v57, %v319_v57 }
 0x291   :  { %378 = vrot.lane.b32.xlu0 %v320_v58, %s3698_s21 }
 0x303   :  { %v379_v9 = vpop.permute.xlu0 %378 }
 0x304   :  { %3088 = vmatmul.mubr.msk.bf16.vlgmr.msra.gmra.mrb[8].mxu0 %vm71_vm1, %v379_v9  ;;  %3112 = vmatmul.mubr.msk.bf16.vlgmr.msra.gmra.mrb[12].mxu1 %vm71_vm1, %v379_v9 }
 0x305   :  { %3124 = vmatpush3.bf16.msra.mxu1 %v3873_v42  ;;  %3103 = vmatprep.mubr.msk.bf16.mxu0 %vm3696_vm0, %v3695_v0 }
 0x306   :  { %3125 = vmatprep.subr.bf16.mxu1 %v3695_v0  ;;  %3127 = vmatprep.mubr.msk.bf16.mxu1 %vm3696_vm0, %v3695_v0 }
 0x309   :  { %3126 = vmatpush3.bf16.msra.mxu1 %v3893_v49 }
 0x30a   :  { %3139 = vmatprep.subr.bf16.mxu1 %v3695_v0 }
 0x3d7   :  { %v429_v12 = vpop.f32.mrb[8].mxu0  ;;  %v646_v14 = vpop.f32.mrb[12].mxu1 }
 0x3d8   :  { %v430_v18 = vadd.f32 %v429_v12, %v371_v62  ;;  %v652_v19 = vadd.f32 %v646_v14, %v3844_v16  ;;  %v3089_v20 = vpop.f32.mrb[9].mxu0  ;;  %v3113_v21 = vpop.f32.mrb[13].mxu1  ;;  %v3974_v62 = vld [vmem:[%s4594_s7] sm:$0xff]  }
 0x3d9   :  { %v432_v22 = vpop.f32.mrb[10].mxu0  ;;  %v649_v23 = vpop.f32.mrb[14].mxu1  ;;  %3100 = vmatpush3.bf16.msra.mxu0 %v3974_v62 }
 0x3da   :  { %v435_v24 = vadd.f32 %v3950_v11, %v430_v18  ;;  %v653_v25 = vadd.f32 %v3846_v17, %v652_v19  ;;  %v3090_v26 = vpop.f32.mrb[11].mxu0  ;;  %v3114_v27 = vpop.f32.mrb[15].mxu1  ;;  %3101 = vmatprep.subr.bf16.mxu0 %v3695_v0  ;;  %v4016_v19 = vld [vmem:[%s4596_s9] ss:$0 sm:$0xff] }
 0x3dc   :  { %v2861_v29 = vmul.f32 -1.442695, %v435_v24  ;;  %v2870_v30 = vmul.f32 -1.442695, %v653_v25 }
 0x3de   :  { %3424 = vpow2.f32 %v2861_v29 }
 0x3df   :  { %3426 = vpow2.f32 %v2870_v30 }
 0x3e0   :  { %3428 = vtanh.f32 %v435_v24 }
 0x3e1   :  { %3430 = vtanh.f32 %v653_v25 }
 0x3e8   :  { %v3425_v31 = vpop.eup %3424 }
 0x3e9   :  { %v3427_v32 = vpop.eup %3426  ;;  %v439_v33 = vadd.f32 1.0, %v3425_v31 }
 0x3ea   :  { %v657_v34 = vadd.f32 1.0, %v3427_v32  ;;  %v3429_v16 = vpop.eup %3428 }
 0x3eb   :  { %3432 = vrcp.f32 %v439_v33  ;;  %v3431_v35 = vpop.eup %3430 }
 0x3ec   :  { %3434 = vrcp.f32 %v657_v34 }
 0x3f5   :  { %v3433_v36 = vpop.eup %3432 }
 0x3f6   :  { %v3435_v37 = vpop.eup %3434  ;;  %v443_v41 = vsel %vm121_vm4, %v3433_v36, %v3429_v16 }
 0x3f7   :  { %450 = vrot.lane.b32.xlu1 %v443_v41, %s3697_s23  ;;  %v661_v43 = vsel %vm121_vm4, %v3435_v37, %v3431_v35 }
 0x3f8   :  { %664 = vrot.lane.b32.xlu0 %v661_v43, %s3697_s23  ;;  %v662_v54 = vmul.f32 %v661_v43, %v3857_v38  ;;  %v3980_v38 = vld [vmem:[%s4594_s7 + $0x8] sm:$0xff]  }
 0x3f9   :  { %3102 = vmatpush3.bf16.msra.mxu0 %v3980_v38 }
 0x3fa   :  { %3115 = vmatprep.subr.bf16.mxu0 %v3695_v0 }
 0x3fb   :  { %445 = vrot.lane.b32.xlu1 %v228_v44, %s3697_s23 }
 0x469   :  { %v451_v45 = vpop.permute.xlu1 %450 }
 0x46a   :  { %v453_v46 = vmul.f32 %v451_v45, %v443_v41  ;;  %v665_v47 = vpop.permute.xlu0 %664 }
 0x46b   :  { %v667_v48 = vmul.f32 %v665_v47, %v661_v43 }
 0x46c   :  { %455 = vrot.lane.b32.xlu0 %v453_v46, %s3697_s23 }
 0x46d   :  { %669 = vrot.lane.b32.xlu1 %v667_v48, %s3697_s23  ;;  %v446_v50 = vpop.permute.xlu1 %445  ;;  %v230_v48 = vld [vmem:[#allocation8] sm:$0xff] }
 0x46e   :  { %v448_v52 = vmul.f32 %v446_v50, %v443_v41 }
 0x4de   :  { %v456_v55 = vpop.permute.xlu0 %455 }
 0x4df   :  { %v670_v56 = vpop.permute.xlu1 %669  ;;  %v3965_v57 = vadd.f32 %v456_v55, %v448_v52 }
 0x4e0   :  { %v3967_v58 = vadd.f32 %v670_v56, %v662_v54 }
 0x4e1   :  { %3436 = vtanh.f32 %v3965_v57 }
 0x4e2   :  { %3438 = vtanh.f32 %v3967_v58 }
 0x4eb   :  { %v3437_v1 = vpop.eup %3436 }
 0x4ec   :  { %v3439_v2 = vpop.eup %3438  ;;  %461 = vrot.lane.b32.xlu0 %v3437_v1, %s3697_s23 }
 0x4ed   :  { %675 = vrot.lane.b32.xlu1 %v3439_v2, %s3697_s23 }
 0x55e   :  { %v462_v4 = vpop.permute.xlu0 %461 }
 0x55f   :  { %v464_v6 = vmul.f32 %v462_v4, %v443_v41  ;;  %v676_v7 = vpop.permute.xlu1 %675 }
 0x560   :  { %v678_v8 = vmul.f32 %v676_v7, %v661_v43 }
 0x561   :  { %v465_v9 = vpack.c.bf16 %v464_v6, %v464_v6 }
 0x562   :  { %v679_v12 = vpack.c.bf16 %v678_v8, %v678_v8 }
 0x563   :  { %523 = vrot.lane.b32.xlu0 %v465_v9, %s3698_s21 }
 0x564   :  { %721 = vrot.lane.b32.xlu1 %v679_v12, %s3698_s21 }
 0x5d5   :  { %v524_v14 = vpop.permute.xlu0 %523 }
 0x5d6   :  { %v3989_v18 = vpop.permute.xlu1 %721  ;;  %3104 = vmatmul.mubr.msk.bf16.vlgmr.msra.gmra.mrb[12].mxu0 %vm71_vm1, %v524_v14 }
 0x5d7   :  { %3116 = vmatpush3.bf16.msra.mxu0 %v3863_v39  ;;  %3128 = vmatmul.mubr.msk.bf16.vlgmr.msra.gmra.mrb[16].mxu1 %vm71_vm1, %v3989_v18 }
 0x5d8   :  { %3117 = vmatprep.subr.bf16.mxu0 %v3695_v0  ;;  %3119 = vmatprep.mubr.msk.bf16.mxu0 %vm3696_vm0, %v3695_v0 }
 0x5d9   :  { %3140 = vmatpush3.bf16.msra.mxu1 %v3974_v62  ;;  %3143 = vmatprep.mubr.msk.bf16.mxu1 %vm3696_vm0, %v3695_v0 }
 0x5da   :  { %3141 = vmatprep.subr.bf16.mxu1 %v3695_v0 }
 0x5db   :  { %3118 = vmatpush3.bf16.msra.mxu0 %v3868_v40 }
 0x5dc   :  { %3131 = vmatprep.subr.bf16.mxu0 %v3695_v0 }
 0x5dd   :  { %3142 = vmatpush3.bf16.msra.mxu1 %v3980_v38 }
 0x5de   :  { %3120 = vmatmul.mubr.msk.bf16.vlgmr.msra.gmra.mrb[16].mxu0 %vm71_vm1, %v524_v14  ;;  %3155 = vmatprep.subr.bf16.mxu1 %v3695_v0 }
 0x5df   :  { %3132 = vmatpush3.bf16.msra.mxu0 %v3901_v51  ;;  %3135 = vmatprep.mubr.msk.bf16.mxu0 %vm3696_vm0, %v3695_v0 }
 0x5e0   :  { %3133 = vmatprep.subr.bf16.mxu0 %v3695_v0 }
 0x5e3   :  { %3134 = vmatpush3.bf16.msra.mxu0 %v3915_v53 }
 0x5e4   :  { %3147 = vmatprep.subr.bf16.mxu0 %v3695_v0 }
 0x6a9   :  { %v574_v20 = vpop.f32.mrb[12].mxu0 }
 0x6aa   :  { %v575_v21 = vadd.f32 %v574_v20, %v3938_v5  ;;  %v760_v22 = vpop.f32.mrb[16].mxu1  ;;  %v3105_v23 = vpop.f32.mrb[13].mxu0 }
 0x6ab   :  { %v3129_v24 = vpop.f32.mrb[17].mxu1  ;;  %v577_v25 = vpop.f32.mrb[14].mxu0 }
 0x6ac   :  { %v580_v26 = vadd.f32 %v4016_v19, %v575_v21  ;;  %v763_v27 = vpop.f32.mrb[18].mxu1  ;;  %v3106_v29 = vpop.f32.mrb[15].mxu0 }
 0x6ad   :  { %v3130_v30 = vpop.f32.mrb[19].mxu1 }
 0x6ae   :  { %v2868_v31 = vmul.f32 -1.442695, %v580_v26 }
 0x6b0   :  { %3440 = vpow2.f32 %v2868_v31 }
 0x6b1   :  { %v714_v32 = vpop.f32.mrb[16].mxu0 }
 0x6b2   :  { %v761_v33 = vadd.f32 %v760_v22, %v714_v32  ;;  %v3121_v34 = vpop.f32.mrb[17].mxu0 }
 0x6b3   :  { %v717_v16 = vpop.f32.mrb[18].mxu0 }
 0x6b4   :  { %v766_v35 = vadd.f32 %v3950_v11, %v761_v33  ;;  %v3122_v36 = vpop.f32.mrb[19].mxu0 }
 0x6b6   :  { %v2873_v37 = vmul.f32 -1.442695, %v766_v35 }
 0x6b8   :  { %3442 = vpow2.f32 %v2873_v37 }
 0x6b9   :  { %3444 = vtanh.f32 %v580_v26 }
 0x6ba   :  { %v3441_v5 = vpop.eup %3440 }
 0x6bb   :  { %v584_v41 = vadd.f32 1.0, %v3441_v5 }
 0x6bd   :  { %3446 = vrcp.f32 %v584_v41 }
 0x6be   :  { %3448 = vtanh.f32 %v766_v35 }
 0x6c2   :  { %v3443_v43 = vpop.eup %3442 }
 0x6c3   :  { %v770_v44 = vadd.f32 1.0, %v3443_v43  ;;  %v3445_v45 = vpop.eup %3444 }
 0x6c5   :  { %3450 = vrcp.f32 %v770_v44 }
 0x6c7   :  { %v3447_v46 = vpop.eup %3446 }
 0x6c8   :  { %v588_v47 = vsel %vm121_vm4, %v3447_v46, %v3445_v45  ;;  %v3449_v50 = vpop.eup %3448 }
 0x6c9   :  { %595 = vrot.lane.b32.xlu0 %v588_v47, %s3697_s23 }
 0x6cd   :  { %590 = vrot.lane.b32.xlu0 %v230_v48, %s3697_s23 }
 0x6cf   :  { %v3451_v52 = vpop.eup %3450 }
 0x6d0   :  { %v774_v54 = vsel %vm121_vm4, %v3451_v52, %v3449_v50 }
 0x6d1   :  { %777 = vrot.lane.b32.xlu1 %v774_v54, %s3697_s23  ;;  %v775_v9 = vmul.f32 %v774_v54, %v3965_v57 }
 0x73b   :  { %v596_v55 = vpop.permute.xlu0 %595 }
 0x73c   :  { %v598_v56 = vmul.f32 %v596_v55, %v588_v47 }
 0x73e   :  { %600 = vrot.lane.b32.xlu1 %v598_v56, %s3697_s23 }
 0x73f   :  { %v591_v4 = vpop.permute.xlu0 %590 }
 0x740   :  { %v593_v6 = vmul.f32 %v591_v4, %v588_v47 }
 0x743   :  { %v778_v1 = vpop.permute.xlu1 %777 }
 0x744   :  { %v780_v2 = vmul.f32 %v778_v1, %v774_v54 }
 0x746   :  { %782 = vrot.lane.b32.xlu0 %v780_v2, %s3697_s23 }
 0x7b0   :  { %v601_v7 = vpop.permute.xlu1 %600 }
 0x7b1   :  { %v4030_v8 = vadd.f32 %v601_v7, %v593_v6 }
 0x7b3   :  { %3452 = vtanh.f32 %v4030_v8 }
 0x7b8   :  { %v783_v12 = vpop.permute.xlu0 %782 }
 0x7b9   :  { %v4034_v14 = vadd.f32 %v783_v12, %v775_v9 }
 0x7bb   :  { %3454 = vtanh.f32 %v4034_v14 }
 0x7bd   :  { %v3453_v20 = vpop.eup %3452 }
 0x7be   :  { %606 = vrot.lane.b32.xlu1 %v3453_v20, %s3697_s23 }
 0x7c5   :  { %v3455_v21 = vpop.eup %3454 }
 0x7c6   :  { %788 = vrot.lane.b32.xlu0 %v3455_v21, %s3697_s23 }
 0x830   :  { %v607_v22 = vpop.permute.xlu1 %606 }
 0x831   :  { %v609_v23 = vmul.f32 %v607_v22, %v588_v47 }
 0x833   :  { %v793_v24 = vpack.c.bf16 %v609_v23, %v609_v23 }
 0x835   :  { %795 = vrot.lane.b32.xlu1 %v793_v24, %s3698_s21 }
 0x838   :  { %v789_v25 = vpop.permute.xlu0 %788 }
 0x839   :  { %v791_v26 = vmul.f32 %v789_v25, %v774_v54 }
 0x83b   :  { %v792_v27 = vpack.c.bf16 %v791_v26, %v791_v26 }
 0x83d   :  { %841 = vrot.lane.b32.xlu0 %v792_v27, %s3698_s21 }
 0x8a7   :  { %v796_v57 = vpop.permute.xlu1 %795 }
 0x8a8   :  { %3136 = vmatmul.mubr.msk.bf16.vlgmr.msra.gmra.mrb[20].mxu0 %vm71_vm1, %v796_v57 }
 0x8a9   :  { %3148 = vmatpush3.bf16.msra.mxu0 %v3811_v3  ;;  %3151 = vmatprep.mubr.msk.bf16.mxu0 %vm3696_vm0, %v3695_v0 }
 0x8aa   :  { %3149 = vmatprep.subr.bf16.mxu0 %v3695_v0 }
 0x8ad   :  { %3150 = vmatpush3.bf16.msra.mxu0 %v3829_v10 }
 0x8ae   :  { %3163 = vmatprep.subr.bf16.mxu0 %v3695_v0 }
 0x8af   :  { %v842_v29 = vpop.permute.xlu0 %841 }
 0x8b0   :  { %3144 = vmatmul.mubr.msk.bf16.vlgmr.msra.gmra.mrb[20].mxu1 %vm71_vm1, %v842_v29  ;;  %3152 = vmatmul.mubr.msk.bf16.vlgmr.msra.gmra.mrb[24].mxu0 %vm71_vm1, %v3989_v18 }
 0x8b1   :  { %3156 = vmatpush3.bf16.msra.mxu1 %v3863_v39  ;;  %3159 = vmatprep.mubr.msk.bf16.mxu1 %vm3696_vm0, %v3695_v0 }
 0x8b2   :  { %3157 = vmatprep.subr.bf16.mxu1 %v3695_v0  ;;  %3164 = vmatpush3.bf16.msra.mxu0 %v3873_v42 }
 0x8b3   :  { %3165 = vmatprep.subr.bf16.mxu0 %v3695_v0  ;;  %3167 = vmatprep.mubr.msk.bf16.mxu0 %vm3696_vm0, %v3695_v0 }
 0x8b5   :  { %3158 = vmatpush3.bf16.msra.mxu1 %v3868_v40 }
 0x8b6   :  { %3171 = vmatprep.subr.bf16.mxu1 %v3695_v0  ;;  %3166 = vmatpush3.bf16.msra.mxu0 %v3893_v49 }
 0x8b7   :  { %3179 = vmatprep.subr.bf16.mxu0 %v3695_v0 }
 0x8b8   :  { %3160 = vmatmul.mubr.msk.bf16.vlgmr.msra.gmra.mrb[24].mxu1 %vm71_vm1, %v842_v29 }
 0x8b9   :  { %3172 = vmatpush3.bf16.msra.mxu1 %v3901_v51  ;;  %3175 = vmatprep.mubr.msk.bf16.mxu1 %vm3696_vm0, %v3695_v0 }
 0x8ba   :  { %3173 = vmatprep.subr.bf16.mxu1 %v3695_v0 }
 0x8bd   :  { %3174 = vmatpush3.bf16.msra.mxu1 %v3915_v53 }
 0x8be   :  { %3187 = vmatprep.subr.bf16.mxu1 %v3695_v0 }
 0x97b   :  { %v834_v18 = vpop.f32.mrb[20].mxu0 }
 0x97c   :  { %v3137_v30 = vpop.f32.mrb[21].mxu0 }
 0x97d   :  { %v837_v31 = vpop.f32.mrb[22].mxu0 }
 0x97e   :  { %v3138_v32 = vpop.f32.mrb[23].mxu0 }
 0x983   :  { %v880_v33 = vpop.f32.mrb[20].mxu1  ;;  %v948_v34 = vpop.f32.mrb[24].mxu0 }
 0x984   :  { %v881_v16 = vadd.f32 %v880_v33, %v834_v18  ;;  %v954_v35 = vadd.f32 %v3840_v13, %v948_v34  ;;  %v3145_v36 = vpop.f32.mrb[21].mxu1  ;;  %v3153_v37 = vpop.f32.mrb[25].mxu0 }
 0x985   :  { %v883_v5 = vpop.f32.mrb[22].mxu1  ;;  %v951_v41 = vpop.f32.mrb[26].mxu0 }
 0x986   :  { %v886_v43 = vadd.f32 %v4016_v19, %v881_v16  ;;  %v955_v44 = vadd.f32 %v3846_v17, %v954_v35  ;;  %v3146_v45 = vpop.f32.mrb[23].mxu1  ;;  %v3154_v46 = vpop.f32.mrb[27].mxu0 }
 0x988   :  { %v2876_v47 = vmul.f32 -1.442695, %v886_v43  ;;  %v2878_v48 = vmul.f32 -1.442695, %v955_v44 }
 0x98a   :  { %3456 = vpow2.f32 %v2876_v47 }
 0x98b   :  { %3458 = vpow2.f32 %v2878_v48  ;;  %v4073_v50 = vpop.f32.mrb[24].mxu1 }
 0x98c   :  { %v3161_v52 = vpop.f32.mrb[25].mxu1  ;;  %3460 = vtanh.f32 %v886_v43 }
 0x98d   :  { %v1019_v54 = vpop.f32.mrb[26].mxu1  ;;  %3462 = vtanh.f32 %v955_v44 }
 0x98e   :  { %v3162_v55 = vpop.f32.mrb[27].mxu1 }
 0x994   :  { %v3457_v13 = vpop.eup %3456 }
 0x995   :  { %v3459_v56 = vpop.eup %3458  ;;  %v890_v1 = vadd.f32 1.0, %v3457_v13 }
 0x996   :  { %v959_v2 = vadd.f32 1.0, %v3459_v56  ;;  %v3461_v4 = vpop.eup %3460 }
 0x997   :  { %3464 = vrcp.f32 %v890_v1  ;;  %v3463_v6 = vpop.eup %3462 }
 0x998   :  { %3466 = vrcp.f32 %v959_v2 }
 0x9a1   :  { %v3465_v7 = vpop.eup %3464 }
 0x9a2   :  { %v3467_v9 = vpop.eup %3466  ;;  %v894_v12 = vsel %vm121_vm4, %v3465_v7, %v3461_v4 }
 0x9a3   :  { %v963_v20 = vsel %vm121_vm4, %v3467_v9, %v3463_v6  ;;  %897 = vrot.lane.b32.xlu1 %v894_v12, %s3697_s23  ;;  %v895_v25 = vmul.f32 %v894_v12, %v4030_v8 }
 0x9a4   :  { %966 = vrot.lane.b32.xlu0 %v963_v20, %s3697_s23  ;;  %v964_v26 = vmul.f32 %v963_v20, %v3967_v58 }
 0xa15   :  { %v898_v21 = vpop.permute.xlu1 %897 }
 0xa16   :  { %v967_v22 = vpop.permute.xlu0 %966  ;;  %v900_v23 = vmul.f32 %v898_v21, %v894_v12 }
 0xa17   :  { %v969_v24 = vmul.f32 %v967_v22, %v963_v20 }
 0xa18   :  { %902 = vrot.lane.b32.xlu1 %v900_v23, %s3697_s23 }
 0xa19   :  { %971 = vrot.lane.b32.xlu0 %v969_v24, %s3697_s23 }
 0xa8a   :  { %v903_v27 = vpop.permute.xlu1 %902 }
 0xa8b   :  { %v972_v57 = vpop.permute.xlu0 %971  ;;  %v4085_v29 = vadd.f32 %v903_v27, %v895_v25 }
 0xa8c   :  { %v4087_v18 = vadd.f32 %v972_v57, %v964_v26 }
 0xa8d   :  { %3468 = vtanh.f32 %v4085_v29 }
 0xa8e   :  { %3470 = vtanh.f32 %v4087_v18 }
 0xa97   :  { %v3469_v30 = vpop.eup %3468 }
 0xa98   :  { %v3471_v31 = vpop.eup %3470  ;;  %908 = vrot.lane.b32.xlu1 %v3469_v30, %s3697_s23 }
 0xa99   :  { %977 = vrot.lane.b32.xlu0 %v3471_v31, %s3697_s23 }
 0xb0a   :  { %v909_v32 = vpop.permute.xlu1 %908 }
 0xb0b   :  { %v978_v8 = vpop.permute.xlu0 %977  ;;  %v911_v33 = vmul.f32 %v909_v32, %v894_v12 }
 0xb0c   :  { %v980_v58 = vmul.f32 %v978_v8, %v963_v20 }
 0xb0d   :  { %v1095_v34 = vpack.c.bf16 %v911_v33, %v911_v33 }
 0xb0e   :  { %v981_v16 = vpack.c.bf16 %v980_v58, %v980_v58 }
 0xb0f   :  { %1097 = vrot.lane.b32.xlu0 %v1095_v34, %s3698_s21 }
 0xb10   :  { %1023 = vrot.lane.b32.xlu1 %v981_v16, %s3698_s21 }
 0xb81   :  { %v1098_v35 = vpop.permute.xlu0 %1097 }
 0xb82   :  { %v1024_v36 = vpop.permute.xlu1 %1023  ;;  %3176 = vmatmul.mubr.msk.bf16.vlgmr.msra.gmra.mrb[28].mxu1 %vm71_vm1, %v1098_v35 }
 0xb83   :  { %3168 = vmatmul.mubr.msk.bf16.vlgmr.msra.gmra.mrb[28].mxu0 %vm71_vm1, %v1024_v36  ;;  %3188 = vmatpush3.bf16.msra.mxu1 %v3811_v3 }
 0xb84   :  { %3189 = vmatprep.subr.bf16.mxu1 %v3695_v0  ;;  %3191 = vmatprep.mubr.msk.bf16.mxu1 %vm3696_vm0, %v3695_v0 }
 0xb85   :  { %3180 = vmatpush3.bf16.msra.mxu0 %v3974_v62  ;;  %3183 = vmatprep.mubr.msk.bf16.mxu0 %vm3696_vm0, %v3695_v0 }
 0xb86   :  { %3181 = vmatprep.subr.bf16.mxu0 %v3695_v0 }
 0xb87   :  { %3190 = vmatpush3.bf16.msra.mxu1 %v3829_v10 }
 0xb88   :  { %3203 = vmatprep.subr.bf16.mxu1 %v3695_v0 }
 0xb89   :  { %3182 = vmatpush3.bf16.msra.mxu0 %v3980_v38 }
 0xb8a   :  { %3192 = vmatmul.mubr.msk.bf16.vlgmr.msra.gmra.mrb[32].mxu1 %vm71_vm1, %v1024_v36  ;;  %3195 = vmatprep.subr.bf16.mxu0 %v3695_v0 }
 0xb8b   :  { %3204 = vmatpush3.bf16.msra.mxu1 %v3873_v42  ;;  %3207 = vmatprep.mubr.msk.bf16.mxu1 %vm3696_vm0, %v3695_v0 }
 0xb8c   :  { %3205 = vmatprep.subr.bf16.mxu1 %v3695_v0 }
 0xb8f   :  { %3206 = vmatpush3.bf16.msra.mxu1 %v3893_v49 }
 0xb90   :  { %3219 = vmatprep.subr.bf16.mxu1 %v3695_v0 }
 0xc55   :  { %v4116_v3 = vpop.f32.mrb[28].mxu1 }
 0xc56   :  { %v1062_v10 = vpop.f32.mrb[28].mxu0  ;;  %v3177_v37 = vpop.f32.mrb[29].mxu1 }
 0xc57   :  { %v1063_v5 = vadd.f32 %v1062_v10, %v4073_v50  ;;  %v3169_v41 = vpop.f32.mrb[29].mxu0  ;;  %v1139_v43 = vpop.f32.mrb[30].mxu1 }
 0xc58   :  { %v1065_v44 = vpop.f32.mrb[30].mxu0  ;;  %v3178_v45 = vpop.f32.mrb[31].mxu1 }
 0xc59   :  { %v1068_v46 = vadd.f32 %v3950_v11, %v1063_v5  ;;  %v3170_v47 = vpop.f32.mrb[31].mxu0 }
 0xc5b   :  { %v2881_v48 = vmul.f32 -1.442695, %v1068_v46 }
 0xc5d   :  { %3472 = vpow2.f32 %v2881_v48  ;;  %v1250_v52 = vpop.f32.mrb[32].mxu1 }
 0xc5e   :  { %v1256_v54 = vadd.f32 %v3842_v15, %v1250_v52  ;;  %v3193_v55 = vpop.f32.mrb[33].mxu1 }
 0xc5f   :  { %v1253_v13 = vpop.f32.mrb[34].mxu1 }
 0xc60   :  { %v1257_v56 = vadd.f32 %v3846_v17, %v1256_v54  ;;  %v3194_v1 = vpop.f32.mrb[35].mxu1 }
 0xc62   :  { %v2886_v2 = vmul.f32 -1.442695, %v1257_v56 }
 0xc64   :  { %3474 = vpow2.f32 %v2886_v2 }
 0xc65   :  { %3476 = vtanh.f32 %v1068_v46 }
 0xc67   :  { %v3473_v50 = vpop.eup %3472 }
 0xc68   :  { %v1072_v4 = vadd.f32 1.0, %v3473_v50 }
 0xc6a   :  { %3478 = vrcp.f32 %v1072_v4 }
 0xc6b   :  { %3480 = vtanh.f32 %v1257_v56 }
 0xc6e   :  { %v3475_v6 = vpop.eup %3474 }
 0xc6f   :  { %v1261_v7 = vadd.f32 1.0, %v3475_v6  ;;  %v3477_v9 = vpop.eup %3476 }
 0xc71   :  { %3482 = vrcp.f32 %v1261_v7 }
 0xc74   :  { %v3479_v12 = vpop.eup %3478 }
 0xc75   :  { %v1076_v15 = vsel %vm121_vm4, %v3479_v12, %v3477_v9  ;;  %v3481_v20 = vpop.eup %3480 }
 0xc76   :  { %1079 = vrot.lane.b32.xlu1 %v1076_v15, %s3697_s23  ;;  %v1077_v26 = vmul.f32 %v1076_v15, %v4034_v14 }
 0xc7b   :  { %v3483_v17 = vpop.eup %3482 }
 0xc7c   :  { %v1265_v21 = vsel %vm121_vm4, %v3483_v17, %v3481_v20 }
 0xc7d   :  { %1268 = vrot.lane.b32.xlu0 %v1265_v21, %s3697_s23  ;;  %v1266_v30 = vmul.f32 %v1265_v21, %v4087_v18 }
 0xce8   :  { %v1080_v22 = vpop.permute.xlu1 %1079 }
 0xce9   :  { %v1082_v23 = vmul.f32 %v1080_v22, %v1076_v15 }
 0xceb   :  { %1084 = vrot.lane.b32.xlu1 %v1082_v23, %s3697_s23 }
 0xcef   :  { %v1269_v24 = vpop.permute.xlu0 %1268 }
 0xcf0   :  { %v1271_v25 = vmul.f32 %v1269_v24, %v1265_v21 }
 0xcf2   :  { %1273 = vrot.lane.b32.xlu0 %v1271_v25, %s3697_s23 }
 0xd5d   :  { %v1085_v27 = vpop.permute.xlu1 %1084 }
 0xd5e   :  { %v4131_v57 = vadd.f32 %v1085_v27, %v1077_v26 }
 0xd60   :  { %3484 = vtanh.f32 %v4131_v57 }
 0xd64   :  { %v1274_v31 = vpop.permute.xlu0 %1273 }
 0xd65   :  { %v4135_v32 = vadd.f32 %v1274_v31, %v1266_v30 }
 0xd67   :  { %3486 = vtanh.f32 %v4135_v32 }
 0xd6a   :  { %v3485_v8 = vpop.eup %3484 }
 0xd6b   :  { %1090 = vrot.lane.b32.xlu1 %v3485_v8, %s3697_s23 }
 0xd71   :  { %v3487_v33 = vpop.eup %3486 }
 0xd72   :  { %1279 = vrot.lane.b32.xlu0 %v3487_v33, %s3697_s23 }
 0xddd   :  { %v1091_v58 = vpop.permute.xlu1 %1090 }
 0xdde   :  { %v1093_v14 = vmul.f32 %v1091_v58, %v1076_v15 }
 0xde0   :  { %v1094_v34 = vpack.c.bf16 %v1093_v14, %v1093_v14 }
 0xde2   :  { %1143 = vrot.lane.b32.xlu1 %v1094_v34, %s3698_s21 }
 0xde4   :  { %v1280_v16 = vpop.permute.xlu0 %1279 }
 0xde5   :  { %v1282_v35 = vmul.f32 %v1280_v16, %v1265_v21 }
 0xde7   :  { %v1283_v36 = vpack.c.bf16 %v1282_v35, %v1282_v35 }
 0xde9   :  { %1325 = vrot.lane.b32.xlu0 %v1283_v36, %s3698_s21 }
 0xe54   :  { %v1144_v18 = vpop.permute.xlu1 %1143 }
 0xe55   :  { %3184 = vmatmul.mubr.msk.bf16.vlgmr.msra.gmra.mrb[32].mxu0 %vm71_vm1, %v1144_v18 }
 0xe56   :  { %3196 = vmatpush3.bf16.msra.mxu0 %v3863_v39  ;;  %3199 = vmatprep.mubr.msk.bf16.mxu0 %vm3696_vm0, %v3695_v0 }
 0xe57   :  { %3197 = vmatprep.subr.bf16.mxu0 %v3695_v0 }
 0xe5a   :  { %3198 = vmatpush3.bf16.msra.mxu0 %v3868_v40 }
 0xe5b   :  { %v4148_v10 = vpop.permute.xlu0 %1325  ;;  %3211 = vmatprep.subr.bf16.mxu0 %v3695_v0 }
 0xe5c   :  { %3208 = vmatmul.mubr.msk.bf16.vlgmr.msra.gmra.mrb[36].mxu1 %vm71_vm1, %v4148_v10 }
 0xe5d   :  { %3200 = vmatmul.mubr.msk.bf16.vlgmr.msra.gmra.mrb[36].mxu0 %vm71_vm1, %v1144_v18  ;;  %3220 = vmatpush3.bf16.msra.mxu1 %v3974_v62 }
 0xe5e   :  { %3212 = vmatpush3.bf16.msra.mxu0 %v3901_v51  ;;  %3215 = vmatprep.mubr.msk.bf16.mxu0 %vm3696_vm0, %v3695_v0 }
 0xe5f   :  { %3213 = vmatprep.subr.bf16.mxu0 %v3695_v0  ;;  %3221 = vmatprep.subr.bf16.mxu1 %v3695_v0 }
 0xe60   :  { %3223 = vmatprep.mubr.msk.bf16.mxu1 %vm3696_vm0, %v3695_v0 }
 0xe61   :  { %3222 = vmatpush3.bf16.msra.mxu1 %v3980_v38 }
 0xe62   :  { %3214 = vmatpush3.bf16.msra.mxu0 %v3915_v53  ;;  %3235 = vmatprep.subr.bf16.mxu1 %v3695_v0 }
 0xe63   :  { %3227 = vmatprep.subr.bf16.mxu0 %v3695_v0 }
 0xf28   :  { %v1182_v37 = vpop.f32.mrb[32].mxu0 }
 0xf29   :  { %v1183_v5 = vadd.f32 %v1182_v37, %v4116_v3  ;;  %v3185_v41 = vpop.f32.mrb[33].mxu0  ;;  %v4193_v37 = vld [vmem:[%s4589_s2] sm:$0xff]  }
 0xf2a   :  { %v1185_v43 = vpop.f32.mrb[34].mxu0 }
 0xf2b   :  { %v1188_v44 = vadd.f32 %v4016_v19, %v1183_v5  ;;  %v3186_v45 = vpop.f32.mrb[35].mxu0  ;;  %v4202_v5 = vld [vmem:[%s4589_s2 + $0x8] sm:$0xff]  }
 0xf2d   :  { %v2884_v46 = vmul.f32 -1.442695, %v1188_v44 }
 0xf2f   :  { %3488 = vpow2.f32 %v2884_v46  ;;  %v1364_v47 = vpop.f32.mrb[36].mxu1 }
 0xf30   :  { %v1318_v48 = vpop.f32.mrb[36].mxu0  ;;  %v3209_v52 = vpop.f32.mrb[37].mxu1 }
 0xf31   :  { %v1365_v54 = vadd.f32 %v1364_v47, %v1318_v48  ;;  %v3201_v55 = vpop.f32.mrb[37].mxu0  ;;  %v1367_v13 = vpop.f32.mrb[38].mxu1 }
 0xf32   :  { %v1321_v56 = vpop.f32.mrb[38].mxu0  ;;  %v3210_v1 = vpop.f32.mrb[39].mxu1 }
 0xf33   :  { %v1370_v2 = vadd.f32 %v3950_v11, %v1365_v54  ;;  %v3202_v50 = vpop.f32.mrb[39].mxu0  ;;  %v4230_v54 = vld [vmem:[#allocation9] ss:$0 sm:$0xff] }
 0xf35   :  { %v2889_v4 = vmul.f32 -1.442695, %v1370_v2 }
 0xf37   :  { %3490 = vpow2.f32 %v2889_v4 }
 0xf38   :  { %3492 = vtanh.f32 %v1188_v44 }
 0xf39   :  { %v3489_v3 = vpop.eup %3488 }
 0xf3a   :  { %v1192_v6 = vadd.f32 1.0, %v3489_v3 }
 0xf3c   :  { %3494 = vrcp.f32 %v1192_v6 }
 0xf3d   :  { %3496 = vtanh.f32 %v1370_v2 }
 0xf41   :  { %v3491_v7 = vpop.eup %3490 }
 0xf42   :  { %v1374_v9 = vadd.f32 1.0, %v3491_v7  ;;  %v3493_v12 = vpop.eup %3492 }
 0xf44   :  { %3498 = vrcp.f32 %v1374_v9 }
 0xf46   :  { %v3495_v15 = vpop.eup %3494 }
 0xf47   :  { %v1196_v20 = vsel %vm121_vm4, %v3495_v15, %v3493_v12  ;;  %v3497_v17 = vpop.eup %3496 }
 0xf48   :  { %1199 = vrot.lane.b32.xlu1 %v1196_v20, %s3697_s23  ;;  %v1197_v26 = vmul.f32 %v1196_v20, %v4085_v29 }
 0xf4e   :  { %v3499_v11 = vpop.eup %3498 }
 0xf4f   :  { %v1378_v21 = vsel %vm121_vm4, %v3499_v11, %v3497_v17 }
 0xf50   :  { %1381 = vrot.lane.b32.xlu0 %v1378_v21, %s3697_s23  ;;  %v1379_v31 = vmul.f32 %v1378_v21, %v4131_v57 }
 0xfba   :  { %v1200_v22 = vpop.permute.xlu1 %1199 }
 0xfbb   :  { %v1202_v23 = vmul.f32 %v1200_v22, %v1196_v20 }
 0xfbd   :  { %1204 = vrot.lane.b32.xlu1 %v1202_v23, %s3697_s23 }
 0xfc2   :  { %v1382_v24 = vpop.permute.xlu0 %1381 }
 0xfc3   :  { %v1384_v25 = vmul.f32 %v1382_v24, %v1378_v21 }
 0xfc5   :  { %1386 = vrot.lane.b32.xlu0 %v1384_v25, %s3697_s23 }
0x102f   :  { %v1205_v27 = vpop.permute.xlu1 %1204 }
0x1030   :  { %v4178_v30 = vadd.f32 %v1205_v27, %v1197_v26 }
0x1032   :  { %3500 = vtanh.f32 %v4178_v30 }
0x1037   :  { %v1387_v8 = vpop.permute.xlu0 %1386 }
0x1038   :  { %v4182_v33 = vadd.f32 %v1387_v8, %v1379_v31 }
0x103a   :  { %3502 = vtanh.f32 %v4182_v33 }
0x103c   :  { %v3501_v58 = vpop.eup %3500 }
0x103d   :  { %1210 = vrot.lane.b32.xlu1 %v3501_v58, %s3697_s23 }
0x1044   :  { %v3503_v14 = vpop.eup %3502 }
0x1045   :  { %1392 = vrot.lane.b32.xlu0 %v3503_v14, %s3697_s23 }
0x10af   :  { %v1211_v34 = vpop.permute.xlu1 %1210 }
0x10b0   :  { %v1213_v29 = vmul.f32 %v1211_v34, %v1196_v20 }
0x10b2   :  { %v1397_v16 = vpack.c.bf16 %v1213_v29, %v1213_v29 }
0x10b4   :  { %1399 = vrot.lane.b32.xlu1 %v1397_v16, %s3698_s21 }
0x10b7   :  { %v1393_v35 = vpop.permute.xlu0 %1392 }
0x10b8   :  { %v1395_v36 = vmul.f32 %v1393_v35, %v1378_v21 }
0x10ba   :  { %v1396_v18 = vpack.c.bf16 %v1395_v36, %v1395_v36 }
0x10bc   :  { %1445 = vrot.lane.b32.xlu0 %v1396_v18, %s3698_s21 }
0x1126   :  { %v1400_v57 = vpop.permute.xlu1 %1399 }
0x1127   :  { %3216 = vmatmul.mubr.msk.bf16.vlgmr.msra.gmra.mrb[40].mxu0 %vm71_vm1, %v1400_v57 }
0x1128   :  { %3228 = vmatpush3.bf16.msra.mxu0 %v4193_v37  ;;  %3231 = vmatprep.mubr.msk.bf16.mxu0 %vm3696_vm0, %v3695_v0 }
0x1129   :  { %3229 = vmatprep.subr.bf16.mxu0 %v3695_v0 }
0x112c   :  { %3230 = vmatpush3.bf16.msra.mxu0 %v4202_v5 }
0x112d   :  { %3243 = vmatprep.subr.bf16.mxu0 %v3695_v0 }
0x112e   :  { %v1446_v41 = vpop.permute.xlu0 %1445 }
0x112f   :  { %3224 = vmatmul.mubr.msk.bf16.vlgmr.msra.gmra.mrb[40].mxu1 %vm71_vm1, %v1446_v41  ;;  %3232 = vmatmul.mubr.msk.bf16.vlgmr.msra.gmra.mrb[44].mxu0 %vm71_vm1, %v4148_v10 }
0x1130   :  { %3236 = vmatpush3.bf16.msra.mxu1 %v3863_v39  ;;  %3239 = vmatprep.mubr.msk.bf16.mxu1 %vm3696_vm0, %v3695_v0 }
0x1131   :  { %3237 = vmatprep.subr.bf16.mxu1 %v3695_v0  ;;  %3244 = vmatpush3.bf16.msra.mxu0 %v3873_v42 }
0x1132   :  { %3245 = vmatprep.subr.bf16.mxu0 %v3695_v0  ;;  %3247 = vmatprep.mubr.msk.bf16.mxu0 %vm3696_vm0, %v3695_v0 }
0x1134   :  { %3238 = vmatpush3.bf16.msra.mxu1 %v3868_v40 }
0x1135   :  { %3251 = vmatprep.subr.bf16.mxu1 %v3695_v0  ;;  %3246 = vmatpush3.bf16.msra.mxu0 %v3893_v49 }
0x1136   :  { %3259 = vmatprep.subr.bf16.mxu0 %v3695_v0 }
0x1137   :  { %3240 = vmatmul.mubr.msk.bf16.vlgmr.msra.gmra.mrb[44].mxu1 %vm71_vm1, %v1446_v41  ;;  %v4273_v41 = vld [vmem:[%s4591_s4] sm:$0xff]  }
0x1138   :  { %3252 = vmatpush3.bf16.msra.mxu1 %v3901_v51  ;;  %3255 = vmatprep.mubr.msk.bf16.mxu1 %vm3696_vm0, %v3695_v0 }
0x1139   :  { %3253 = vmatprep.subr.bf16.mxu1 %v3695_v0 }
0x113c   :  { %3254 = vmatpush3.bf16.msra.mxu1 %v3915_v53 }
0x113d   :  { %3267 = vmatprep.subr.bf16.mxu1 %v3695_v0 }
0x11fa   :  { %v1438_v39 = vpop.f32.mrb[40].mxu0 }
0x11fb   :  { %v3217_v40 = vpop.f32.mrb[41].mxu0 }
0x11fc   :  { %v1441_v42 = vpop.f32.mrb[42].mxu0 }
0x11fd   :  { %v3218_v10 = vpop.f32.mrb[43].mxu0 }
0x1202   :  { %v1484_v49 = vpop.f32.mrb[40].mxu1  ;;  %v1552_v43 = vpop.f32.mrb[44].mxu0 }
0x1203   :  { %v1485_v44 = vadd.f32 %v1484_v49, %v1438_v39  ;;  %v1558_v45 = vadd.f32 %v1552_v43, %v3932_v60  ;;  %v3225_v46 = vpop.f32.mrb[41].mxu1  ;;  %v3233_v51 = vpop.f32.mrb[45].mxu0 }
0x1204   :  { %v1487_v47 = vpop.f32.mrb[42].mxu1  ;;  %v1555_v48 = vpop.f32.mrb[46].mxu0 }
0x1205   :  { %v1490_v52 = vadd.f32 %v4016_v19, %v1485_v44  ;;  %v1559_v53 = vadd.f32 %v4230_v54, %v1558_v45  ;;  %v3226_v55 = vpop.f32.mrb[43].mxu1  ;;  %v3234_v13 = vpop.f32.mrb[47].mxu0  ;;  %v4289_v45 = vld [vmem:[#allocation12] ss:$0 sm:$0xff] }
0x1207   :  { %v2892_v56 = vmul.f32 -1.442695, %v1490_v52  ;;  %v2894_v1 = vmul.f32 -1.442695, %v1559_v53 }
0x1209   :  { %3504 = vpow2.f32 %v2892_v56 }
0x120a   :  { %3506 = vpow2.f32 %v2894_v1  ;;  %v4233_v2 = vpop.f32.mrb[44].mxu1 }
0x120b   :  { %v3241_v50 = vpop.f32.mrb[45].mxu1  ;;  %3508 = vtanh.f32 %v1490_v52 }
0x120c   :  { %v1623_v60 = vpop.f32.mrb[46].mxu1  ;;  %3510 = vtanh.f32 %v1559_v53 }
0x120d   :  { %v3242_v4 = vpop.f32.mrb[47].mxu1 }
0x1213   :  { %v3505_v3 = vpop.eup %3504 }
0x1214   :  { %v3507_v6 = vpop.eup %3506  ;;  %v1494_v7 = vadd.f32 1.0, %v3505_v3 }
0x1215   :  { %v1563_v19 = vadd.f32 1.0, %v3507_v6  ;;  %v3509_v9 = vpop.eup %3508 }
0x1216   :  { %3512 = vrcp.f32 %v1494_v7  ;;  %v3511_v12 = vpop.eup %3510 }
0x1217   :  { %3514 = vrcp.f32 %v1563_v19 }
0x1220   :  { %v3513_v15 = vpop.eup %3512 }
0x1221   :  { %v3515_v20 = vpop.eup %3514  ;;  %v1498_v17 = vsel %vm121_vm4, %v3513_v15, %v3509_v9 }
0x1222   :  { %v1567_v11 = vsel %vm121_vm4, %v3515_v20, %v3511_v12  ;;  %1501 = vrot.lane.b32.xlu1 %v1498_v17, %s3697_s23  ;;  %v1499_v25 = vmul.f32 %v1498_v17, %v4178_v30 }
0x1223   :  { %1570 = vrot.lane.b32.xlu0 %v1567_v11, %s3697_s23  ;;  %v1568_v26 = vmul.f32 %v1567_v11, %v4135_v32 }
0x1294   :  { %v1502_v21 = vpop.permute.xlu1 %1501 }
0x1295   :  { %v1571_v22 = vpop.permute.xlu0 %1570  ;;  %v1504_v23 = vmul.f32 %v1502_v21, %v1498_v17 }
0x1296   :  { %v1573_v24 = vmul.f32 %v1571_v22, %v1567_v11 }
0x1297   :  { %1506 = vrot.lane.b32.xlu1 %v1504_v23, %s3697_s23 }
0x1298   :  { %1575 = vrot.lane.b32.xlu0 %v1573_v24, %s3697_s23 }
0x1309   :  { %v1507_v27 = vpop.permute.xlu1 %1506 }
0x130a   :  { %v1576_v31 = vpop.permute.xlu0 %1575  ;;  %v4245_v8 = vadd.f32 %v1507_v27, %v1499_v25 }
0x130b   :  { %v4247_v58 = vadd.f32 %v1576_v31, %v1568_v26 }
0x130c   :  { %3516 = vtanh.f32 %v4245_v8 }
0x130d   :  { %3518 = vtanh.f32 %v4247_v58 }
0x1316   :  { %v3517_v14 = vpop.eup %3516 }
0x1317   :  { %v3519_v34 = vpop.eup %3518  ;;  %1512 = vrot.lane.b32.xlu1 %v3517_v14, %s3697_s23 }
0x1318   :  { %1581 = vrot.lane.b32.xlu0 %v3519_v34, %s3697_s23 }
0x1389   :  { %v1513_v29 = vpop.permute.xlu1 %1512 }
0x138a   :  { %v1582_v30 = vpop.permute.xlu0 %1581  ;;  %v1515_v16 = vmul.f32 %v1513_v29, %v1498_v17 }
0x138b   :  { %v1584_v32 = vmul.f32 %v1582_v30, %v1567_v11 }
0x138c   :  { %v1699_v35 = vpack.c.bf16 %v1515_v16, %v1515_v16  ;;  %v4318_v16 = vld [vmem:[%s4592_s5] sm:$0xff]  }
0x138d   :  { %v1585_v36 = vpack.c.bf16 %v1584_v32, %v1584_v32  ;;  %v4327_v32 = vld [vmem:[%s4592_s5 + $0x8] sm:$0xff]  }
0x138e   :  { %1701 = vrot.lane.b32.xlu0 %v1699_v35, %s3698_s21 }
0x138f   :  { %1627 = vrot.lane.b32.xlu1 %v1585_v36, %s3698_s21  ;;  %v4339_v36 = vld [vmem:[%s4594_s7] sm:$0xff]  }
0x1400   :  { %v1702_v18 = vpop.permute.xlu0 %1701 }
0x1401   :  { %v1628_v57 = vpop.permute.xlu1 %1627  ;;  %3256 = vmatmul.mubr.msk.bf16.vlgmr.msra.gmra.mrb[48].mxu1 %vm71_vm1, %v1702_v18  ;;  %v4345_v18 = vld [vmem:[%s4595_s8] sm:$0xff]  }
0x1402   :  { %3248 = vmatmul.mubr.msk.bf16.vlgmr.msra.gmra.mrb[48].mxu0 %vm71_vm1, %v1628_v57  ;;  %3268 = vmatpush3.bf16.msra.mxu1 %v4193_v37 }
0x1403   :  { %3269 = vmatprep.subr.bf16.mxu1 %v3695_v0  ;;  %3271 = vmatprep.mubr.msk.bf16.mxu1 %vm3696_vm0, %v3695_v0 }
0x1404   :  { %3260 = vmatpush3.bf16.msra.mxu0 %v3974_v62  ;;  %3263 = vmatprep.mubr.msk.bf16.mxu0 %vm3696_vm0, %v3695_v0  ;;  %v4282_v62 = vld [vmem:[%s4591_s4 + $0x8] sm:$0xff]  }
0x1405   :  { %3261 = vmatprep.subr.bf16.mxu0 %v3695_v0 }
0x1406   :  { %3270 = vmatpush3.bf16.msra.mxu1 %v4202_v5 }
0x1407   :  { %3283 = vmatprep.subr.bf16.mxu1 %v3695_v0 }
0x1408   :  { %3262 = vmatpush3.bf16.msra.mxu0 %v3980_v38 }
0x1409   :  { %3272 = vmatmul.mubr.msk.bf16.vlgmr.msra.gmra.mrb[52].mxu1 %vm71_vm1, %v1628_v57  ;;  %3275 = vmatprep.subr.bf16.mxu0 %v3695_v0  ;;  %v4357_v57 = vld [vmem:[%s4594_s7 + $0x8] sm:$0xff]  }
0x140a   :  { %3284 = vmatpush3.bf16.msra.mxu1 %v4273_v41  ;;  %3287 = vmatprep.mubr.msk.bf16.mxu1 %vm3696_vm0, %v3695_v0 }
0x140b   :  { %3285 = vmatprep.subr.bf16.mxu1 %v3695_v0 }
0x140e   :  { %3286 = vmatpush3.bf16.msra.mxu1 %v4282_v62 }
0x140f   :  { %3299 = vmatprep.subr.bf16.mxu1 %v3695_v0 }
0x14d4   :  { %v4286_v38 = vpop.f32.mrb[48].mxu1 }
0x14d5   :  { %v1666_v39 = vpop.f32.mrb[48].mxu0  ;;  %v3257_v40 = vpop.f32.mrb[49].mxu1 }
0x14d6   :  { %v1667_v42 = vadd.f32 %v1666_v39, %v4233_v2  ;;  %v3249_v10 = vpop.f32.mrb[49].mxu0  ;;  %v1743_v49 = vpop.f32.mrb[50].mxu1  ;;  %v4363_v39 = vld [vmem:[%s4595_s8 + $0x8] sm:$0xff]  }
0x14d7   :  { %v1669_v43 = vpop.f32.mrb[50].mxu0  ;;  %v3258_v44 = vpop.f32.mrb[51].mxu1 }
0x14d8   :  { %v1672_v46 = vadd.f32 %v4289_v45, %v1667_v42  ;;  %v3250_v51 = vpop.f32.mrb[51].mxu0  ;;  %v4372_v43 = vld [vmem:[%s4596_s9] ss:$0 sm:$0xff] }
0x14da   :  { %v2897_v47 = vmul.f32 -1.442695, %v1672_v46 }
0x14dc   :  { %3520 = vpow2.f32 %v2897_v47  ;;  %v1854_v48 = vpop.f32.mrb[52].mxu1 }
0x14dd   :  { %v1860_v52 = vadd.f32 %v1854_v48, %v3936_v63  ;;  %v3273_v53 = vpop.f32.mrb[53].mxu1 }
0x14de   :  { %v1857_v55 = vpop.f32.mrb[54].mxu1 }
0x14df   :  { %v1861_v13 = vadd.f32 %v4230_v54, %v1860_v52  ;;  %v3274_v56 = vpop.f32.mrb[55].mxu1 }
0x14e1   :  { %v2902_v1 = vmul.f32 -1.442695, %v1861_v13 }
0x14e3   :  { %3522 = vpow2.f32 %v2902_v1 }
0x14e4   :  { %3524 = vtanh.f32 %v1672_v46 }
0x14e6   :  { %v3521_v2 = vpop.eup %3520 }
0x14e7   :  { %v1676_v50 = vadd.f32 1.0, %v3521_v2 }
0x14e9   :  { %3526 = vrcp.f32 %v1676_v50 }
0x14ea   :  { %3528 = vtanh.f32 %v1861_v13 }
0x14ed   :  { %v3523_v60 = vpop.eup %3522 }
0x14ee   :  { %v1865_v4 = vadd.f32 1.0, %v3523_v60  ;;  %v3525_v3 = vpop.eup %3524 }
0x14f0   :  { %3530 = vrcp.f32 %v1865_v4 }
0x14f3   :  { %v3527_v6 = vpop.eup %3526 }
0x14f4   :  { %v1680_v63 = vsel %vm121_vm4, %v3527_v6, %v3525_v3  ;;  %v3529_v7 = vpop.eup %3528 }
0x14f5   :  { %1683 = vrot.lane.b32.xlu1 %v1680_v63, %s3697_s23  ;;  %v1681_v11 = vmul.f32 %v1680_v63, %v4182_v33 }
0x14fa   :  { %v3531_v19 = vpop.eup %3530 }
0x14fb   :  { %v1869_v9 = vsel %vm121_vm4, %v3531_v19, %v3529_v7 }
0x14fc   :  { %1872 = vrot.lane.b32.xlu0 %v1869_v9, %s3697_s23  ;;  %v1870_v23 = vmul.f32 %v1869_v9, %v4247_v58 }
0x1567   :  { %v1684_v12 = vpop.permute.xlu1 %1683 }
0x1568   :  { %v1686_v15 = vmul.f32 %v1684_v12, %v1680_v63 }
0x156a   :  { %1688 = vrot.lane.b32.xlu1 %v1686_v15, %s3697_s23 }
0x156e   :  { %v1873_v20 = vpop.permute.xlu0 %1872 }
0x156f   :  { %v1875_v17 = vmul.f32 %v1873_v20, %v1869_v9 }
0x1571   :  { %1877 = vrot.lane.b32.xlu0 %v1875_v17, %s3697_s23 }
0x15dc   :  { %v1689_v21 = vpop.permute.xlu1 %1688 }
0x15dd   :  { %v4303_v22 = vadd.f32 %v1689_v21, %v1681_v11 }
0x15df   :  { %3532 = vtanh.f32 %v4303_v22 }
0x15e3   :  { %v1878_v24 = vpop.permute.xlu0 %1877 }
0x15e4   :  { %v4307_v25 = vadd.f32 %v1878_v24, %v1870_v23 }
0x15e6   :  { %3534 = vtanh.f32 %v4307_v25 }
0x15e9   :  { %v3533_v26 = vpop.eup %3532 }
0x15ea   :  { %1694 = vrot.lane.b32.xlu1 %v3533_v26, %s3697_s23 }
0x15f0   :  { %v3535_v27 = vpop.eup %3534 }
0x15f1   :  { %1883 = vrot.lane.b32.xlu0 %v3535_v27, %s3697_s23 }
0x165c   :  { %v1695_v31 = vpop.permute.xlu1 %1694 }
0x165d   :  { %v1697_v33 = vmul.f32 %v1695_v31, %v1680_v63 }
0x165f   :  { %v1698_v14 = vpack.c.bf16 %v1697_v33, %v1697_v33 }
0x1661   :  { %1747 = vrot.lane.b32.xlu1 %v1698_v14, %s3698_s21 }
0x1663   :  { %v1884_v34 = vpop.permute.xlu0 %1883 }
0x1664   :  { %v1886_v29 = vmul.f32 %v1884_v34, %v1869_v9 }
0x1666   :  { %v1887_v30 = vpack.c.bf16 %v1886_v29, %v1886_v29 }
0x1668   :  { %1929 = vrot.lane.b32.xlu0 %v1887_v30, %s3698_s21 }
0x16d3   :  { %v1748_v58 = vpop.permute.xlu1 %1747 }
0x16d4   :  { %3264 = vmatmul.mubr.msk.bf16.vlgmr.msra.gmra.mrb[52].mxu0 %vm71_vm1, %v1748_v58 }
0x16d5   :  { %3276 = vmatpush3.bf16.msra.mxu0 %v4318_v16  ;;  %3279 = vmatprep.mubr.msk.bf16.mxu0 %vm3696_vm0, %v3695_v0 }
0x16d6   :  { %3277 = vmatprep.subr.bf16.mxu0 %v3695_v0 }
0x16d9   :  { %3278 = vmatpush3.bf16.msra.mxu0 %v4327_v32 }
0x16da   :  { %v4330_v35 = vpop.permute.xlu0 %1929  ;;  %3291 = vmatprep.subr.bf16.mxu0 %v3695_v0 }
0x16db   :  { %3288 = vmatmul.mubr.msk.bf16.vlgmr.msra.gmra.mrb[56].mxu1 %vm71_vm1, %v4330_v35 }
0x16dc   :  { %3280 = vmatmul.mubr.msk.bf16.vlgmr.msra.gmra.mrb[56].mxu0 %vm71_vm1, %v1748_v58  ;;  %3300 = vmatpush3.bf16.msra.mxu1 %v4339_v36 }
0x16dd   :  { %3292 = vmatpush3.bf16.msra.mxu0 %v4345_v18  ;;  %3295 = vmatprep.mubr.msk.bf16.mxu0 %vm3696_vm0, %v3695_v0 }
0x16de   :  { %3293 = vmatprep.subr.bf16.mxu0 %v3695_v0  ;;  %3301 = vmatprep.subr.bf16.mxu1 %v3695_v0 }
0x16df   :  { %3303 = vmatprep.mubr.msk.bf16.mxu1 %vm3696_vm0, %v3695_v0 }
0x16e0   :  { %3302 = vmatpush3.bf16.msra.mxu1 %v4357_v57 }
0x16e1   :  { %3294 = vmatpush3.bf16.msra.mxu0 %v4363_v39  ;;  %3315 = vmatprep.subr.bf16.mxu1 %v3695_v0 }
0x16e2   :  { %3307 = vmatprep.subr.bf16.mxu0 %v3695_v0 }
0x17a7   :  { %v1786_v40 = vpop.f32.mrb[52].mxu0 }
0x17a8   :  { %v1787_v42 = vadd.f32 %v1786_v40, %v4286_v38  ;;  %v3265_v10 = vpop.f32.mrb[53].mxu0 }
0x17a9   :  { %v1789_v49 = vpop.f32.mrb[54].mxu0 }
0x17aa   :  { %v1792_v44 = vadd.f32 %v4372_v43, %v1787_v42  ;;  %v3266_v46 = vpop.f32.mrb[55].mxu0 }
0x17ac   :  { %v2900_v51 = vmul.f32 -1.442695, %v1792_v44 }
0x17ae   :  { %3536 = vpow2.f32 %v2900_v51  ;;  %v1968_v47 = vpop.f32.mrb[56].mxu1 }
0x17af   :  { %v1922_v48 = vpop.f32.mrb[56].mxu0  ;;  %v3289_v52 = vpop.f32.mrb[57].mxu1 }
0x17b0   :  { %v1969_v53 = vadd.f32 %v1968_v47, %v1922_v48  ;;  %v3281_v55 = vpop.f32.mrb[57].mxu0  ;;  %v1971_v13 = vpop.f32.mrb[58].mxu1 }
0x17b1   :  { %v1925_v56 = vpop.f32.mrb[58].mxu0  ;;  %v3290_v38 = vpop.f32.mrb[59].mxu1 }
0x17b2   :  { %v1974_v1 = vadd.f32 %v4289_v45, %v1969_v53  ;;  %v3282_v2 = vpop.f32.mrb[59].mxu0 }
0x17b4   :  { %v2905_v50 = vmul.f32 -1.442695, %v1974_v1 }
0x17b6   :  { %3538 = vpow2.f32 %v2905_v50 }
0x17b7   :  { %3540 = vtanh.f32 %v1792_v44 }
0x17b8   :  { %v3537_v60 = vpop.eup %3536 }
0x17b9   :  { %v1796_v4 = vadd.f32 1.0, %v3537_v60 }
0x17bb   :  { %3542 = vrcp.f32 %v1796_v4 }
0x17bc   :  { %3544 = vtanh.f32 %v1974_v1 }
0x17c0   :  { %v3539_v3 = vpop.eup %3538 }
0x17c1   :  { %v1978_v6 = vadd.f32 1.0, %v3539_v3  ;;  %v3541_v63 = vpop.eup %3540 }
0x17c3   :  { %3546 = vrcp.f32 %v1978_v6 }
0x17c5   :  { %v3543_v7 = vpop.eup %3542 }
0x17c6   :  { %v1800_v19 = vsel %vm121_vm4, %v3543_v7, %v3541_v63  ;;  %v3545_v9 = vpop.eup %3544 }
0x17c7   :  { %1803 = vrot.lane.b32.xlu1 %v1800_v19, %s3697_s23  ;;  %v1801_v23 = vmul.f32 %v1800_v19, %v4245_v8 }
0x17cd   :  { %v3547_v12 = vpop.eup %3546 }
0x17ce   :  { %v1982_v15 = vsel %vm121_vm4, %v3547_v12, %v3545_v9 }
0x17cf   :  { %1985 = vrot.lane.b32.xlu0 %v1982_v15, %s3697_s23  ;;  %v1983_v27 = vmul.f32 %v1982_v15, %v4303_v22 }
0x1839   :  { %v1804_v20 = vpop.permute.xlu1 %1803 }
0x183a   :  { %v1806_v17 = vmul.f32 %v1804_v20, %v1800_v19 }
0x183c   :  { %1808 = vrot.lane.b32.xlu1 %v1806_v17, %s3697_s23 }
0x1841   :  { %v1986_v11 = vpop.permute.xlu0 %1985 }
0x1842   :  { %v1988_v21 = vmul.f32 %v1986_v11, %v1982_v15 }
0x1844   :  { %1990 = vrot.lane.b32.xlu0 %v1988_v21, %s3697_s23 }
0x18ae   :  { %v1809_v24 = vpop.permute.xlu1 %1808 }
0x18af   :  { %v4385_v26 = vadd.f32 %v1809_v24, %v1801_v23 }
0x18b1   :  { %3548 = vtanh.f32 %v4385_v26 }
0x18b6   :  { %v1991_v31 = vpop.permute.xlu0 %1990 }
0x18b7   :  { %v4389_v33 = vadd.f32 %v1991_v31, %v1983_v27 }
0x18b9   :  { %3550 = vtanh.f32 %v4389_v33 }
0x18bb   :  { %v3549_v14 = vpop.eup %3548 }
0x18bc   :  { %1814 = vrot.lane.b32.xlu1 %v3549_v14, %s3697_s23 }
0x18c3   :  { %v3551_v34 = vpop.eup %3550 }
0x18c4   :  { %1996 = vrot.lane.b32.xlu0 %v3551_v34, %s3697_s23 }
0x192e   :  { %v1815_v29 = vpop.permute.xlu1 %1814 }
0x192f   :  { %v1817_v8 = vmul.f32 %v1815_v29, %v1800_v19 }
0x1931   :  { %v2001_v30 = vpack.c.bf16 %v1817_v8, %v1817_v8 }
0x1933   :  { %2003 = vrot.lane.b32.xlu1 %v2001_v30, %s3698_s21 }
0x1936   :  { %v1997_v58 = vpop.permute.xlu0 %1996 }
0x1937   :  { %v1999_v40 = vmul.f32 %v1997_v58, %v1982_v15 }
0x1939   :  { %v2000_v42 = vpack.c.bf16 %v1999_v40, %v1999_v40 }
0x193b   :  { %2049 = vrot.lane.b32.xlu0 %v2000_v42, %s3698_s21 }
0x19a5   :  { %v2004_v22 = vpop.permute.xlu1 %2003 }
0x19a6   :  { %3296 = vmatmul.mubr.msk.bf16.vlgmr.msra.gmra.mrb[60].mxu0 %vm71_vm1, %v2004_v22 }
0x19a7   :  { %3308 = vmatpush3.bf16.msra.mxu0 %v4193_v37  ;;  %3311 = vmatprep.mubr.msk.bf16.mxu0 %vm3696_vm0, %v3695_v0 }
0x19a8   :  { %3309 = vmatprep.subr.bf16.mxu0 %v3695_v0 }
0x19ab   :  { %3310 = vmatpush3.bf16.msra.mxu0 %v4202_v5 }
0x19ac   :  { %3323 = vmatprep.subr.bf16.mxu0 %v3695_v0 }
0x19ad   :  { %v2050_v10 = vpop.permute.xlu0 %2049 }
0x19ae   :  { %3304 = vmatmul.mubr.msk.bf16.vlgmr.msra.gmra.mrb[60].mxu1 %vm71_vm1, %v2050_v10  ;;  %3312 = vmatmul.mubr.msk.bf16.vlgmr.msra.gmra.mrb[64].mxu0 %vm71_vm1, %v4330_v35 }
0x19af   :  { %3316 = vmatpush3.bf16.msra.mxu1 %v4318_v16  ;;  %3319 = vmatprep.mubr.msk.bf16.mxu1 %vm3696_vm0, %v3695_v0 }
0x19b0   :  { %3317 = vmatprep.subr.bf16.mxu1 %v3695_v0  ;;  %3324 = vmatpush3.bf16.msra.mxu0 %v4273_v41 }
0x19b1   :  { %3325 = vmatprep.subr.bf16.mxu0 %v3695_v0  ;;  %3327 = vmatprep.mubr.msk.bf16.mxu0 %vm3696_vm0, %v3695_v0 }
0x19b3   :  { %3318 = vmatpush3.bf16.msra.mxu1 %v4327_v32 }
0x19b4   :  { %3331 = vmatprep.subr.bf16.mxu1 %v3695_v0  ;;  %3326 = vmatpush3.bf16.msra.mxu0 %v4282_v62 }
0x19b5   :  { %3339 = vmatprep.subr.bf16.mxu0 %v3695_v0 }
0x19b6   :  { %3320 = vmatmul.mubr.msk.bf16.vlgmr.msra.gmra.mrb[64].mxu1 %vm71_vm1, %v2050_v10 }
0x19b7   :  { %3332 = vmatpush3.bf16.msra.mxu1 %v4345_v18  ;;  %3335 = vmatprep.mubr.msk.bf16.mxu1 %vm3696_vm0, %v3695_v0 }
0x19b8   :  { %3333 = vmatprep.subr.bf16.mxu1 %v3695_v0 }
0x19bb   :  { %3334 = vmatpush3.bf16.msra.mxu1 %v4363_v39 }
0x19bc   :  { %3347 = vmatprep.subr.bf16.mxu1 %v3695_v0 }
0x1a79   :  { %v2042_v35 = vpop.f32.mrb[60].mxu0 }
0x1a7a   :  { %v3297_v49 = vpop.f32.mrb[61].mxu0 }
0x1a7b   :  { %v2045_v44 = vpop.f32.mrb[62].mxu0 }
0x1a7c   :  { %v3298_v46 = vpop.f32.mrb[63].mxu0 }
0x1a81   :  { %v2088_v51 = vpop.f32.mrb[60].mxu1  ;;  %v2156_v47 = vpop.f32.mrb[64].mxu0 }
0x1a82   :  { %v2089_v48 = vadd.f32 %v2088_v51, %v2042_v35  ;;  %v2162_v52 = vadd.f32 %v3930_v59, %v2156_v47  ;;  %v3305_v53 = vpop.f32.mrb[61].mxu1  ;;  %v3313_v55 = vpop.f32.mrb[65].mxu0 }
0x1a83   :  { %v2091_v13 = vpop.f32.mrb[62].mxu1  ;;  %v2159_v56 = vpop.f32.mrb[66].mxu0 }
0x1a84   :  { %v2094_v38 = vadd.f32 %v4372_v43, %v2089_v48  ;;  %v2163_v1 = vadd.f32 %v4230_v54, %v2162_v52  ;;  %v3306_v2 = vpop.f32.mrb[63].mxu1  ;;  %v3314_v50 = vpop.f32.mrb[67].mxu0 }
0x1a86   :  { %v2908_v60 = vmul.f32 -1.442695, %v2094_v38  ;;  %v2910_v4 = vmul.f32 -1.442695, %v2163_v1 }
0x1a88   :  { %3552 = vpow2.f32 %v2908_v60 }
0x1a89   :  { %3554 = vpow2.f32 %v2910_v4  ;;  %v4428_v3 = vpop.f32.mrb[64].mxu1 }
0x1a8a   :  { %v3321_v6 = vpop.f32.mrb[65].mxu1  ;;  %3556 = vtanh.f32 %v2094_v38 }
0x1a8b   :  { %v2227_v63 = vpop.f32.mrb[66].mxu1  ;;  %3558 = vtanh.f32 %v2163_v1 }
0x1a8c   :  { %v3322_v7 = vpop.f32.mrb[67].mxu1 }
0x1a92   :  { %v3553_v59 = vpop.eup %3552 }
0x1a93   :  { %v3555_v19 = vpop.eup %3554  ;;  %v2098_v9 = vadd.f32 1.0, %v3553_v59 }
0x1a94   :  { %v2167_v12 = vadd.f32 1.0, %v3555_v19  ;;  %v3557_v15 = vpop.eup %3556 }
0x1a95   :  { %3560 = vrcp.f32 %v2098_v9  ;;  %v3559_v20 = vpop.eup %3558 }
0x1a96   :  { %3562 = vrcp.f32 %v2167_v12 }
0x1a9f   :  { %v3561_v17 = vpop.eup %3560 }
0x1aa0   :  { %v3563_v11 = vpop.eup %3562  ;;  %v2102_v21 = vsel %vm121_vm4, %v3561_v17, %v3557_v15 }
0x1aa1   :  { %v2171_v23 = vsel %vm121_vm4, %v3563_v11, %v3559_v20  ;;  %2105 = vrot.lane.b32.xlu1 %v2102_v21, %s3697_s23  ;;  %v2103_v34 = vmul.f32 %v2102_v21, %v4385_v26 }
0x1aa2   :  { %2174 = vrot.lane.b32.xlu0 %v2171_v23, %s3697_s23  ;;  %v2172_v29 = vmul.f32 %v2171_v23, %v4307_v25 }
0x1b13   :  { %v2106_v24 = vpop.permute.xlu1 %2105 }
0x1b14   :  { %v2175_v27 = vpop.permute.xlu0 %2174  ;;  %v2108_v31 = vmul.f32 %v2106_v24, %v2102_v21 }
0x1b15   :  { %v2177_v14 = vmul.f32 %v2175_v27, %v2171_v23 }
0x1b16   :  { %2110 = vrot.lane.b32.xlu1 %v2108_v31, %s3697_s23 }
0x1b17   :  { %2179 = vrot.lane.b32.xlu0 %v2177_v14, %s3697_s23 }
0x1b88   :  { %v2111_v8 = vpop.permute.xlu1 %2110 }
0x1b89   :  { %v2180_v30 = vpop.permute.xlu0 %2179  ;;  %v4440_v58 = vadd.f32 %v2111_v8, %v2103_v34 }
0x1b8a   :  { %v4442_v40 = vadd.f32 %v2180_v30, %v2172_v29 }
0x1b8b   :  { %3564 = vtanh.f32 %v4440_v58 }
0x1b8c   :  { %3566 = vtanh.f32 %v4442_v40 }
0x1b95   :  { %v3565_v42 = vpop.eup %3564 }
0x1b96   :  { %v3567_v22 = vpop.eup %3566  ;;  %2116 = vrot.lane.b32.xlu1 %v3565_v42, %s3697_s23 }
0x1b97   :  { %2185 = vrot.lane.b32.xlu0 %v3567_v22, %s3697_s23 }
0x1c08   :  { %v2117_v10 = vpop.permute.xlu1 %2116 }
0x1c09   :  { %v2186_v26 = vpop.permute.xlu0 %2185  ;;  %v2119_v35 = vmul.f32 %v2117_v10, %v2102_v21 }
0x1c0a   :  { %v2188_v25 = vmul.f32 %v2186_v26, %v2171_v23 }
0x1c0b   :  { %v2303_v49 = vpack.c.bf16 %v2119_v35, %v2119_v35 }
0x1c0c   :  { %v2189_v44 = vpack.c.bf16 %v2188_v25, %v2188_v25 }
0x1c0d   :  { %2305 = vrot.lane.b32.xlu0 %v2303_v49, %s3698_s21 }
0x1c0e   :  { %2231 = vrot.lane.b32.xlu1 %v2189_v44, %s3698_s21 }
0x1c7f   :  { %v2306_v46 = vpop.permute.xlu0 %2305 }
0x1c80   :  { %v2232_v51 = vpop.permute.xlu1 %2231  ;;  %3336 = vmatmul.mubr.msk.bf16.vlgmr.msra.gmra.mrb[68].mxu1 %vm71_vm1, %v2306_v46 }
0x1c81   :  { %3328 = vmatmul.mubr.msk.bf16.vlgmr.msra.gmra.mrb[68].mxu0 %vm71_vm1, %v2232_v51  ;;  %3348 = vmatpush3.bf16.msra.mxu1 %v4193_v37 }
0x1c82   :  { %3349 = vmatprep.subr.bf16.mxu1 %v3695_v0  ;;  %3351 = vmatprep.mubr.msk.bf16.mxu1 %vm3696_vm0, %v3695_v0 }
0x1c83   :  { %3340 = vmatpush3.bf16.msra.mxu0 %v4339_v36  ;;  %3343 = vmatprep.mubr.msk.bf16.mxu0 %vm3696_vm0, %v3695_v0 }
0x1c84   :  { %3341 = vmatprep.subr.bf16.mxu0 %v3695_v0 }
0x1c85   :  { %3350 = vmatpush3.bf16.msra.mxu1 %v4202_v5 }
0x1c86   :  { %3363 = vmatprep.subr.bf16.mxu1 %v3695_v0 }
0x1c87   :  { %3342 = vmatpush3.bf16.msra.mxu0 %v4357_v57 }
0x1c88   :  { %3352 = vmatmul.mubr.msk.bf16.vlgmr.msra.gmra.mrb[72].mxu1 %vm71_vm1, %v2232_v51  ;;  %3355 = vmatprep.subr.bf16.mxu0 %v3695_v0 }
0x1c89   :  { %3364 = vmatpush3.bf16.msra.mxu1 %v4273_v41  ;;  %3367 = vmatprep.mubr.msk.bf16.mxu1 %vm3696_vm0, %v3695_v0 }
0x1c8a   :  { %3365 = vmatprep.subr.bf16.mxu1 %v3695_v0 }
0x1c8d   :  { %3366 = vmatpush3.bf16.msra.mxu1 %v4282_v62 }
0x1c8e   :  { %3379 = vmatprep.subr.bf16.mxu1 %v3695_v0 }
0x1d53   :  { %v4471_v37 = vpop.f32.mrb[68].mxu1 }
0x1d54   :  { %v2270_v5 = vpop.f32.mrb[68].mxu0  ;;  %v3337_v47 = vpop.f32.mrb[69].mxu1 }
0x1d55   :  { %v2271_v48 = vadd.f32 %v2270_v5, %v4428_v3  ;;  %v3329_v52 = vpop.f32.mrb[69].mxu0  ;;  %v2347_v53 = vpop.f32.mrb[70].mxu1 }
0x1d56   :  { %v2273_v55 = vpop.f32.mrb[70].mxu0  ;;  %v3338_v13 = vpop.f32.mrb[71].mxu1 }
0x1d57   :  { %v2276_v41 = vadd.f32 %v4289_v45, %v2271_v48  ;;  %v3330_v56 = vpop.f32.mrb[71].mxu0 }
0x1d59   :  { %v2913_v38 = vmul.f32 -1.442695, %v2276_v41 }
0x1d5b   :  { %3568 = vpow2.f32 %v2913_v38  ;;  %v2458_v1 = vpop.f32.mrb[72].mxu1 }
0x1d5c   :  { %v2464_v62 = vadd.f32 %v3934_v61, %v2458_v1  ;;  %v3353_v2 = vpop.f32.mrb[73].mxu1 }
0x1d5d   :  { %v2461_v50 = vpop.f32.mrb[74].mxu1 }
0x1d5e   :  { %v2465_v60 = vadd.f32 %v4230_v54, %v2464_v62  ;;  %v3354_v4 = vpop.f32.mrb[75].mxu1 }
0x1d60   :  { %v2918_v6 = vmul.f32 -1.442695, %v2465_v60 }
0x1d62   :  { %3570 = vpow2.f32 %v2918_v6 }
0x1d63   :  { %3572 = vtanh.f32 %v2276_v41 }
0x1d65   :  { %v3569_v3 = vpop.eup %3568 }
0x1d66   :  { %v2280_v63 = vadd.f32 1.0, %v3569_v3 }
0x1d68   :  { %3574 = vrcp.f32 %v2280_v63 }
0x1d69   :  { %3576 = vtanh.f32 %v2465_v60 }
0x1d6c   :  { %v3571_v7 = vpop.eup %3570 }
0x1d6d   :  { %v2469_v59 = vadd.f32 1.0, %v3571_v7  ;;  %v3573_v19 = vpop.eup %3572 }
0x1d6f   :  { %3578 = vrcp.f32 %v2469_v59 }
0x1d72   :  { %v3575_v9 = vpop.eup %3574 }
0x1d73   :  { %v2284_v61 = vsel %vm121_vm4, %v3575_v9, %v3573_v19  ;;  %v3577_v12 = vpop.eup %3576 }
0x1d74   :  { %2287 = vrot.lane.b32.xlu1 %v2284_v61, %s3697_s23  ;;  %v2285_v23 = vmul.f32 %v2284_v61, %v4389_v33 }
0x1d79   :  { %v3579_v54 = vpop.eup %3578 }
0x1d7a   :  { %v2473_v15 = vsel %vm121_vm4, %v3579_v54, %v3577_v12 }
0x1d7b   :  { %2476 = vrot.lane.b32.xlu0 %v2473_v15, %s3697_s23  ;;  %v2474_v31 = vmul.f32 %v2473_v15, %v4442_v40 }
0x1de6   :  { %v2288_v20 = vpop.permute.xlu1 %2287 }
0x1de7   :  { %v2290_v17 = vmul.f32 %v2288_v20, %v2284_v61 }
0x1de9   :  { %2292 = vrot.lane.b32.xlu1 %v2290_v17, %s3697_s23 }
0x1ded   :  { %v2477_v11 = vpop.permute.xlu0 %2476 }
0x1dee   :  { %v2479_v21 = vmul.f32 %v2477_v11, %v2473_v15 }
0x1df0   :  { %2481 = vrot.lane.b32.xlu0 %v2479_v21, %s3697_s23 }
0x1e5b   :  { %v2293_v24 = vpop.permute.xlu1 %2292 }
0x1e5c   :  { %v4486_v27 = vadd.f32 %v2293_v24, %v2285_v23 }
0x1e5e   :  { %3580 = vtanh.f32 %v4486_v27 }
0x1e62   :  { %v2482_v14 = vpop.permute.xlu0 %2481 }
0x1e63   :  { %v4490_v34 = vadd.f32 %v2482_v14, %v2474_v31 }
0x1e65   :  { %3582 = vtanh.f32 %v4490_v34 }
0x1e68   :  { %v3581_v29 = vpop.eup %3580 }
0x1e69   :  { %2298 = vrot.lane.b32.xlu1 %v3581_v29, %s3697_s23 }
0x1e6f   :  { %v3583_v8 = vpop.eup %3582 }
0x1e70   :  { %2487 = vrot.lane.b32.xlu0 %v3583_v8, %s3697_s23 }
0x1edb   :  { %v2299_v30 = vpop.permute.xlu1 %2298 }
0x1edc   :  { %v2301_v33 = vmul.f32 %v2299_v30, %v2284_v61 }
0x1ede   :  { %v2302_v42 = vpack.c.bf16 %v2301_v33, %v2301_v33 }
0x1ee0   :  { %2351 = vrot.lane.b32.xlu1 %v2302_v42, %s3698_s21 }
0x1ee2   :  { %v2488_v22 = vpop.permute.xlu0 %2487 }
0x1ee3   :  { %v4496_v10 = vmul.f32 %v2488_v22, %v2473_v15 }
0x1ee5   :  { %v2491_v40 = vpack.c.bf16 %v4496_v10, %v4496_v10 }
0x1ee7   :  { %2533 = vrot.lane.b32.xlu0 %v2491_v40, %s3698_s21 }
0x1f52   :  { %v2352_v26 = vpop.permute.xlu1 %2351 }
0x1f53   :  { %3344 = vmatmul.mubr.msk.bf16.vlgmr.msra.gmra.mrb[72].mxu0 %vm71_vm1, %v2352_v26 }
0x1f54   :  { %3356 = vmatpush3.bf16.msra.mxu0 %v4318_v16  ;;  %3359 = vmatprep.mubr.msk.bf16.mxu0 %vm3696_vm0, %v3695_v0 }
0x1f55   :  { %3357 = vmatprep.subr.bf16.mxu0 %v3695_v0 }
0x1f58   :  { %3358 = vmatpush3.bf16.msra.mxu0 %v4327_v32 }
0x1f59   :  { %v2534_v35 = vpop.permute.xlu0 %2533  ;;  %3371 = vmatprep.subr.bf16.mxu0 %v3695_v0 }
0x1f5a   :  { %3368 = vmatmul.mubr.msk.bf16.vlgmr.msra.gmra.mrb[76].mxu1 %vm71_vm1, %v2534_v35 }
0x1f5b   :  { %3360 = vmatmul.mubr.msk.bf16.vlgmr.msra.gmra.mrb[76].mxu0 %vm71_vm1, %v2352_v26  ;;  %3380 = vmatpush3.bf16.msra.mxu1 %v4339_v36 }
0x1f5c   :  { %3372 = vmatpush3.bf16.msra.mxu0 %v4345_v18  ;;  %3375 = vmatprep.mubr.msk.bf16.mxu0 %vm3696_vm0, %v3695_v0 }
0x1f5d   :  { %3373 = vmatprep.subr.bf16.mxu0 %v3695_v0  ;;  %3381 = vmatprep.subr.bf16.mxu1 %v3695_v0 }
0x1f5e   :  { %3383 = vmatprep.mubr.msk.bf16.mxu1 %vm3696_vm0, %v3695_v0 }
0x1f5f   :  { %3382 = vmatpush3.bf16.msra.mxu1 %v4357_v57 }
0x1f60   :  { %3374 = vmatpush3.bf16.msra.mxu0 %v4363_v39 }
0x1f61   :  { %3387 = vmatprep.subr.bf16.mxu0 %v3695_v0 }
0x2026   :  { %v2390_v16 = vpop.f32.mrb[72].mxu0 }
0x2027   :  { %v2391_v32 = vadd.f32 %v2390_v16, %v4471_v37  ;;  %v3345_v36 = vpop.f32.mrb[73].mxu0 }
0x2028   :  { %v2393_v18 = vpop.f32.mrb[74].mxu0 }
0x2029   :  { %v2396_v25 = vadd.f32 %v4372_v43, %v2391_v32  ;;  %v3346_v49 = vpop.f32.mrb[75].mxu0 }
0x202b   :  { %v2916_v44 = vmul.f32 -1.442695, %v2396_v25 }
0x202d   :  { %3584 = vpow2.f32 %v2916_v44  ;;  %v2572_v46 = vpop.f32.mrb[76].mxu1 }
0x202e   :  { %v2526_v51 = vpop.f32.mrb[76].mxu0  ;;  %v3369_v5 = vpop.f32.mrb[77].mxu1 }
0x202f   :  { %v2573_v47 = vadd.f32 %v2572_v46, %v2526_v51  ;;  %v3361_v48 = vpop.f32.mrb[77].mxu0  ;;  %v2575_v57 = vpop.f32.mrb[78].mxu1 }
0x2030   :  { %v2529_v52 = vpop.f32.mrb[78].mxu0  ;;  %v3370_v39 = vpop.f32.mrb[79].mxu1 }
0x2031   :  { %v2578_v53 = vadd.f32 %v4289_v45, %v2573_v47  ;;  %v3362_v55 = vpop.f32.mrb[79].mxu0  ;;  %v3414_v47 = vld [vmem:[%s4597_s10] sm:$0xff]  }
0x2033   :  { %v2921_v13 = vmul.f32 -1.442695, %v2578_v53 }
0x2035   :  { %3586 = vpow2.f32 %v2921_v13 }
0x2036   :  { %3588 = vtanh.f32 %v2396_v25 }
0x2037   :  { %v3585_v37 = vpop.eup %3584 }
0x2038   :  { %v2400_v41 = vadd.f32 1.0, %v3585_v37 }
0x203a   :  { %3590 = vrcp.f32 %v2400_v41 }
0x203b   :  { %3592 = vtanh.f32 %v2578_v53 }
0x203f   :  { %v3587_v56 = vpop.eup %3586 }
0x2040   :  { %v2582_v38 = vadd.f32 1.0, %v3587_v56  ;;  %v3589_v1 = vpop.eup %3588 }
0x2042   :  { %3594 = vrcp.f32 %v2582_v38 }
0x2044   :  { %v3591_v62 = vpop.eup %3590 }
0x2045   :  { %v2404_v2 = vsel %vm121_vm4, %v3591_v62, %v3589_v1  ;;  %v3593_v50 = vpop.eup %3592 }
0x2046   :  { %2407 = vrot.lane.b32.xlu1 %v2404_v2, %s3697_s23  ;;  %v2405_v7 = vmul.f32 %v2404_v2, %v4440_v58 }
0x204c   :  { %v3595_v45 = vpop.eup %3594 }
0x204d   :  { %v2586_v60 = vsel %vm121_vm4, %v3595_v45, %v3593_v50 }
0x204e   :  { %2589 = vrot.lane.b32.xlu0 %v2586_v60, %s3697_s23  ;;  %v2587_v9 = vmul.f32 %v2586_v60, %v4486_v27 }
0x20b8   :  { %v2408_v4 = vpop.permute.xlu1 %2407 }
0x20b9   :  { %v2410_v6 = vmul.f32 %v2408_v4, %v2404_v2 }
0x20bb   :  { %2412 = vrot.lane.b32.xlu1 %v2410_v6, %s3697_s23 }
0x20c0   :  { %v2590_v3 = vpop.permute.xlu0 %2589 }
0x20c1   :  { %v2592_v63 = vmul.f32 %v2590_v3, %v2586_v60 }
0x20c3   :  { %2594 = vrot.lane.b32.xlu0 %v2592_v63, %s3697_s23 }
0x212d   :  { %v2413_v59 = vpop.permute.xlu1 %2412 }
0x212e   :  { %v2415_v19 = vadd.f32 %v2413_v59, %v2405_v7 }
0x2130   :  { %3596 = vtanh.f32 %v2415_v19 }
0x2135   :  { %v2595_v61 = vpop.permute.xlu0 %2594 }
0x2136   :  { %v4534_v12 = vadd.f32 %v2595_v61, %v2587_v9 }
0x2138   :  { %3598 = vtanh.f32 %v4534_v12 }
0x213a   :  { %v3597_v54 = vpop.eup %3596 }
0x213b   :  { %2418 = vrot.lane.b32.xlu1 %v3597_v54, %s3697_s23 }
0x2142   :  { %v3599_v15 = vpop.eup %3598 }
0x2143   :  { %2600 = vrot.lane.b32.xlu0 %v3599_v15, %s3697_s23 }
0x21ad   :  { %v2419_v20 = vpop.permute.xlu1 %2418 }
0x21ae   :  { %v2421_v17 = vmul.f32 %v2419_v20, %v2404_v2 }
0x21b0   :  { %v2605_v11 = vpack.c.bf16 %v2421_v17, %v2421_v17 }
0x21b2   :  { %2607 = vrot.lane.b32.xlu1 %v2605_v11, %s3698_s21 }
0x21b5   :  { %v2601_v58 = vpop.permute.xlu0 %2600 }
0x21b6   :  { %v2603_v21 = vmul.f32 %v2601_v58, %v2586_v60 }
0x21b8   :  { %v2604_v23 = vpack.c.bf16 %v2603_v21, %v2603_v21 }
0x21ba   :  { %2653 = vrot.lane.b32.xlu0 %v2604_v23, %s3698_s21 }
0x2224   :  { %v2608_v24 = vpop.permute.xlu1 %2607 }
0x2225   :  { %3376 = vmatmul.mubr.msk.bf16.vlgmr.msra.gmra.mrb[80].mxu0 %vm71_vm1, %v2608_v24 }
0x2226   :  { %3391 = vmatprep.mubr.msk.bf16.mxu0 %vm3696_vm0, %v3695_v0  ;;  %3388 = vmatpush3.bf16.msra.mxu0 %v3414_v47 }
0x2227   :  { %3389 = vmatprep.subr.bf16.mxu0 %v3695_v0 }
0x222a   :  { %3390 = vmatpush3.bf16.msra.mxu0 %v3415_v28 }
0x222c   :  { %v2654_v27 = vpop.permute.xlu0 %2653 }
0x222d   :  { %3384 = vmatmul.mubr.msk.bf16.vlgmr.msra.gmra.mrb[80].mxu1 %vm71_vm1, %v2654_v27 }
0x22f8   :  { %v2646_v31 = vpop.f32.mrb[80].mxu0 }
0x22f9   :  { %v3377_v14 = vpop.f32.mrb[81].mxu0 }
0x22fa   :  { %v2649_v29 = vpop.f32.mrb[82].mxu0 }
0x22fb   :  { %v3378_v8 = vpop.f32.mrb[83].mxu0 }
0x2300   :  { %v2692_v30 = vpop.f32.mrb[80].mxu1 }
0x2301   :  { %v2693_v33 = vadd.f32 %v2692_v30, %v2646_v31  ;;  %v3385_v42 = vpop.f32.mrb[81].mxu1 }
0x2302   :  { %v2695_v22 = vpop.f32.mrb[82].mxu1 }
0x2303   :  { %v2698_v40 = vadd.f32 %v4372_v43, %v2693_v33  ;;  %v3386_v26 = vpop.f32.mrb[83].mxu1 }
0x2305   :  { %v2924_v35 = vmul.f32 -1.442695, %v2698_v40 }
0x2307   :  { %3600 = vpow2.f32 %v2924_v35 }
0x2308   :  { %3602 = vtanh.f32 %v2698_v40 }
0x2311   :  { %v3601_v16 = vpop.eup %3600 }
0x2312   :  { %v2702_v32 = vadd.f32 1.0, %v3601_v16  ;;  %v3603_v36 = vpop.eup %3602 }
0x2314   :  { %3604 = vrcp.f32 %v2702_v32 }
0x231e   :  { %v3605_v18 = vpop.eup %3604 }
0x231f   :  { %v2706_v25 = vsel %vm121_vm4, %v3605_v18, %v3603_v36 }
0x2320   :  { %2709 = vrot.lane.b32.xlu1 %v2706_v25, %s3697_s23  ;;  %v2707_v46 = vmul.f32 %v2706_v25, %v2415_v19 }
0x2392   :  { %v2710_v49 = vpop.permute.xlu1 %2709 }
0x2393   :  { %v2712_v44 = vmul.f32 %v2710_v49, %v2706_v25 }
0x2395   :  { %2714 = vrot.lane.b32.xlu0 %v2712_v44, %s3697_s23 }
0x2407   :  { %v2715_v43 = vpop.permute.xlu0 %2714 }
0x2408   :  { %v2717_v51 = vadd.f32 %v2715_v43, %v2707_v46 }
0x240a   :  { %3606 = vtanh.f32 %v2717_v51 }
0x2414   :  { %v3607_v5 = vpop.eup %3606 }
0x2415   :  { %2720 = vrot.lane.b32.xlu1 %v3607_v5, %s3697_s23  ;;  %s3699_s23 = smov 96  }
0x2419   :  { %2725 = vrot.lane.b32.xlu1 %v4496_v10, %s3698_s21 }
0x241d   :  { %2735 = vrot.lane.b32.xlu1 %v2603_v21, %s3698_s21 }
0x2487   :  { %v2721_v48 = vpop.permute.xlu1 %2720 }
0x2488   :  { %v2723_v57 = vmul.f32 %v2721_v48, %v2706_v25 }
0x248a   :  { %v2757_v52 = vpack.c.bf16 %v2723_v57, %v2723_v57  ;;  %2745 = vrot.lane.b32.xlu1 %v2723_v57, %s3698_s21 }
0x248b   :  { %v2726_v39 = vpop.permute.xlu1 %2725 }
0x248c   :  { %2728 = vst.msk [vmem:[#allocation3] sm:$0xff] %vm71_vm1, %v2726_v39  ;;  %2770 = vrot.lane.b32.xlu0 %v2757_v52, %s3698_s21 }
0x248f   :  { %v2736_v10 = vpop.permute.xlu1 %2735 }
0x2490   :  { %2738 = vst.msk [vmem:[#allocation5] sm:$0xff] %vm71_vm1, %v2736_v10  ;;  %2730 = vrot.lane.b32.xlu0 %v4490_v34, %s3699_s23  ;;  %v2925_v34 = vld [vmem:[%s4598_s11] ss:$0 sm:$0xff] }
0x2494   :  { %2740 = vrot.lane.b32.xlu0 %v4534_v12, %s3699_s23 }
0x2498   :  { %2750 = vrot.lane.b32.xlu0 %v2717_v51, %s3699_s23 }
0x24fc   :  { %v2746_v0 = vpop.permute.xlu1 %2745 }
0x24fd   :  { %2748 = vst.msk [vmem:[#allocation7] sm:$0xff] %vm71_vm1, %v2746_v0 }
0x24fe   :  { %v2771_v53 = vpop.permute.xlu0 %2770 }
0x24ff   :  { %3392 = vmatmul.mubr.msk.bf16.vlgmr.msra.gmra.mrb[84].mxu0 %vm71_vm1, %v2771_v53 }
0x2502   :  { %v2731_v55 = vpop.permute.xlu0 %2730 }
0x2503   :  { %2733 = vst.msk [vmem:[#allocation4] sm:$0xff] %vm71_vm1, %v2731_v55 }
0x2506   :  { %v2741_v13 = vpop.permute.xlu0 %2740 }
0x2507   :  { %2743 = vst.msk [vmem:[#allocation6] sm:$0xff] %vm71_vm1, %v2741_v13 }
0x250a   :  { %v2751_v37 = vpop.permute.xlu0 %2750 }
0x250b   :  { %2753 = vst.msk [vmem:[#allocation8] sm:$0xff] %vm71_vm1, %v2751_v37 }
0x25d2   :  { %v2821_v41 = vpop.f32.mrb[84].mxu0 }
0x25d3   :  { %v2822_v56 = vadd.f32 %v2925_v34, %v2821_v41  ;;  %v3393_v38 = vpop.f32.mrb[85].mxu0 }
0x25d4   :  { %v2824_v1 = vpop.f32.mrb[86].mxu0 }
0x25d5   :  { %2827 = vst [vmem:[#allocation14] sm:$0xff] %v2822_v56  ;;  %v3394_v62 = vpop.f32.mrb[87].mxu0 }
0x25d6   :  { %3676 = shalt.err (!%p3673_p6)
}
0x25d7   :  { %s3677_s11 = scalar_lea.hbm %s4599_s12, 128 }
0x25d8   :  { %p3678_p7 = scmp.ne.s32.totalorder %s4599_s12, %s3677_s11  ;;  %p3681_p8 = scmp.lt.u32.totalorder %s3677_s11, %s4599_s12 }
0x25da   :  { %p3683_p9 = pnand %p3681_p8, %p3678_p7 }
0x25dc   :  { %3686 = shalt.err (!%p3683_p9)
}
0x25dd   :  { %2837 = dma.vmem_to_hbm [thread:$0]  %s2835_s24, 128, %s4599_s12, [#allocation11]  }
0x25de   :  { %3691 = dma.done.wait [#allocation11], 128  }
0x25df   :  { %3692 = vsyncadd [#allocation11], 4294967168 }
0x25e0   :  { %2841 = vsyncpa [#allocation10], 1 }
0x25e1   :  { %2842 = vsyncpa [#allocation13], 1 }
0x25e2   :  { %2843 = vsyncpa [#allocation11], 1 }

</bundles_post_ra>
